<compile_context>
chip_gen: v5e
topology: v5e:2x2
jax: 0.10.0
libtpu: 0.0.40
codegen_flags: <defaults>
</compile_context>

<pallas_src>
import jax
import jax.numpy as jnp
from jax.experimental import pallas as pl
from jax.experimental.pallas import tpu as pltpu

# ---------------- config (small, consistent with the module) ----------------
N, S, H, W = 2, 8, 16, 16       # batch, seq-len, spatial
C_IN = 1
C_BACK = 8                      # backbone output channels (stand-in backbone)
BINS = (16, 8, 4, 2, 1)         # HorizontalPoolingPyramid bin_num
P = sum(BINS)                   # 31 parts
C_FC = 16                       # SeparateFCs out_channels
CLASS_NUM = 32                  # SeparateBNNecks class_num
BN_EPS = 1e-5
L2_EPS = 1e-12
HP, WP = H + 2, W + 2           # zero-padded spatial (pad=1)


# ------------------ fused kernel: one grid step per batch n ------------------
def _fused_kernel(x_ref, cw_ref, cb_ref, fc1_ref, bnsc_ref, bnsh_ref, fc2_ref,
                  e1_ref, logit_ref, pad_ref, fmax_ref):
    # x_ref    : (S, H, W)           VMEM  one batch element's silhouettes
    # cw_ref   : (C_BACK, 9)         SMEM  conv weights (flat tap t = dy*3+dx)
    # cb_ref   : (C_BACK,)           SMEM  conv bias
    # fc1_ref  : (C_FC, C_BACK, P)   VMEM  SeparateFCs weights   [f, c, p]
    # bnsc/bnsh: (C_FC, P)           VMEM  folded eval BN1d scale / shift
    # fc2_ref  : (CLASS_NUM, C_FC, P)VMEM  normalized classifier [k, f, p]
    # e1_ref   : (C_FC, P)           out   embed_1
    # logit_ref: (CLASS_NUM, P)      out   logits
    # pad_ref  : (S, HP, WP)         VMEM scratch  zero-padded frames
    # fmax_ref : (C_BACK, H, W)      VMEM scratch  running temporal max

    # ---- in-kernel zero padding (pad=1): build padded value, one full store --
    x = x_ref[...]                                               # (S, H, W)
    zc = jnp.zeros((S, H, 1), jnp.float32)
    zr = jnp.zeros((S, 1, WP), jnp.float32)
    xp = jnp.concatenate([zc, x, zc], axis=2)                    # (S, H, WP)
    pad_ref[...] = jnp.concatenate([zr, xp, zr], axis=1)         # (S, HP, WP)

    # ---- conv3x3 + bias + ReLU + temporal max: frame loop, bounded live set --
    fmax_ref[...] = jnp.zeros_like(fmax_ref)     # ReLU output >= 0 -> 0-init ok

    @pl.loop(0, S)
    def _frame(s):
        frame = pad_ref[s]                                       # (HP, WP)
        taps = [frame[dy:dy + H, dx:dx + W]                      # 9 x (H, W)
                for dy in range(3) for dx in range(3)]
        for c in range(C_BACK):
            acc = taps[0] * cw_ref[c, 0]
            for t in range(1, 9):
                acc = acc + taps[t] * cw_ref[c, t]
            v = jnp.maximum(acc + cb_ref[c], 0.0)                # bias + ReLU
            fmax_ref[c] = jnp.maximum(fmax_ref[c], v)            # temporal max

    # ---- HorizontalPoolingPyramid -> feat[c, p] ------------------------------
    fm = fmax_ref[...]                                           # (C_BACK, H, W)
    rs = jnp.sum(fm, axis=-1)                                    # row sums  (C_BACK, H)
    rm = jnp.max(fm, axis=-1)                                    # row maxes (C_BACK, H)

    parts = [rs * (1.0 / W) + rm]                                # bin=16 -> (C_BACK, 16)
    for b in BINS[1:]:
        g = H // b                                               # rows per group
        cols = []
        for j in range(b):
            gs = jnp.sum(rs[:, j * g:(j + 1) * g], axis=-1, keepdims=True)
            gm = jnp.max(rm[:, j * g:(j + 1) * g], axis=-1, keepdims=True)
            cols.append(gs * (1.0 / (g * W)) + gm)               # mean + max
        parts.append(jnp.concatenate(cols, axis=-1))
    feat = jnp.concatenate(parts, axis=-1)                       # (C_BACK, P)

    # ---- SeparateFCs: e1[f,p] = sum_c fc1[p,c,f] * feat[c,p] -----------------
    e1 = jnp.sum(fc1_ref[...] * feat[None, :, :], axis=1)        # (C_FC, P)
    e1_ref[...] = e1

    # ---- SeparateBNNecks: folded eval BN1d + L2 norm + per-part classifier ---
    xbn = e1 * bnsc_ref[...] + bnsh_ref[...]
    ssq = jnp.sum(xbn * xbn, axis=0, keepdims=True)              # (1, P)
    featn = xbn * jax.lax.rsqrt(jnp.maximum(ssq, L2_EPS * L2_EPS))
    # logits[k,p] = sum_f featn[f,p] * fc2n[p,f,k]
    logit_ref[...] = jnp.sum(fc2_ref[...] * featn[None, :, :], axis=1)


def fused_forward(sils, conv_w2, conv_b, fc1_t, bn_scale, bn_shift, fc2n_t):
    """sils [N,S,H,W] -> (embed_1 [N,C_FC,P], logits [N,CLASS_NUM,P])."""
    return pl.pallas_call(
        _fused_kernel,
        out_shape=(jax.ShapeDtypeStruct((N, C_FC, P), jnp.float32),
                   jax.ShapeDtypeStruct((N, CLASS_NUM, P), jnp.float32)),
        grid_spec=pltpu.PrefetchScalarGridSpec(
            num_scalar_prefetch=0,
            grid=(N,),
            in_specs=[
                pl.BlockSpec((None, S, H, W), lambda i: (i, 0, 0, 0)),
                pl.BlockSpec(memory_space=pltpu.MemorySpace.SMEM),   # conv w
                pl.BlockSpec(memory_space=pltpu.MemorySpace.SMEM),   # conv b
                pl.BlockSpec((C_FC, C_BACK, P), lambda i: (0, 0, 0)),
                pl.BlockSpec((C_FC, P), lambda i: (0, 0)),
                pl.BlockSpec((C_FC, P), lambda i: (0, 0)),
                pl.BlockSpec((CLASS_NUM, C_FC, P), lambda i: (0, 0, 0)),
            ],
            out_specs=(
                pl.BlockSpec((None, C_FC, P), lambda i: (i, 0, 0)),
                pl.BlockSpec((None, CLASS_NUM, P), lambda i: (i, 0, 0)),
            ),
            scratch_shapes=[
                pltpu.VMEM((S, HP, WP), jnp.float32),     # padded frames
                pltpu.VMEM((C_BACK, H, W), jnp.float32),  # temporal running max
            ],
        ),
        compiler_params=pltpu.CompilerParams(dimension_semantics=("parallel",)),
    )(sils, conv_w2, conv_b, fc1_t, bn_scale, bn_shift, fc2n_t)


# --------------------------- parameter init (glue) ---------------------------
def _xavier_uniform(key, shape, fan_in, fan_out):
    bound = (6.0 / (fan_in + fan_out)) ** 0.5
    return jax.random.uniform(key, shape, jnp.float32, -bound, bound)


def init_params(key):
    k1, k2, k3, k4 = jax.random.split(key, 4)
    # stand-in backbone: Conv2d(1, C_BACK, 3, padding=1), xavier, bias=0
    conv_w = _xavier_uniform(k1, (C_BACK, C_IN, 3, 3),
                             fan_in=C_IN * 9, fan_out=C_BACK * 9)
    conv_b = jnp.zeros((C_BACK,), jnp.float32)
    # SeparateFCs.fc_bin: [P, C_BACK, C_FC], xavier_uniform
    fc1 = _xavier_uniform(k2, (P, C_BACK, C_FC),
                          fan_in=C_BACK * C_FC, fan_out=P * C_FC)
    # SeparateBNNecks.fc_bin: [P, C_FC, CLASS_NUM], xavier_uniform
    fc2 = _xavier_uniform(k3, (P, C_FC, CLASS_NUM),
                          fan_in=C_FC * CLASS_NUM, fan_out=P * CLASS_NUM)
    # BatchNorm1d(C_FC * P): weight ~ N(1, 0.02), bias=0, running stats (0, 1)
    bn_gamma = 1.0 + 0.02 * jax.random.normal(k4, (C_FC * P,), jnp.float32)
    bn_beta = jnp.zeros((C_FC * P,), jnp.float32)
    bn_rmean = jnp.zeros((C_FC * P,), jnp.float32)
    bn_rvar = jnp.ones((C_FC * P,), jnp.float32)
    return dict(conv_w=conv_w, conv_b=conv_b, fc1=fc1, fc2=fc2,
                bn_gamma=bn_gamma, bn_beta=bn_beta,
                bn_rmean=bn_rmean, bn_rvar=bn_rvar)


def prepare_inference_params(params):
    """One-time constant folding of all per-call parameter transforms."""
    # Fold eval-mode BN1d; BN feature index = f*P + p (matches x.view(n, -1)).
    scale = params['bn_gamma'] / jnp.sqrt(params['bn_rvar'] + BN_EPS)
    shift = params['bn_beta'] - params['bn_rmean'] * scale
    # F.normalize(fc_bin, dim=1) (over in_channels) for the BNNeck classifier.
    fc2 = params['fc2']                                       # (P, C_FC, CLASS)
    fc2n = fc2 / jnp.maximum(
        jnp.sqrt(jnp.sum(fc2 * fc2, axis=1, keepdims=True)), L2_EPS)
    return dict(
        conv_w2=params['conv_w'].reshape(C_BACK, 9),
        conv_b=params['conv_b'],
        fc1_t=jnp.transpose(params['fc1'], (2, 1, 0)),        # (C_FC, C_BACK, P)
        bn_scale=scale.reshape(C_FC, P),
        bn_shift=shift.reshape(C_FC, P),
        fc2n_t=jnp.transpose(fc2n, (2, 1, 0)),                # (CLASS, C_FC, P)
    )


# ------------------------------ forward (glue) -------------------------------
def baseline_demo_forward(sils, labs, prep):
    """Mirrors BaselineDemo.forward with seqL=None (fixed sampler / inference)."""
    n, s, h, w = sils.shape
    embed_1, logits = fused_forward(
        sils, prep['conv_w2'], prep['conv_b'], prep['fc1_t'],
        prep['bn_scale'], prep['bn_shift'], prep['fc2n_t'])
    embed = logits                      # as in the reference module: embed = logits

    retval = {
        'training_feat': {
            'triplet': {'embeddings': embed_1, 'labels': labs},
            'softmax': {'logits': logits, 'labels': labs},
        },
        'visual_summary': {'image/sils': sils.reshape(n * s, 1, h, w)},
        'inference_feat': {'embeddings': embed},
    }
    return retval, embed


if __name__ == "__main__":
    key = jax.random.PRNGKey(0)
    kx, kp = jax.random.split(key)
    sils = jax.random.uniform(kx, (N, S, H, W), jnp.float32)   # silhouettes in [0, 1]
    labs = jnp.array([0, 1], dtype=jnp.int32)
    params = init_params(kp)
    prep = prepare_inference_params(params)   # hoisted out of the forward path

    fwd = jax.jit(baseline_demo_forward)
    retval, embed = fwd(sils, labs, prep)
    jax.block_until_ready(embed)

    assert embed.shape == (N, CLASS_NUM, P)
    assert retval['training_feat']['triplet']['embeddings'].shape == (N, C_FC, P)
    assert retval['training_feat']['softmax']['logits'].shape == (N, CLASS_NUM, P)
    assert retval['visual_summary']['image/sils'].shape == (N * S, 1, H, W)
    assert bool(jnp.all(jnp.isfinite(embed)))
    assert bool(jnp.all(jnp.isfinite(retval['training_feat']['triplet']['embeddings'])))
    print("KERNEL_OK")
</pallas_src>

<mosaic_0001>
module attributes {stable_mosaic.version = 11 : i64} {
  func.func @_fused_kernel(%arg0: i32, %arg1: memref<1x8x16x16xf32, #tpu.memory_space<vmem>>, %arg2: memref<8x9xf32, #tpu.memory_space<smem>>, %arg3: memref<8xf32, #tpu.memory_space<smem>>, %arg4: memref<16x8x31xf32, #tpu.memory_space<vmem>>, %arg5: memref<16x31xf32, #tpu.memory_space<vmem>>, %arg6: memref<16x31xf32, #tpu.memory_space<vmem>>, %arg7: memref<32x16x31xf32, #tpu.memory_space<vmem>>, %arg8: memref<1x16x31xf32, #tpu.memory_space<vmem>>, %arg9: memref<1x32x31xf32, #tpu.memory_space<vmem>>, %arg10: memref<8x18x18xf32, #tpu.memory_space<vmem>>, %arg11: memref<8x16x16xf32, #tpu.memory_space<vmem>>) attributes {dimension_semantics = [#tpu.dimension_semantics<parallel>], iteration_bounds = array<i64: 2>, scalar_prefetch = 0 : i64, scratch_operands = 2 : i64, tpu.core_type = #tpu.core_type<tc>, window_params = [{transform_indices = @transform_0, window_bounds = array<i64: 1, 8, 16, 16>}, {transform_indices = @transform_1, window_bounds = array<i64: 8, 9>}, {transform_indices = @transform_2, window_bounds = array<i64: 8>}, {pipeline_mode = #tpu.pipeline_mode<synchronous>, transform_indices = @transform_3, window_bounds = array<i64: 16, 8, 31>}, {pipeline_mode = #tpu.pipeline_mode<synchronous>, transform_indices = @transform_4, window_bounds = array<i64: 16, 31>}, {pipeline_mode = #tpu.pipeline_mode<synchronous>, transform_indices = @transform_5, window_bounds = array<i64: 16, 31>}, {pipeline_mode = #tpu.pipeline_mode<synchronous>, transform_indices = @transform_6, window_bounds = array<i64: 32, 16, 31>}, {transform_indices = @transform_7, window_bounds = array<i64: 1, 16, 31>}, {transform_indices = @transform_8, window_bounds = array<i64: 1, 32, 31>}]} {
    %c0 = arith.constant 0 : index
    %c0_0 = arith.constant 0 : index
    %c0_1 = arith.constant 0 : index
    %c0_2 = arith.constant 0 : index
    %0 = vector.load %arg1[%c0, %c0_0, %c0_1, %c0_2] : memref<1x8x16x16xf32, #tpu.memory_space<vmem>>, vector<1x8x16x16xf32>
    %1 = vector.shape_cast %0 : vector<1x8x16x16xf32> to vector<8x16x16xf32>
    %cst = arith.constant 0.000000e+00 : f32
    %2 = vector.broadcast %cst : f32 to vector<8x16x1xf32>
    %cst_3 = arith.constant 0.000000e+00 : f32
    %3 = vector.broadcast %cst_3 : f32 to vector<8x1x18xf32>
    %4 = tpu.concatenate %2, %1, %2 in 2 : vector<8x16x1xf32>, vector<8x16x16xf32>, vector<8x16x1xf32> -> vector<8x16x18xf32>
    %5 = tpu.concatenate %3, %4, %3 in 1 : vector<8x1x18xf32>, vector<8x16x18xf32>, vector<8x1x18xf32> -> vector<8x18x18xf32>
    %c0_4 = arith.constant 0 : index
    %c0_5 = arith.constant 0 : index
    %c0_6 = arith.constant 0 : index
    %6 = vector.load %arg10[%c0_4, %c0_5, %c0_6] : memref<8x18x18xf32, #tpu.memory_space<vmem>>, vector<8x18x18xf32>
    tpu.vector_store %arg10[%c0_4, %c0_5, %c0_6], %5 {strides = array<i32>} : memref<8x18x18xf32, #tpu.memory_space<vmem>>, vector<8x18x18xf32>,
    %cst_7 = arith.constant 0.000000e+00 : f32
    %7 = vector.broadcast %cst_7 : f32 to vector<8x16x16xf32>
    %c0_8 = arith.constant 0 : index
    %c0_9 = arith.constant 0 : index
    %c0_10 = arith.constant 0 : index
    %8 = vector.load %arg11[%c0_8, %c0_9, %c0_10] : memref<8x16x16xf32, #tpu.memory_space<vmem>>, vector<8x16x16xf32>
    tpu.vector_store %arg11[%c0_8, %c0_9, %c0_10], %7 {strides = array<i32>} : memref<8x16x16xf32, #tpu.memory_space<vmem>>, vector<8x16x16xf32>,
    %c0_i32 = arith.constant 0 : i32
    %c8_i32 = arith.constant 8 : i32
    %9 = arith.addi %c0_i32, %c8_i32 : i32
    %c1_i32 = arith.constant 1 : i32
    scf.for %arg12 = %c0_i32 to %9 step %c1_i32  : i32 {
      %c1_i32_83 = arith.constant 1 : i32
      %181 = arith.muli %arg12, %c1_i32_83 : i32
      %c0_i32_84 = arith.constant 0 : i32
      %182 = arith.addi %c0_i32_84, %181 : i32
      %183 = arith.index_cast %182 : i32 to index
      %c0_85 = arith.constant 0 : index
      %c0_86 = arith.constant 0 : index
      %184 = vector.load %arg10[%183, %c0_85, %c0_86] : memref<8x18x18xf32, #tpu.memory_space<vmem>>, vector<1x18x18xf32>
      %185 = vector.shape_cast %184 : vector<1x18x18xf32> to vector<18x18xf32>
      %186 = vector.extract_strided_slice %185 {offsets = [0, 0], sizes = [16, 16], strides = [1, 1]} : vector<18x18xf32> to vector<16x16xf32>
      %187 = vector.extract_strided_slice %185 {offsets = [0, 1], sizes = [16, 16], strides = [1, 1]} : vector<18x18xf32> to vector<16x16xf32>
      %188 = vector.extract_strided_slice %185 {offsets = [0, 2], sizes = [16, 16], strides = [1, 1]} : vector<18x18xf32> to vector<16x16xf32>
      %189 = vector.extract_strided_slice %185 {offsets = [1, 0], sizes = [16, 16], strides = [1, 1]} : vector<18x18xf32> to vector<16x16xf32>
      %190 = vector.extract_strided_slice %185 {offsets = [1, 1], sizes = [16, 16], strides = [1, 1]} : vector<18x18xf32> to vector<16x16xf32>
      %191 = vector.extract_strided_slice %185 {offsets = [1, 2], sizes = [16, 16], strides = [1, 1]} : vector<18x18xf32> to vector<16x16xf32>
      %192 = vector.extract_strided_slice %185 {offsets = [2, 0], sizes = [16, 16], strides = [1, 1]} : vector<18x18xf32> to vector<16x16xf32>
      %193 = vector.extract_strided_slice %185 {offsets = [2, 1], sizes = [16, 16], strides = [1, 1]} : vector<18x18xf32> to vector<16x16xf32>
      %194 = vector.extract_strided_slice %185 {offsets = [2, 2], sizes = [16, 16], strides = [1, 1]} : vector<18x18xf32> to vector<16x16xf32>
      %c0_87 = arith.constant 0 : index
      %c0_88 = arith.constant 0 : index
      %195 = memref.load %arg2[%c0_87, %c0_88] : memref<8x9xf32, #tpu.memory_space<smem>>
      %196 = vector.broadcast %195 : f32 to vector<16x16xf32>
      %197 = arith.mulf %186, %196 : vector<16x16xf32>
      %c0_89 = arith.constant 0 : index
      %c1 = arith.constant 1 : index
      %198 = memref.load %arg2[%c0_89, %c1] : memref<8x9xf32, #tpu.memory_space<smem>>
      %199 = vector.broadcast %198 : f32 to vector<16x16xf32>
      %200 = arith.mulf %187, %199 : vector<16x16xf32>
      %201 = arith.addf %197, %200 : vector<16x16xf32>
      %c0_90 = arith.constant 0 : index
      %c2 = arith.constant 2 : index
      %202 = memref.load %arg2[%c0_90, %c2] : memref<8x9xf32, #tpu.memory_space<smem>>
      %203 = vector.broadcast %202 : f32 to vector<16x16xf32>
      %204 = arith.mulf %188, %203 : vector<16x16xf32>
      %205 = arith.addf %201, %204 : vector<16x16xf32>
      %c0_91 = arith.constant 0 : index
      %c3 = arith.constant 3 : index
      %206 = memref.load %arg2[%c0_91, %c3] : memref<8x9xf32, #tpu.memory_space<smem>>
      %207 = vector.broadcast %206 : f32 to vector<16x16xf32>
      %208 = arith.mulf %189, %207 : vector<16x16xf32>
      %209 = arith.addf %205, %208 : vector<16x16xf32>
      %c0_92 = arith.constant 0 : index
      %c4 = arith.constant 4 : index
      %210 = memref.load %arg2[%c0_92, %c4] : memref<8x9xf32, #tpu.memory_space<smem>>
      %211 = vector.broadcast %210 : f32 to vector<16x16xf32>
      %212 = arith.mulf %190, %211 : vector<16x16xf32>
      %213 = arith.addf %209, %212 : vector<16x16xf32>
      %c0_93 = arith.constant 0 : index
      %c5 = arith.constant 5 : index
      %214 = memref.load %arg2[%c0_93, %c5] : memref<8x9xf32, #tpu.memory_space<smem>>
      %215 = vector.broadcast %214 : f32 to vector<16x16xf32>
      %216 = arith.mulf %191, %215 : vector<16x16xf32>
      %217 = arith.addf %213, %216 : vector<16x16xf32>
      %c0_94 = arith.constant 0 : index
      %c6 = arith.constant 6 : index
      %218 = memref.load %arg2[%c0_94, %c6] : memref<8x9xf32, #tpu.memory_space<smem>>
      %219 = vector.broadcast %218 : f32 to vector<16x16xf32>
      %220 = arith.mulf %192, %219 : vector<16x16xf32>
      %221 = arith.addf %217, %220 : vector<16x16xf32>
      %c0_95 = arith.constant 0 : index
      %c7 = arith.constant 7 : index
      %222 = memref.load %arg2[%c0_95, %c7] : memref<8x9xf32, #tpu.memory_space<smem>>
      %223 = vector.broadcast %222 : f32 to vector<16x16xf32>
      %224 = arith.mulf %193, %223 : vector<16x16xf32>
      %225 = arith.addf %221, %224 : vector<16x16xf32>
      %c0_96 = arith.constant 0 : index
      %c8 = arith.constant 8 : index
      %226 = memref.load %arg2[%c0_96, %c8] : memref<8x9xf32, #tpu.memory_space<smem>>
      %227 = vector.broadcast %226 : f32 to vector<16x16xf32>
      %228 = arith.mulf %194, %227 : vector<16x16xf32>
      %229 = arith.addf %225, %228 : vector<16x16xf32>
      %c0_97 = arith.constant 0 : index
      %230 = memref.load %arg3[%c0_97] : memref<8xf32, #tpu.memory_space<smem>>
      %231 = vector.broadcast %230 : f32 to vector<16x16xf32>
      %232 = arith.addf %229, %231 : vector<16x16xf32>
      %cst_98 = arith.constant 0.000000e+00 : f32
      %233 = vector.broadcast %cst_98 : f32 to vector<16x16xf32>
      %234 = arith.maximumf %232, %233 : vector<16x16xf32>
      %c0_99 = arith.constant 0 : index
      %c0_100 = arith.constant 0 : index
      %c0_101 = arith.constant 0 : index
      %235 = vector.load %arg11[%c0_99, %c0_100, %c0_101] : memref<8x16x16xf32, #tpu.memory_space<vmem>>, vector<1x16x16xf32>
      %236 = vector.shape_cast %235 : vector<1x16x16xf32> to vector<16x16xf32>
      %237 = arith.maximumf %236, %234 : vector<16x16xf32>
      %c0_102 = arith.constant 0 : index
      %c0_103 = arith.constant 0 : index
      %c0_104 = arith.constant 0 : index
      %238 = vector.load %arg11[%c0_102, %c0_103, %c0_104] : memref<8x16x16xf32, #tpu.memory_space<vmem>>, vector<1x16x16xf32>
      %239 = vector.shape_cast %238 : vector<1x16x16xf32> to vector<16x16xf32>
      %240 = vector.shape_cast %237 : vector<16x16xf32> to vector<1x16x16xf32>
      tpu.vector_store %arg11[%c0_102, %c0_103, %c0_104], %240 {strides = array<i32>} : memref<8x16x16xf32, #tpu.memory_space<vmem>>, vector<1x16x16xf32>,
      %c1_105 = arith.constant 1 : index
      %c0_106 = arith.constant 0 : index
      %241 = memref.load %arg2[%c1_105, %c0_106] : memref<8x9xf32, #tpu.memory_space<smem>>
      %242 = vector.broadcast %241 : f32 to vector<16x16xf32>
      %243 = arith.mulf %186, %242 : vector<16x16xf32>
      %c1_107 = arith.constant 1 : index
      %c1_108 = arith.constant 1 : index
      %244 = memref.load %arg2[%c1_107, %c1_108] : memref<8x9xf32, #tpu.memory_space<smem>>
      %245 = vector.broadcast %244 : f32 to vector<16x16xf32>
      %246 = arith.mulf %187, %245 : vector<16x16xf32>
      %247 = arith.addf %243, %246 : vector<16x16xf32>
      %c1_109 = arith.constant 1 : index
      %c2_110 = arith.constant 2 : index
      %248 = memref.load %arg2[%c1_109, %c2_110] : memref<8x9xf32, #tpu.memory_space<smem>>
      %249 = vector.broadcast %248 : f32 to vector<16x16xf32>
      %250 = arith.mulf %188, %249 : vector<16x16xf32>
      %251 = arith.addf %247, %250 : vector<16x16xf32>
      %c1_111 = arith.constant 1 : index
      %c3_112 = arith.constant 3 : index
      %252 = memref.load %arg2[%c1_111, %c3_112] : memref<8x9xf32, #tpu.memory_space<smem>>
      %253 = vector.broadcast %252 : f32 to vector<16x16xf32>
      %254 = arith.mulf %189, %253 : vector<16x16xf32>
      %255 = arith.addf %251, %254 : vector<16x16xf32>
      %c1_113 = arith.constant 1 : index
      %c4_114 = arith.constant 4 : index
      %256 = memref.load %arg2[%c1_113, %c4_114] : memref<8x9xf32, #tpu.memory_space<smem>>
      %257 = vector.broadcast %256 : f32 to vector<16x16xf32>
      %258 = arith.mulf %190, %257 : vector<16x16xf32>
      %259 = arith.addf %255, %258 : vector<16x16xf32>
      %c1_115 = arith.constant 1 : index
      %c5_116 = arith.constant 5 : index
      %260 = memref.load %arg2[%c1_115, %c5_116] : memref<8x9xf32, #tpu.memory_space<smem>>
      %261 = vector.broadcast %260 : f32 to vector<16x16xf32>
      %262 = arith.mulf %191, %261 : vector<16x16xf32>
      %263 = arith.addf %259, %262 : vector<16x16xf32>
      %c1_117 = arith.constant 1 : index
      %c6_118 = arith.constant 6 : index
      %264 = memref.load %arg2[%c1_117, %c6_118] : memref<8x9xf32, #tpu.memory_space<smem>>
      %265 = vector.broadcast %264 : f32 to vector<16x16xf32>
      %266 = arith.mulf %192, %265 : vector<16x16xf32>
      %267 = arith.addf %263, %266 : vector<16x16xf32>
      %c1_119 = arith.constant 1 : index
      %c7_120 = arith.constant 7 : index
      %268 = memref.load %arg2[%c1_119, %c7_120] : memref<8x9xf32, #tpu.memory_space<smem>>
      %269 = vector.broadcast %268 : f32 to vector<16x16xf32>
      %270 = arith.mulf %193, %269 : vector<16x16xf32>
      %271 = arith.addf %267, %270 : vector<16x16xf32>
      %c1_121 = arith.constant 1 : index
      %c8_122 = arith.constant 8 : index
      %272 = memref.load %arg2[%c1_121, %c8_122] : memref<8x9xf32, #tpu.memory_space<smem>>
      %273 = vector.broadcast %272 : f32 to vector<16x16xf32>
      %274 = arith.mulf %194, %273 : vector<16x16xf32>
      %275 = arith.addf %271, %274 : vector<16x16xf32>
      %c1_123 = arith.constant 1 : index
      %276 = memref.load %arg3[%c1_123] : memref<8xf32, #tpu.memory_space<smem>>
      %277 = vector.broadcast %276 : f32 to vector<16x16xf32>
      %278 = arith.addf %275, %277 : vector<16x16xf32>
      %cst_124 = arith.constant 0.000000e+00 : f32
      %279 = vector.broadcast %cst_124 : f32 to vector<16x16xf32>
      %280 = arith.maximumf %278, %279 : vector<16x16xf32>
      %c1_125 = arith.constant 1 : index
      %c0_126 = arith.constant 0 : index
      %c0_127 = arith.constant 0 : index
      %281 = vector.load %arg11[%c1_125, %c0_126, %c0_127] : memref<8x16x16xf32, #tpu.memory_space<vmem>>, vector<1x16x16xf32>
      %282 = vector.shape_cast %281 : vector<1x16x16xf32> to vector<16x16xf32>
      %283 = arith.maximumf %282, %280 : vector<16x16xf32>
      %c1_128 = arith.constant 1 : index
      %c0_129 = arith.constant 0 : index
      %c0_130 = arith.constant 0 : index
      %284 = vector.load %arg11[%c1_128, %c0_129, %c0_130] : memref<8x16x16xf32, #tpu.memory_space<vmem>>, vector<1x16x16xf32>
      %285 = vector.shape_cast %284 : vector<1x16x16xf32> to vector<16x16xf32>
      %286 = vector.shape_cast %283 : vector<16x16xf32> to vector<1x16x16xf32>
      tpu.vector_store %arg11[%c1_128, %c0_129, %c0_130], %286 {strides = array<i32>} : memref<8x16x16xf32, #tpu.memory_space<vmem>>, vector<1x16x16xf32>,
      %c2_131 = arith.constant 2 : index
      %c0_132 = arith.constant 0 : index
      %287 = memref.load %arg2[%c2_131, %c0_132] : memref<8x9xf32, #tpu.memory_space<smem>>
      %288 = vector.broadcast %287 : f32 to vector<16x16xf32>
      %289 = arith.mulf %186, %288 : vector<16x16xf32>
      %c2_133 = arith.constant 2 : index
      %c1_134 = arith.constant 1 : index
      %290 = memref.load %arg2[%c2_133, %c1_134] : memref<8x9xf32, #tpu.memory_space<smem>>
      %291 = vector.broadcast %290 : f32 to vector<16x16xf32>
      %292 = arith.mulf %187, %291 : vector<16x16xf32>
      %293 = arith.addf %289, %292 : vector<16x16xf32>
      %c2_135 = arith.constant 2 : index
      %c2_136 = arith.constant 2 : index
      %294 = memref.load %arg2[%c2_135, %c2_136] : memref<8x9xf32, #tpu.memory_space<smem>>
      %295 = vector.broadcast %294 : f32 to vector<16x16xf32>
      %296 = arith.mulf %188, %295 : vector<16x16xf32>
      %297 = arith.addf %293, %296 : vector<16x16xf32>
      %c2_137 = arith.constant 2 : index
      %c3_138 = arith.constant 3 : index
      %298 = memref.load %arg2[%c2_137, %c3_138] : memref<8x9xf32, #tpu.memory_space<smem>>
      %299 = vector.broadcast %298 : f32 to vector<16x16xf32>
      %300 = arith.mulf %189, %299 : vector<16x16xf32>
      %301 = arith.addf %297, %300 : vector<16x16xf32>
      %c2_139 = arith.constant 2 : index
      %c4_140 = arith.constant 4 : index
      %302 = memref.load %arg2[%c2_139, %c4_140] : memref<8x9xf32, #tpu.memory_space<smem>>
      %303 = vector.broadcast %302 : f32 to vector<16x16xf32>
      %304 = arith.mulf %190, %303 : vector<16x16xf32>
      %305 = arith.addf %301, %304 : vector<16x16xf32>
      %c2_141 = arith.constant 2 : index
      %c5_142 = arith.constant 5 : index
      %306 = memref.load %arg2[%c2_141, %c5_142] : memref<8x9xf32, #tpu.memory_space<smem>>
      %307 = vector.broadcast %306 : f32 to vector<16x16xf32>
      %308 = arith.mulf %191, %307 : vector<16x16xf32>
      %309 = arith.addf %305, %308 : vector<16x16xf32>
      %c2_143 = arith.constant 2 : index
      %c6_144 = arith.constant 6 : index
      %310 = memref.load %arg2[%c2_143, %c6_144] : memref<8x9xf32, #tpu.memory_space<smem>>
      %311 = vector.broadcast %310 : f32 to vector<16x16xf32>
      %312 = arith.mulf %192, %311 : vector<16x16xf32>
      %313 = arith.addf %309, %312 : vector<16x16xf32>
      %c2_145 = arith.constant 2 : index
      %c7_146 = arith.constant 7 : index
      %314 = memref.load %arg2[%c2_145, %c7_146] : memref<8x9xf32, #tpu.memory_space<smem>>
      %315 = vector.broadcast %314 : f32 to vector<16x16xf32>
      %316 = arith.mulf %193, %315 : vector<16x16xf32>
      %317 = arith.addf %313, %316 : vector<16x16xf32>
      %c2_147 = arith.constant 2 : index
      %c8_148 = arith.constant 8 : index
      %318 = memref.load %arg2[%c2_147, %c8_148] : memref<8x9xf32, #tpu.memory_space<smem>>
      %319 = vector.broadcast %318 : f32 to vector<16x16xf32>
      %320 = arith.mulf %194, %319 : vector<16x16xf32>
      %321 = arith.addf %317, %320 : vector<16x16xf32>
      %c2_149 = arith.constant 2 : index
      %322 = memref.load %arg3[%c2_149] : memref<8xf32, #tpu.memory_space<smem>>
      %323 = vector.broadcast %322 : f32 to vector<16x16xf32>
      %324 = arith.addf %321, %323 : vector<16x16xf32>
      %cst_150 = arith.constant 0.000000e+00 : f32
      %325 = vector.broadcast %cst_150 : f32 to vector<16x16xf32>
      %326 = arith.maximumf %324, %325 : vector<16x16xf32>
      %c2_151 = arith.constant 2 : index
      %c0_152 = arith.constant 0 : index
      %c0_153 = arith.constant 0 : index
      %327 = vector.load %arg11[%c2_151, %c0_152, %c0_153] : memref<8x16x16xf32, #tpu.memory_space<vmem>>, vector<1x16x16xf32>
      %328 = vector.shape_cast %327 : vector<1x16x16xf32> to vector<16x16xf32>
      %329 = arith.maximumf %328, %326 : vector<16x16xf32>
      %c2_154 = arith.constant 2 : index
      %c0_155 = arith.constant 0 : index
      %c0_156 = arith.constant 0 : index
      %330 = vector.load %arg11[%c2_154, %c0_155, %c0_156] : memref<8x16x16xf32, #tpu.memory_space<vmem>>, vector<1x16x16xf32>
      %331 = vector.shape_cast %330 : vector<1x16x16xf32> to vector<16x16xf32>
      %332 = vector.shape_cast %329 : vector<16x16xf32> to vector<1x16x16xf32>
      tpu.vector_store %arg11[%c2_154, %c0_155, %c0_156], %332 {strides = array<i32>} : memref<8x16x16xf32, #tpu.memory_space<vmem>>, vector<1x16x16xf32>,
      %c3_157 = arith.constant 3 : index
      %c0_158 = arith.constant 0 : index
      %333 = memref.load %arg2[%c3_157, %c0_158] : memref<8x9xf32, #tpu.memory_space<smem>>
      %334 = vector.broadcast %333 : f32 to vector<16x16xf32>
      %335 = arith.mulf %186, %334 : vector<16x16xf32>
      %c3_159 = arith.constant 3 : index
      %c1_160 = arith.constant 1 : index
      %336 = memref.load %arg2[%c3_159, %c1_160] : memref<8x9xf32, #tpu.memory_space<smem>>
      %337 = vector.broadcast %336 : f32 to vector<16x16xf32>
      %338 = arith.mulf %187, %337 : vector<16x16xf32>
      %339 = arith.addf %335, %338 : vector<16x16xf32>
      %c3_161 = arith.constant 3 : index
      %c2_162 = arith.constant 2 : index
      %340 = memref.load %arg2[%c3_161, %c2_162] : memref<8x9xf32, #tpu.memory_space<smem>>
      %341 = vector.broadcast %340 : f32 to vector<16x16xf32>
      %342 = arith.mulf %188, %341 : vector<16x16xf32>
      %343 = arith.addf %339, %342 : vector<16x16xf32>
      %c3_163 = arith.constant 3 : index
      %c3_164 = arith.constant 3 : index
      %344 = memref.load %arg2[%c3_163, %c3_164] : memref<8x9xf32, #tpu.memory_space<smem>>
      %345 = vector.broadcast %344 : f32 to vector<16x16xf32>
      %346 = arith.mulf %189, %345 : vector<16x16xf32>
      %347 = arith.addf %343, %346 : vector<16x16xf32>
      %c3_165 = arith.constant 3 : index
      %c4_166 = arith.constant 4 : index
      %348 = memref.load %arg2[%c3_165, %c4_166] : memref<8x9xf32, #tpu.memory_space<smem>>
      %349 = vector.broadcast %348 : f32 to vector<16x16xf32>
      %350 = arith.mulf %190, %349 : vector<16x16xf32>
      %351 = arith.addf %347, %350 : vector<16x16xf32>
      %c3_167 = arith.constant 3 : index
      %c5_168 = arith.constant 5 : index
      %352 = memref.load %arg2[%c3_167, %c5_168] : memref<8x9xf32, #tpu.memory_space<smem>>
      %353 = vector.broadcast %352 : f32 to vector<16x16xf32>
      %354 = arith.mulf %191, %353 : vector<16x16xf32>
      %355 = arith.addf %351, %354 : vector<16x16xf32>
      %c3_169 = arith.constant 3 : index
      %c6_170 = arith.constant 6 : index
      %356 = memref.load %arg2[%c3_169, %c6_170] : memref<8x9xf32, #tpu.memory_space<smem>>
      %357 = vector.broadcast %356 : f32 to vector<16x16xf32>
      %358 = arith.mulf %192, %357 : vector<16x16xf32>
      %359 = arith.addf %355, %358 : vector<16x16xf32>
      %c3_171 = arith.constant 3 : index
      %c7_172 = arith.constant 7 : index
      %360 = memref.load %arg2[%c3_171, %c7_172] : memref<8x9xf32, #tpu.memory_space<smem>>
      %361 = vector.broadcast %360 : f32 to vector<16x16xf32>
      %362 = arith.mulf %193, %361 : vector<16x16xf32>
      %363 = arith.addf %359, %362 : vector<16x16xf32>
      %c3_173 = arith.constant 3 : index
      %c8_174 = arith.constant 8 : index
      %364 = memref.load %arg2[%c3_173, %c8_174] : memref<8x9xf32, #tpu.memory_space<smem>>
      %365 = vector.broadcast %364 : f32 to vector<16x16xf32>
      %366 = arith.mulf %194, %365 : vector<16x16xf32>
      %367 = arith.addf %363, %366 : vector<16x16xf32>
      %c3_175 = arith.constant 3 : index
      %368 = memref.load %arg3[%c3_175] : memref<8xf32, #tpu.memory_space<smem>>
      %369 = vector.broadcast %368 : f32 to vector<16x16xf32>
      %370 = arith.addf %367, %369 : vector<16x16xf32>
      %cst_176 = arith.constant 0.000000e+00 : f32
      %371 = vector.broadcast %cst_176 : f32 to vector<16x16xf32>
      %372 = arith.maximumf %370, %371 : vector<16x16xf32>
      %c3_177 = arith.constant 3 : index
      %c0_178 = arith.constant 0 : index
      %c0_179 = arith.constant 0 : index
      %373 = vector.load %arg11[%c3_177, %c0_178, %c0_179] : memref<8x16x16xf32, #tpu.memory_space<vmem>>, vector<1x16x16xf32>
      %374 = vector.shape_cast %373 : vector<1x16x16xf32> to vector<16x16xf32>
      %375 = arith.maximumf %374, %372 : vector<16x16xf32>
      %c3_180 = arith.constant 3 : index
      %c0_181 = arith.constant 0 : index
      %c0_182 = arith.constant 0 : index
      %376 = vector.load %arg11[%c3_180, %c0_181, %c0_182] : memref<8x16x16xf32, #tpu.memory_space<vmem>>, vector<1x16x16xf32>
      %377 = vector.shape_cast %376 : vector<1x16x16xf32> to vector<16x16xf32>
      %378 = vector.shape_cast %375 : vector<16x16xf32> to vector<1x16x16xf32>
      tpu.vector_store %arg11[%c3_180, %c0_181, %c0_182], %378 {strides = array<i32>} : memref<8x16x16xf32, #tpu.memory_space<vmem>>, vector<1x16x16xf32>,
      %c4_183 = arith.constant 4 : index
      %c0_184 = arith.constant 0 : index
      %379 = memref.load %arg2[%c4_183, %c0_184] : memref<8x9xf32, #tpu.memory_space<smem>>
      %380 = vector.broadcast %379 : f32 to vector<16x16xf32>
      %381 = arith.mulf %186, %380 : vector<16x16xf32>
      %c4_185 = arith.constant 4 : index
      %c1_186 = arith.constant 1 : index
      %382 = memref.load %arg2[%c4_185, %c1_186] : memref<8x9xf32, #tpu.memory_space<smem>>
      %383 = vector.broadcast %382 : f32 to vector<16x16xf32>
      %384 = arith.mulf %187, %383 : vector<16x16xf32>
      %385 = arith.addf %381, %384 : vector<16x16xf32>
      %c4_187 = arith.constant 4 : index
      %c2_188 = arith.constant 2 : index
      %386 = memref.load %arg2[%c4_187, %c2_188] : memref<8x9xf32, #tpu.memory_space<smem>>
      %387 = vector.broadcast %386 : f32 to vector<16x16xf32>
      %388 = arith.mulf %188, %387 : vector<16x16xf32>
      %389 = arith.addf %385, %388 : vector<16x16xf32>
      %c4_189 = arith.constant 4 : index
      %c3_190 = arith.constant 3 : index
      %390 = memref.load %arg2[%c4_189, %c3_190] : memref<8x9xf32, #tpu.memory_space<smem>>
      %391 = vector.broadcast %390 : f32 to vector<16x16xf32>
      %392 = arith.mulf %189, %391 : vector<16x16xf32>
      %393 = arith.addf %389, %392 : vector<16x16xf32>
      %c4_191 = arith.constant 4 : index
      %c4_192 = arith.constant 4 : index
      %394 = memref.load %arg2[%c4_191, %c4_192] : memref<8x9xf32, #tpu.memory_space<smem>>
      %395 = vector.broadcast %394 : f32 to vector<16x16xf32>
      %396 = arith.mulf %190, %395 : vector<16x16xf32>
      %397 = arith.addf %393, %396 : vector<16x16xf32>
      %c4_193 = arith.constant 4 : index
      %c5_194 = arith.constant 5 : index
      %398 = memref.load %arg2[%c4_193, %c5_194] : memref<8x9xf32, #tpu.memory_space<smem>>
      %399 = vector.broadcast %398 : f32 to vector<16x16xf32>
      %400 = arith.mulf %191, %399 : vector<16x16xf32>
      %401 = arith.addf %397, %400 : vector<16x16xf32>
      %c4_195 = arith.constant 4 : index
      %c6_196 = arith.constant 6 : index
      %402 = memref.load %arg2[%c4_195, %c6_196] : memref<8x9xf32, #tpu.memory_space<smem>>
      %403 = vector.broadcast %402 : f32 to vector<16x16xf32>
      %404 = arith.mulf %192, %403 : vector<16x16xf32>
      %405 = arith.addf %401, %404 : vector<16x16xf32>
      %c4_197 = arith.constant 4 : index
      %c7_198 = arith.constant 7 : index
      %406 = memref.load %arg2[%c4_197, %c7_198] : memref<8x9xf32, #tpu.memory_space<smem>>
      %407 = vector.broadcast %406 : f32 to vector<16x16xf32>
      %408 = arith.mulf %193, %407 : vector<16x16xf32>
      %409 = arith.addf %405, %408 : vector<16x16xf32>
      %c4_199 = arith.constant 4 : index
      %c8_200 = arith.constant 8 : index
      %410 = memref.load %arg2[%c4_199, %c8_200] : memref<8x9xf32, #tpu.memory_space<smem>>
      %411 = vector.broadcast %410 : f32 to vector<16x16xf32>
      %412 = arith.mulf %194, %411 : vector<16x16xf32>
      %413 = arith.addf %409, %412 : vector<16x16xf32>
      %c4_201 = arith.constant 4 : index
      %414 = memref.load %arg3[%c4_201] : memref<8xf32, #tpu.memory_space<smem>>
      %415 = vector.broadcast %414 : f32 to vector<16x16xf32>
      %416 = arith.addf %413, %415 : vector<16x16xf32>
      %cst_202 = arith.constant 0.000000e+00 : f32
      %417 = vector.broadcast %cst_202 : f32 to vector<16x16xf32>
      %418 = arith.maximumf %416, %417 : vector<16x16xf32>
      %c4_203 = arith.constant 4 : index
      %c0_204 = arith.constant 0 : index
      %c0_205 = arith.constant 0 : index
      %419 = vector.load %arg11[%c4_203, %c0_204, %c0_205] : memref<8x16x16xf32, #tpu.memory_space<vmem>>, vector<1x16x16xf32>
      %420 = vector.shape_cast %419 : vector<1x16x16xf32> to vector<16x16xf32>
      %421 = arith.maximumf %420, %418 : vector<16x16xf32>
      %c4_206 = arith.constant 4 : index
      %c0_207 = arith.constant 0 : index
      %c0_208 = arith.constant 0 : index
      %422 = vector.load %arg11[%c4_206, %c0_207, %c0_208] : memref<8x16x16xf32, #tpu.memory_space<vmem>>, vector<1x16x16xf32>
      %423 = vector.shape_cast %422 : vector<1x16x16xf32> to vector<16x16xf32>
      %424 = vector.shape_cast %421 : vector<16x16xf32> to vector<1x16x16xf32>
      tpu.vector_store %arg11[%c4_206, %c0_207, %c0_208], %424 {strides = array<i32>} : memref<8x16x16xf32, #tpu.memory_space<vmem>>, vector<1x16x16xf32>,
      %c5_209 = arith.constant 5 : index
      %c0_210 = arith.constant 0 : index
      %425 = memref.load %arg2[%c5_209, %c0_210] : memref<8x9xf32, #tpu.memory_space<smem>>
      %426 = vector.broadcast %425 : f32 to vector<16x16xf32>
      %427 = arith.mulf %186, %426 : vector<16x16xf32>
      %c5_211 = arith.constant 5 : index
      %c1_212 = arith.constant 1 : index
      %428 = memref.load %arg2[%c5_211, %c1_212] : memref<8x9xf32, #tpu.memory_space<smem>>
      %429 = vector.broadcast %428 : f32 to vector<16x16xf32>
      %430 = arith.mulf %187, %429 : vector<16x16xf32>
      %431 = arith.addf %427, %430 : vector<16x16xf32>
      %c5_213 = arith.constant 5 : index
      %c2_214 = arith.constant 2 : index
      %432 = memref.load %arg2[%c5_213, %c2_214] : memref<8x9xf32, #tpu.memory_space<smem>>
      %433 = vector.broadcast %432 : f32 to vector<16x16xf32>
      %434 = arith.mulf %188, %433 : vector<16x16xf32>
      %435 = arith.addf %431, %434 : vector<16x16xf32>
      %c5_215 = arith.constant 5 : index
      %c3_216 = arith.constant 3 : index
      %436 = memref.load %arg2[%c5_215, %c3_216] : memref<8x9xf32, #tpu.memory_space<smem>>
      %437 = vector.broadcast %436 : f32 to vector<16x16xf32>
      %438 = arith.mulf %189, %437 : vector<16x16xf32>
      %439 = arith.addf %435, %438 : vector<16x16xf32>
      %c5_217 = arith.constant 5 : index
      %c4_218 = arith.constant 4 : index
      %440 = memref.load %arg2[%c5_217, %c4_218] : memref<8x9xf32, #tpu.memory_space<smem>>
      %441 = vector.broadcast %440 : f32 to vector<16x16xf32>
      %442 = arith.mulf %190, %441 : vector<16x16xf32>
      %443 = arith.addf %439, %442 : vector<16x16xf32>
      %c5_219 = arith.constant 5 : index
      %c5_220 = arith.constant 5 : index
      %444 = memref.load %arg2[%c5_219, %c5_220] : memref<8x9xf32, #tpu.memory_space<smem>>
      %445 = vector.broadcast %444 : f32 to vector<16x16xf32>
      %446 = arith.mulf %191, %445 : vector<16x16xf32>
      %447 = arith.addf %443, %446 : vector<16x16xf32>
      %c5_221 = arith.constant 5 : index
      %c6_222 = arith.constant 6 : index
      %448 = memref.load %arg2[%c5_221, %c6_222] : memref<8x9xf32, #tpu.memory_space<smem>>
      %449 = vector.broadcast %448 : f32 to vector<16x16xf32>
      %450 = arith.mulf %192, %449 : vector<16x16xf32>
      %451 = arith.addf %447, %450 : vector<16x16xf32>
      %c5_223 = arith.constant 5 : index
      %c7_224 = arith.constant 7 : index
      %452 = memref.load %arg2[%c5_223, %c7_224] : memref<8x9xf32, #tpu.memory_space<smem>>
      %453 = vector.broadcast %452 : f32 to vector<16x16xf32>
      %454 = arith.mulf %193, %453 : vector<16x16xf32>
      %455 = arith.addf %451, %454 : vector<16x16xf32>
      %c5_225 = arith.constant 5 : index
      %c8_226 = arith.constant 8 : index
      %456 = memref.load %arg2[%c5_225, %c8_226] : memref<8x9xf32, #tpu.memory_space<smem>>
      %457 = vector.broadcast %456 : f32 to vector<16x16xf32>
      %458 = arith.mulf %194, %457 : vector<16x16xf32>
      %459 = arith.addf %455, %458 : vector<16x16xf32>
      %c5_227 = arith.constant 5 : index
      %460 = memref.load %arg3[%c5_227] : memref<8xf32, #tpu.memory_space<smem>>
      %461 = vector.broadcast %460 : f32 to vector<16x16xf32>
      %462 = arith.addf %459, %461 : vector<16x16xf32>
      %cst_228 = arith.constant 0.000000e+00 : f32
      %463 = vector.broadcast %cst_228 : f32 to vector<16x16xf32>
      %464 = arith.maximumf %462, %463 : vector<16x16xf32>
      %c5_229 = arith.constant 5 : index
      %c0_230 = arith.constant 0 : index
      %c0_231 = arith.constant 0 : index
      %465 = vector.load %arg11[%c5_229, %c0_230, %c0_231] : memref<8x16x16xf32, #tpu.memory_space<vmem>>, vector<1x16x16xf32>
      %466 = vector.shape_cast %465 : vector<1x16x16xf32> to vector<16x16xf32>
      %467 = arith.maximumf %466, %464 : vector<16x16xf32>
      %c5_232 = arith.constant 5 : index
      %c0_233 = arith.constant 0 : index
      %c0_234 = arith.constant 0 : index
      %468 = vector.load %arg11[%c5_232, %c0_233, %c0_234] : memref<8x16x16xf32, #tpu.memory_space<vmem>>, vector<1x16x16xf32>
      %469 = vector.shape_cast %468 : vector<1x16x16xf32> to vector<16x16xf32>
      %470 = vector.shape_cast %467 : vector<16x16xf32> to vector<1x16x16xf32>
      tpu.vector_store %arg11[%c5_232, %c0_233, %c0_234], %470 {strides = array<i32>} : memref<8x16x16xf32, #tpu.memory_space<vmem>>, vector<1x16x16xf32>,
      %c6_235 = arith.constant 6 : index
      %c0_236 = arith.constant 0 : index
      %471 = memref.load %arg2[%c6_235, %c0_236] : memref<8x9xf32, #tpu.memory_space<smem>>
      %472 = vector.broadcast %471 : f32 to vector<16x16xf32>
      %473 = arith.mulf %186, %472 : vector<16x16xf32>
      %c6_237 = arith.constant 6 : index
      %c1_238 = arith.constant 1 : index
      %474 = memref.load %arg2[%c6_237, %c1_238] : memref<8x9xf32, #tpu.memory_space<smem>>
      %475 = vector.broadcast %474 : f32 to vector<16x16xf32>
      %476 = arith.mulf %187, %475 : vector<16x16xf32>
      %477 = arith.addf %473, %476 : vector<16x16xf32>
      %c6_239 = arith.constant 6 : index
      %c2_240 = arith.constant 2 : index
      %478 = memref.load %arg2[%c6_239, %c2_240] : memref<8x9xf32, #tpu.memory_space<smem>>
      %479 = vector.broadcast %478 : f32 to vector<16x16xf32>
      %480 = arith.mulf %188, %479 : vector<16x16xf32>
      %481 = arith.addf %477, %480 : vector<16x16xf32>
      %c6_241 = arith.constant 6 : index
      %c3_242 = arith.constant 3 : index
      %482 = memref.load %arg2[%c6_241, %c3_242] : memref<8x9xf32, #tpu.memory_space<smem>>
      %483 = vector.broadcast %482 : f32 to vector<16x16xf32>
      %484 = arith.mulf %189, %483 : vector<16x16xf32>
      %485 = arith.addf %481, %484 : vector<16x16xf32>
      %c6_243 = arith.constant 6 : index
      %c4_244 = arith.constant 4 : index
      %486 = memref.load %arg2[%c6_243, %c4_244] : memref<8x9xf32, #tpu.memory_space<smem>>
      %487 = vector.broadcast %486 : f32 to vector<16x16xf32>
      %488 = arith.mulf %190, %487 : vector<16x16xf32>
      %489 = arith.addf %485, %488 : vector<16x16xf32>
      %c6_245 = arith.constant 6 : index
      %c5_246 = arith.constant 5 : index
      %490 = memref.load %arg2[%c6_245, %c5_246] : memref<8x9xf32, #tpu.memory_space<smem>>
      %491 = vector.broadcast %490 : f32 to vector<16x16xf32>
      %492 = arith.mulf %191, %491 : vector<16x16xf32>
      %493 = arith.addf %489, %492 : vector<16x16xf32>
      %c6_247 = arith.constant 6 : index
      %c6_248 = arith.constant 6 : index
      %494 = memref.load %arg2[%c6_247, %c6_248] : memref<8x9xf32, #tpu.memory_space<smem>>
      %495 = vector.broadcast %494 : f32 to vector<16x16xf32>
      %496 = arith.mulf %192, %495 : vector<16x16xf32>
      %497 = arith.addf %493, %496 : vector<16x16xf32>
      %c6_249 = arith.constant 6 : index
      %c7_250 = arith.constant 7 : index
      %498 = memref.load %arg2[%c6_249, %c7_250] : memref<8x9xf32, #tpu.memory_space<smem>>
      %499 = vector.broadcast %498 : f32 to vector<16x16xf32>
      %500 = arith.mulf %193, %499 : vector<16x16xf32>
      %501 = arith.addf %497, %500 : vector<16x16xf32>
      %c6_251 = arith.constant 6 : index
      %c8_252 = arith.constant 8 : index
      %502 = memref.load %arg2[%c6_251, %c8_252] : memref<8x9xf32, #tpu.memory_space<smem>>
      %503 = vector.broadcast %502 : f32 to vector<16x16xf32>
      %504 = arith.mulf %194, %503 : vector<16x16xf32>
      %505 = arith.addf %501, %504 : vector<16x16xf32>
      %c6_253 = arith.constant 6 : index
      %506 = memref.load %arg3[%c6_253] : memref<8xf32, #tpu.memory_space<smem>>
      %507 = vector.broadcast %506 : f32 to vector<16x16xf32>
      %508 = arith.addf %505, %507 : vector<16x16xf32>
      %cst_254 = arith.constant 0.000000e+00 : f32
      %509 = vector.broadcast %cst_254 : f32 to vector<16x16xf32>
      %510 = arith.maximumf %508, %509 : vector<16x16xf32>
      %c6_255 = arith.constant 6 : index
      %c0_256 = arith.constant 0 : index
      %c0_257 = arith.constant 0 : index
      %511 = vector.load %arg11[%c6_255, %c0_256, %c0_257] : memref<8x16x16xf32, #tpu.memory_space<vmem>>, vector<1x16x16xf32>
      %512 = vector.shape_cast %511 : vector<1x16x16xf32> to vector<16x16xf32>
      %513 = arith.maximumf %512, %510 : vector<16x16xf32>
      %c6_258 = arith.constant 6 : index
      %c0_259 = arith.constant 0 : index
      %c0_260 = arith.constant 0 : index
      %514 = vector.load %arg11[%c6_258, %c0_259, %c0_260] : memref<8x16x16xf32, #tpu.memory_space<vmem>>, vector<1x16x16xf32>
      %515 = vector.shape_cast %514 : vector<1x16x16xf32> to vector<16x16xf32>
      %516 = vector.shape_cast %513 : vector<16x16xf32> to vector<1x16x16xf32>
      tpu.vector_store %arg11[%c6_258, %c0_259, %c0_260], %516 {strides = array<i32>} : memref<8x16x16xf32, #tpu.memory_space<vmem>>, vector<1x16x16xf32>,
      %c7_261 = arith.constant 7 : index
      %c0_262 = arith.constant 0 : index
      %517 = memref.load %arg2[%c7_261, %c0_262] : memref<8x9xf32, #tpu.memory_space<smem>>
      %518 = vector.broadcast %517 : f32 to vector<16x16xf32>
      %519 = arith.mulf %186, %518 : vector<16x16xf32>
      %c7_263 = arith.constant 7 : index
      %c1_264 = arith.constant 1 : index
      %520 = memref.load %arg2[%c7_263, %c1_264] : memref<8x9xf32, #tpu.memory_space<smem>>
      %521 = vector.broadcast %520 : f32 to vector<16x16xf32>
      %522 = arith.mulf %187, %521 : vector<16x16xf32>
      %523 = arith.addf %519, %522 : vector<16x16xf32>
      %c7_265 = arith.constant 7 : index
      %c2_266 = arith.constant 2 : index
      %524 = memref.load %arg2[%c7_265, %c2_266] : memref<8x9xf32, #tpu.memory_space<smem>>
      %525 = vector.broadcast %524 : f32 to vector<16x16xf32>
      %526 = arith.mulf %188, %525 : vector<16x16xf32>
      %527 = arith.addf %523, %526 : vector<16x16xf32>
      %c7_267 = arith.constant 7 : index
      %c3_268 = arith.constant 3 : index
      %528 = memref.load %arg2[%c7_267, %c3_268] : memref<8x9xf32, #tpu.memory_space<smem>>
      %529 = vector.broadcast %528 : f32 to vector<16x16xf32>
      %530 = arith.mulf %189, %529 : vector<16x16xf32>
      %531 = arith.addf %527, %530 : vector<16x16xf32>
      %c7_269 = arith.constant 7 : index
      %c4_270 = arith.constant 4 : index
      %532 = memref.load %arg2[%c7_269, %c4_270] : memref<8x9xf32, #tpu.memory_space<smem>>
      %533 = vector.broadcast %532 : f32 to vector<16x16xf32>
      %534 = arith.mulf %190, %533 : vector<16x16xf32>
      %535 = arith.addf %531, %534 : vector<16x16xf32>
      %c7_271 = arith.constant 7 : index
      %c5_272 = arith.constant 5 : index
      %536 = memref.load %arg2[%c7_271, %c5_272] : memref<8x9xf32, #tpu.memory_space<smem>>
      %537 = vector.broadcast %536 : f32 to vector<16x16xf32>
      %538 = arith.mulf %191, %537 : vector<16x16xf32>
      %539 = arith.addf %535, %538 : vector<16x16xf32>
      %c7_273 = arith.constant 7 : index
      %c6_274 = arith.constant 6 : index
      %540 = memref.load %arg2[%c7_273, %c6_274] : memref<8x9xf32, #tpu.memory_space<smem>>
      %541 = vector.broadcast %540 : f32 to vector<16x16xf32>
      %542 = arith.mulf %192, %541 : vector<16x16xf32>
      %543 = arith.addf %539, %542 : vector<16x16xf32>
      %c7_275 = arith.constant 7 : index
      %c7_276 = arith.constant 7 : index
      %544 = memref.load %arg2[%c7_275, %c7_276] : memref<8x9xf32, #tpu.memory_space<smem>>
      %545 = vector.broadcast %544 : f32 to vector<16x16xf32>
      %546 = arith.mulf %193, %545 : vector<16x16xf32>
      %547 = arith.addf %543, %546 : vector<16x16xf32>
      %c7_277 = arith.constant 7 : index
      %c8_278 = arith.constant 8 : index
      %548 = memref.load %arg2[%c7_277, %c8_278] : memref<8x9xf32, #tpu.memory_space<smem>>
      %549 = vector.broadcast %548 : f32 to vector<16x16xf32>
      %550 = arith.mulf %194, %549 : vector<16x16xf32>
      %551 = arith.addf %547, %550 : vector<16x16xf32>
      %c7_279 = arith.constant 7 : index
      %552 = memref.load %arg3[%c7_279] : memref<8xf32, #tpu.memory_space<smem>>
      %553 = vector.broadcast %552 : f32 to vector<16x16xf32>
      %554 = arith.addf %551, %553 : vector<16x16xf32>
      %cst_280 = arith.constant 0.000000e+00 : f32
      %555 = vector.broadcast %cst_280 : f32 to vector<16x16xf32>
      %556 = arith.maximumf %554, %555 : vector<16x16xf32>
      %c7_281 = arith.constant 7 : index
      %c0_282 = arith.constant 0 : index
      %c0_283 = arith.constant 0 : index
      %557 = vector.load %arg11[%c7_281, %c0_282, %c0_283] : memref<8x16x16xf32, #tpu.memory_space<vmem>>, vector<1x16x16xf32>
      %558 = vector.shape_cast %557 : vector<1x16x16xf32> to vector<16x16xf32>
      %559 = arith.maximumf %558, %556 : vector<16x16xf32>
      %c7_284 = arith.constant 7 : index
      %c0_285 = arith.constant 0 : index
      %c0_286 = arith.constant 0 : index
      %560 = vector.load %arg11[%c7_284, %c0_285, %c0_286] : memref<8x16x16xf32, #tpu.memory_space<vmem>>, vector<1x16x16xf32>
      %561 = vector.shape_cast %560 : vector<1x16x16xf32> to vector<16x16xf32>
      %562 = vector.shape_cast %559 : vector<16x16xf32> to vector<1x16x16xf32>
      tpu.vector_store %arg11[%c7_284, %c0_285, %c0_286], %562 {strides = array<i32>} : memref<8x16x16xf32, #tpu.memory_space<vmem>>, vector<1x16x16xf32>,
    }
    %c8_i32_11 = arith.constant 8 : i32
    %c0_12 = arith.constant 0 : index
    %c0_13 = arith.constant 0 : index
    %c0_14 = arith.constant 0 : index
    %10 = vector.load %arg11[%c0_12, %c0_13, %c0_14] : memref<8x16x16xf32, #tpu.memory_space<vmem>>, vector<8x16x16xf32>
    %cst_15 = arith.constant dense<0.000000e+00> : vector<8x16xf32>
    %11 = vector.multi_reduction <add>, %10, %cst_15 [2] : vector<8x16x16xf32> to vector<8x16xf32>
    %cst_16 = arith.constant dense<0xFF800000> : vector<8x16xf32>
    %12 = vector.multi_reduction <maximumf>, %10, %cst_16 [2] : vector<8x16x16xf32> to vector<8x16xf32>
    %cst_17 = arith.constant 6.250000e-02 : f32
    %13 = vector.broadcast %cst_17 : f32 to vector<8x16xf32>
    %14 = arith.mulf %11, %13 : vector<8x16xf32>
    %15 = arith.addf %14, %12 : vector<8x16xf32>
    %16 = vector.extract_strided_slice %11 {offsets = [0, 0], sizes = [8, 2], strides = [1, 1]} : vector<8x16xf32> to vector<8x2xf32>
    %cst_18 = arith.constant dense<0.000000e+00> : vector<8xf32>
    %17 = vector.multi_reduction <add>, %16, %cst_18 [1] : vector<8x2xf32> to vector<8xf32>
    %18 = vector.shape_cast %17 : vector<8xf32> to vector<8x1xf32>
    %19 = vector.extract_strided_slice %12 {offsets = [0, 0], sizes = [8, 2], strides = [1, 1]} : vector<8x16xf32> to vector<8x2xf32>
    %cst_19 = arith.constant dense<0xFF800000> : vector<8xf32>
    %20 = vector.multi_reduction <maximumf>, %19, %cst_19 [1] : vector<8x2xf32> to vector<8xf32>
    %21 = vector.shape_cast %20 : vector<8xf32> to vector<8x1xf32>
    %cst_20 = arith.constant 3.125000e-02 : f32
    %22 = vector.broadcast %cst_20 : f32 to vector<8x1xf32>
    %23 = arith.mulf %18, %22 : vector<8x1xf32>
    %24 = arith.addf %23, %21 : vector<8x1xf32>
    %25 = vector.extract_strided_slice %11 {offsets = [0, 2], sizes = [8, 2], strides = [1, 1]} : vector<8x16xf32> to vector<8x2xf32>
    %cst_21 = arith.constant dense<0.000000e+00> : vector<8xf32>
    %26 = vector.multi_reduction <add>, %25, %cst_21 [1] : vector<8x2xf32> to vector<8xf32>
    %27 = vector.shape_cast %26 : vector<8xf32> to vector<8x1xf32>
    %28 = vector.extract_strided_slice %12 {offsets = [0, 2], sizes = [8, 2], strides = [1, 1]} : vector<8x16xf32> to vector<8x2xf32>
    %cst_22 = arith.constant dense<0xFF800000> : vector<8xf32>
    %29 = vector.multi_reduction <maximumf>, %28, %cst_22 [1] : vector<8x2xf32> to vector<8xf32>
    %30 = vector.shape_cast %29 : vector<8xf32> to vector<8x1xf32>
    %cst_23 = arith.constant 3.125000e-02 : f32
    %31 = vector.broadcast %cst_23 : f32 to vector<8x1xf32>
    %32 = arith.mulf %27, %31 : vector<8x1xf32>
    %33 = arith.addf %32, %30 : vector<8x1xf32>
    %34 = vector.extract_strided_slice %11 {offsets = [0, 4], sizes = [8, 2], strides = [1, 1]} : vector<8x16xf32> to vector<8x2xf32>
    %cst_24 = arith.constant dense<0.000000e+00> : vector<8xf32>
    %35 = vector.multi_reduction <add>, %34, %cst_24 [1] : vector<8x2xf32> to vector<8xf32>
    %36 = vector.shape_cast %35 : vector<8xf32> to vector<8x1xf32>
    %37 = vector.extract_strided_slice %12 {offsets = [0, 4], sizes = [8, 2], strides = [1, 1]} : vector<8x16xf32> to vector<8x2xf32>
    %cst_25 = arith.constant dense<0xFF800000> : vector<8xf32>
    %38 = vector.multi_reduction <maximumf>, %37, %cst_25 [1] : vector<8x2xf32> to vector<8xf32>
    %39 = vector.shape_cast %38 : vector<8xf32> to vector<8x1xf32>
    %cst_26 = arith.constant 3.125000e-02 : f32
    %40 = vector.broadcast %cst_26 : f32 to vector<8x1xf32>
    %41 = arith.mulf %36, %40 : vector<8x1xf32>
    %42 = arith.addf %41, %39 : vector<8x1xf32>
    %43 = vector.extract_strided_slice %11 {offsets = [0, 6], sizes = [8, 2], strides = [1, 1]} : vector<8x16xf32> to vector<8x2xf32>
    %cst_27 = arith.constant dense<0.000000e+00> : vector<8xf32>
    %44 = vector.multi_reduction <add>, %43, %cst_27 [1] : vector<8x2xf32> to vector<8xf32>
    %45 = vector.shape_cast %44 : vector<8xf32> to vector<8x1xf32>
    %46 = vector.extract_strided_slice %12 {offsets = [0, 6], sizes = [8, 2], strides = [1, 1]} : vector<8x16xf32> to vector<8x2xf32>
    %cst_28 = arith.constant dense<0xFF800000> : vector<8xf32>
    %47 = vector.multi_reduction <maximumf>, %46, %cst_28 [1] : vector<8x2xf32> to vector<8xf32>
    %48 = vector.shape_cast %47 : vector<8xf32> to vector<8x1xf32>
    %cst_29 = arith.constant 3.125000e-02 : f32
    %49 = vector.broadcast %cst_29 : f32 to vector<8x1xf32>
    %50 = arith.mulf %45, %49 : vector<8x1xf32>
    %51 = arith.addf %50, %48 : vector<8x1xf32>
    %52 = vector.extract_strided_slice %11 {offsets = [0, 8], sizes = [8, 2], strides = [1, 1]} : vector<8x16xf32> to vector<8x2xf32>
    %cst_30 = arith.constant dense<0.000000e+00> : vector<8xf32>
    %53 = vector.multi_reduction <add>, %52, %cst_30 [1] : vector<8x2xf32> to vector<8xf32>
    %54 = vector.shape_cast %53 : vector<8xf32> to vector<8x1xf32>
    %55 = vector.extract_strided_slice %12 {offsets = [0, 8], sizes = [8, 2], strides = [1, 1]} : vector<8x16xf32> to vector<8x2xf32>
    %cst_31 = arith.constant dense<0xFF800000> : vector<8xf32>
    %56 = vector.multi_reduction <maximumf>, %55, %cst_31 [1] : vector<8x2xf32> to vector<8xf32>
    %57 = vector.shape_cast %56 : vector<8xf32> to vector<8x1xf32>
    %cst_32 = arith.constant 3.125000e-02 : f32
    %58 = vector.broadcast %cst_32 : f32 to vector<8x1xf32>
    %59 = arith.mulf %54, %58 : vector<8x1xf32>
    %60 = arith.addf %59, %57 : vector<8x1xf32>
    %61 = vector.extract_strided_slice %11 {offsets = [0, 10], sizes = [8, 2], strides = [1, 1]} : vector<8x16xf32> to vector<8x2xf32>
    %cst_33 = arith.constant dense<0.000000e+00> : vector<8xf32>
    %62 = vector.multi_reduction <add>, %61, %cst_33 [1] : vector<8x2xf32> to vector<8xf32>
    %63 = vector.shape_cast %62 : vector<8xf32> to vector<8x1xf32>
    %64 = vector.extract_strided_slice %12 {offsets = [0, 10], sizes = [8, 2], strides = [1, 1]} : vector<8x16xf32> to vector<8x2xf32>
    %cst_34 = arith.constant dense<0xFF800000> : vector<8xf32>
    %65 = vector.multi_reduction <maximumf>, %64, %cst_34 [1] : vector<8x2xf32> to vector<8xf32>
    %66 = vector.shape_cast %65 : vector<8xf32> to vector<8x1xf32>
    %cst_35 = arith.constant 3.125000e-02 : f32
    %67 = vector.broadcast %cst_35 : f32 to vector<8x1xf32>
    %68 = arith.mulf %63, %67 : vector<8x1xf32>
    %69 = arith.addf %68, %66 : vector<8x1xf32>
    %70 = vector.extract_strided_slice %11 {offsets = [0, 12], sizes = [8, 2], strides = [1, 1]} : vector<8x16xf32> to vector<8x2xf32>
    %cst_36 = arith.constant dense<0.000000e+00> : vector<8xf32>
    %71 = vector.multi_reduction <add>, %70, %cst_36 [1] : vector<8x2xf32> to vector<8xf32>
    %72 = vector.shape_cast %71 : vector<8xf32> to vector<8x1xf32>
    %73 = vector.extract_strided_slice %12 {offsets = [0, 12], sizes = [8, 2], strides = [1, 1]} : vector<8x16xf32> to vector<8x2xf32>
    %cst_37 = arith.constant dense<0xFF800000> : vector<8xf32>
    %74 = vector.multi_reduction <maximumf>, %73, %cst_37 [1] : vector<8x2xf32> to vector<8xf32>
    %75 = vector.shape_cast %74 : vector<8xf32> to vector<8x1xf32>
    %cst_38 = arith.constant 3.125000e-02 : f32
    %76 = vector.broadcast %cst_38 : f32 to vector<8x1xf32>
    %77 = arith.mulf %72, %76 : vector<8x1xf32>
    %78 = arith.addf %77, %75 : vector<8x1xf32>
    %79 = vector.extract_strided_slice %11 {offsets = [0, 14], sizes = [8, 2], strides = [1, 1]} : vector<8x16xf32> to vector<8x2xf32>
    %cst_39 = arith.constant dense<0.000000e+00> : vector<8xf32>
    %80 = vector.multi_reduction <add>, %79, %cst_39 [1] : vector<8x2xf32> to vector<8xf32>
    %81 = vector.shape_cast %80 : vector<8xf32> to vector<8x1xf32>
    %82 = vector.extract_strided_slice %12 {offsets = [0, 14], sizes = [8, 2], strides = [1, 1]} : vector<8x16xf32> to vector<8x2xf32>
    %cst_40 = arith.constant dense<0xFF800000> : vector<8xf32>
    %83 = vector.multi_reduction <maximumf>, %82, %cst_40 [1] : vector<8x2xf32> to vector<8xf32>
    %84 = vector.shape_cast %83 : vector<8xf32> to vector<8x1xf32>
    %cst_41 = arith.constant 3.125000e-02 : f32
    %85 = vector.broadcast %cst_41 : f32 to vector<8x1xf32>
    %86 = arith.mulf %81, %85 : vector<8x1xf32>
    %87 = arith.addf %86, %84 : vector<8x1xf32>
    %88 = tpu.concatenate %24, %33, %42, %51, %60, %69, %78, %87 in 1 : vector<8x1xf32>, vector<8x1xf32>, vector<8x1xf32>, vector<8x1xf32>, vector<8x1xf32>, vector<8x1xf32>, vector<8x1xf32>, vector<8x1xf32> -> vector<8x8xf32>
    %89 = vector.extract_strided_slice %11 {offsets = [0, 0], sizes = [8, 4], strides = [1, 1]} : vector<8x16xf32> to vector<8x4xf32>
    %cst_42 = arith.constant dense<0.000000e+00> : vector<8xf32>
    %90 = vector.multi_reduction <add>, %89, %cst_42 [1] : vector<8x4xf32> to vector<8xf32>
    %91 = vector.shape_cast %90 : vector<8xf32> to vector<8x1xf32>
    %92 = vector.extract_strided_slice %12 {offsets = [0, 0], sizes = [8, 4], strides = [1, 1]} : vector<8x16xf32> to vector<8x4xf32>
    %cst_43 = arith.constant dense<0xFF800000> : vector<8xf32>
    %93 = vector.multi_reduction <maximumf>, %92, %cst_43 [1] : vector<8x4xf32> to vector<8xf32>
    %94 = vector.shape_cast %93 : vector<8xf32> to vector<8x1xf32>
    %cst_44 = arith.constant 1.562500e-02 : f32
    %95 = vector.broadcast %cst_44 : f32 to vector<8x1xf32>
    %96 = arith.mulf %91, %95 : vector<8x1xf32>
    %97 = arith.addf %96, %94 : vector<8x1xf32>
    %98 = vector.extract_strided_slice %11 {offsets = [0, 4], sizes = [8, 4], strides = [1, 1]} : vector<8x16xf32> to vector<8x4xf32>
    %cst_45 = arith.constant dense<0.000000e+00> : vector<8xf32>
    %99 = vector.multi_reduction <add>, %98, %cst_45 [1] : vector<8x4xf32> to vector<8xf32>
    %100 = vector.shape_cast %99 : vector<8xf32> to vector<8x1xf32>
    %101 = vector.extract_strided_slice %12 {offsets = [0, 4], sizes = [8, 4], strides = [1, 1]} : vector<8x16xf32> to vector<8x4xf32>
    %cst_46 = arith.constant dense<0xFF800000> : vector<8xf32>
    %102 = vector.multi_reduction <maximumf>, %101, %cst_46 [1] : vector<8x4xf32> to vector<8xf32>
    %103 = vector.shape_cast %102 : vector<8xf32> to vector<8x1xf32>
    %cst_47 = arith.constant 1.562500e-02 : f32
    %104 = vector.broadcast %cst_47 : f32 to vector<8x1xf32>
    %105 = arith.mulf %100, %104 : vector<8x1xf32>
    %106 = arith.addf %105, %103 : vector<8x1xf32>
    %107 = vector.extract_strided_slice %11 {offsets = [0, 8], sizes = [8, 4], strides = [1, 1]} : vector<8x16xf32> to vector<8x4xf32>
    %cst_48 = arith.constant dense<0.000000e+00> : vector<8xf32>
    %108 = vector.multi_reduction <add>, %107, %cst_48 [1] : vector<8x4xf32> to vector<8xf32>
    %109 = vector.shape_cast %108 : vector<8xf32> to vector<8x1xf32>
    %110 = vector.extract_strided_slice %12 {offsets = [0, 8], sizes = [8, 4], strides = [1, 1]} : vector<8x16xf32> to vector<8x4xf32>
    %cst_49 = arith.constant dense<0xFF800000> : vector<8xf32>
    %111 = vector.multi_reduction <maximumf>, %110, %cst_49 [1] : vector<8x4xf32> to vector<8xf32>
    %112 = vector.shape_cast %111 : vector<8xf32> to vector<8x1xf32>
    %cst_50 = arith.constant 1.562500e-02 : f32
    %113 = vector.broadcast %cst_50 : f32 to vector<8x1xf32>
    %114 = arith.mulf %109, %113 : vector<8x1xf32>
    %115 = arith.addf %114, %112 : vector<8x1xf32>
    %116 = vector.extract_strided_slice %11 {offsets = [0, 12], sizes = [8, 4], strides = [1, 1]} : vector<8x16xf32> to vector<8x4xf32>
    %cst_51 = arith.constant dense<0.000000e+00> : vector<8xf32>
    %117 = vector.multi_reduction <add>, %116, %cst_51 [1] : vector<8x4xf32> to vector<8xf32>
    %118 = vector.shape_cast %117 : vector<8xf32> to vector<8x1xf32>
    %119 = vector.extract_strided_slice %12 {offsets = [0, 12], sizes = [8, 4], strides = [1, 1]} : vector<8x16xf32> to vector<8x4xf32>
    %cst_52 = arith.constant dense<0xFF800000> : vector<8xf32>
    %120 = vector.multi_reduction <maximumf>, %119, %cst_52 [1] : vector<8x4xf32> to vector<8xf32>
    %121 = vector.shape_cast %120 : vector<8xf32> to vector<8x1xf32>
    %cst_53 = arith.constant 1.562500e-02 : f32
    %122 = vector.broadcast %cst_53 : f32 to vector<8x1xf32>
    %123 = arith.mulf %118, %122 : vector<8x1xf32>
    %124 = arith.addf %123, %121 : vector<8x1xf32>
    %125 = tpu.concatenate %97, %106, %115, %124 in 1 : vector<8x1xf32>, vector<8x1xf32>, vector<8x1xf32>, vector<8x1xf32> -> vector<8x4xf32>
    %126 = vector.extract_strided_slice %11 {offsets = [0, 0], sizes = [8, 8], strides = [1, 1]} : vector<8x16xf32> to vector<8x8xf32>
    %cst_54 = arith.constant dense<0.000000e+00> : vector<8xf32>
    %127 = vector.multi_reduction <add>, %126, %cst_54 [1] : vector<8x8xf32> to vector<8xf32>
    %128 = vector.shape_cast %127 : vector<8xf32> to vector<8x1xf32>
    %129 = vector.extract_strided_slice %12 {offsets = [0, 0], sizes = [8, 8], strides = [1, 1]} : vector<8x16xf32> to vector<8x8xf32>
    %cst_55 = arith.constant dense<0xFF800000> : vector<8xf32>
    %130 = vector.multi_reduction <maximumf>, %129, %cst_55 [1] : vector<8x8xf32> to vector<8xf32>
    %131 = vector.shape_cast %130 : vector<8xf32> to vector<8x1xf32>
    %cst_56 = arith.constant 7.812500e-03 : f32
    %132 = vector.broadcast %cst_56 : f32 to vector<8x1xf32>
    %133 = arith.mulf %128, %132 : vector<8x1xf32>
    %134 = arith.addf %133, %131 : vector<8x1xf32>
    %135 = vector.extract_strided_slice %11 {offsets = [0, 8], sizes = [8, 8], strides = [1, 1]} : vector<8x16xf32> to vector<8x8xf32>
    %cst_57 = arith.constant dense<0.000000e+00> : vector<8xf32>
    %136 = vector.multi_reduction <add>, %135, %cst_57 [1] : vector<8x8xf32> to vector<8xf32>
    %137 = vector.shape_cast %136 : vector<8xf32> to vector<8x1xf32>
    %138 = vector.extract_strided_slice %12 {offsets = [0, 8], sizes = [8, 8], strides = [1, 1]} : vector<8x16xf32> to vector<8x8xf32>
    %cst_58 = arith.constant dense<0xFF800000> : vector<8xf32>
    %139 = vector.multi_reduction <maximumf>, %138, %cst_58 [1] : vector<8x8xf32> to vector<8xf32>
    %140 = vector.shape_cast %139 : vector<8xf32> to vector<8x1xf32>
    %cst_59 = arith.constant 7.812500e-03 : f32
    %141 = vector.broadcast %cst_59 : f32 to vector<8x1xf32>
    %142 = arith.mulf %137, %141 : vector<8x1xf32>
    %143 = arith.addf %142, %140 : vector<8x1xf32>
    %144 = tpu.concatenate %134, %143 in 1 : vector<8x1xf32>, vector<8x1xf32> -> vector<8x2xf32>
    %cst_60 = arith.constant dense<0.000000e+00> : vector<8xf32>
    %145 = vector.multi_reduction <add>, %11, %cst_60 [1] : vector<8x16xf32> to vector<8xf32>
    %146 = vector.shape_cast %145 : vector<8xf32> to vector<8x1xf32>
    %cst_61 = arith.constant dense<0xFF800000> : vector<8xf32>
    %147 = vector.multi_reduction <maximumf>, %12, %cst_61 [1] : vector<8x16xf32> to vector<8xf32>
    %148 = vector.shape_cast %147 : vector<8xf32> to vector<8x1xf32>
    %cst_62 = arith.constant 3.906250e-03 : f32
    %149 = vector.broadcast %cst_62 : f32 to vector<8x1xf32>
    %150 = arith.mulf %146, %149 : vector<8x1xf32>
    %151 = arith.addf %150, %148 : vector<8x1xf32>
    %152 = tpu.concatenate %15, %88, %125, %144, %151 in 1 : vector<8x16xf32>, vector<8x8xf32>, vector<8x4xf32>, vector<8x2xf32>, vector<8x1xf32> -> vector<8x31xf32>
    %c0_63 = arith.constant 0 : index
    %c0_64 = arith.constant 0 : index
    %c0_65 = arith.constant 0 : index
    %153 = vector.load %arg4[%c0_63, %c0_64, %c0_65] : memref<16x8x31xf32, #tpu.memory_space<vmem>>, vector<16x8x31xf32>
    %154 = vector.shape_cast %152 : vector<8x31xf32> to vector<1x8x31xf32>
    %155 = vector.broadcast %154 : vector<1x8x31xf32> to vector<16x8x31xf32>
    %156 = arith.mulf %153, %155 : vector<16x8x31xf32>
    %cst_66 = arith.constant dense<0.000000e+00> : vector<16x31xf32>
    %157 = vector.multi_reduction <add>, %156, %cst_66 [1] : vector<16x8x31xf32> to vector<16x31xf32>
    %c0_67 = arith.constant 0 : index
    %c0_68 = arith.constant 0 : index
    %c0_69 = arith.constant 0 : index
    %158 = vector.load %arg8[%c0_67, %c0_68, %c0_69] : memref<1x16x31xf32, #tpu.memory_space<vmem>>, vector<1x16x31xf32>
    %159 = vector.shape_cast %158 : vector<1x16x31xf32> to vector<16x31xf32>
    %160 = vector.shape_cast %157 : vector<16x31xf32> to vector<1x16x31xf32>
    tpu.vector_store %arg8[%c0_67, %c0_68, %c0_69], %160 {strides = array<i32>} : memref<1x16x31xf32, #tpu.memory_space<vmem>>, vector<1x16x31xf32>,
    %c0_70 = arith.constant 0 : index
    %c0_71 = arith.constant 0 : index
    %161 = vector.load %arg5[%c0_70, %c0_71] : memref<16x31xf32, #tpu.memory_space<vmem>>, vector<16x31xf32>
    %162 = arith.mulf %157, %161 : vector<16x31xf32>
    %c0_72 = arith.constant 0 : index
    %c0_73 = arith.constant 0 : index
    %163 = vector.load %arg6[%c0_72, %c0_73] : memref<16x31xf32, #tpu.memory_space<vmem>>, vector<16x31xf32>
    %164 = arith.addf %162, %163 : vector<16x31xf32>
    %165 = arith.mulf %164, %164 : vector<16x31xf32>
    %cst_74 = arith.constant dense<0.000000e+00> : vector<31xf32>
    %166 = vector.multi_reduction <add>, %165, %cst_74 [0] : vector<16x31xf32> to vector<31xf32>
    %167 = vector.shape_cast %166 : vector<31xf32> to vector<1x31xf32>
    %cst_75 = arith.constant 1.000000e-24 : f32
    %168 = vector.broadcast %cst_75 : f32 to vector<1x31xf32>
    %169 = arith.maximumf %167, %168 : vector<1x31xf32>
    %170 = math.rsqrt %169 : vector<1x31xf32>
    %171 = vector.broadcast %170 : vector<1x31xf32> to vector<16x31xf32>
    %172 = arith.mulf %164, %171 : vector<16x31xf32>
    %c0_76 = arith.constant 0 : index
    %c0_77 = arith.constant 0 : index
    %c0_78 = arith.constant 0 : index
    %173 = vector.load %arg7[%c0_76, %c0_77, %c0_78] : memref<32x16x31xf32, #tpu.memory_space<vmem>>, vector<32x16x31xf32>
    %174 = vector.shape_cast %172 : vector<16x31xf32> to vector<1x16x31xf32>
    %175 = vector.broadcast %174 : vector<1x16x31xf32> to vector<32x16x31xf32>
    %176 = arith.mulf %173, %175 : vector<32x16x31xf32>
    %cst_79 = arith.constant dense<0.000000e+00> : vector<32x31xf32>
    %177 = vector.multi_reduction <add>, %176, %cst_79 [1] : vector<32x16x31xf32> to vector<32x31xf32>
    %c0_80 = arith.constant 0 : index
    %c0_81 = arith.constant 0 : index
    %c0_82 = arith.constant 0 : index
    %178 = vector.load %arg9[%c0_80, %c0_81, %c0_82] : memref<1x32x31xf32, #tpu.memory_space<vmem>>, vector<1x32x31xf32>
    %179 = vector.shape_cast %178 : vector<1x32x31xf32> to vector<32x31xf32>
    %180 = vector.shape_cast %177 : vector<32x31xf32> to vector<1x32x31xf32>
    tpu.vector_store %arg9[%c0_80, %c0_81, %c0_82], %180 {strides = array<i32>} : memref<1x32x31xf32, #tpu.memory_space<vmem>>, vector<1x32x31xf32>,
    return
  }
  func.func @transform_0(%arg0: i32) -> (i32, i32, i32, i32) {
    %c0_i32 = arith.constant 0 : i32
    %c0_i32_0 = arith.constant 0 : i32
    %c0_i32_1 = arith.constant 0 : i32
    %c0_i32_2 = arith.constant 0 : i32
    return %arg0, %c0_i32, %c0_i32_0, %c0_i32_1 : i32, i32, i32, i32
  }
  func.func @transform_1(%arg0: i32) -> (i32, i32) {
    %c0_i32 = arith.constant 0 : i32
    %c0_i32_0 = arith.constant 0 : i32
    %c0_i32_1 = arith.constant 0 : i32
    return %c0_i32, %c0_i32_0 : i32, i32
  }
  func.func @transform_2(%arg0: i32) -> i32 {
    %c0_i32 = arith.constant 0 : i32
    %c0_i32_0 = arith.constant 0 : i32
    return %c0_i32 : i32
  }
  func.func @transform_3(%arg0: i32) -> (i32, i32, i32) {
    %c0_i32 = arith.constant 0 : i32
    %c0_i32_0 = arith.constant 0 : i32
    %c0_i32_1 = arith.constant 0 : i32
    %c0_i32_2 = arith.constant 0 : i32
    return %c0_i32, %c0_i32_0, %c0_i32_1 : i32, i32, i32
  }
  func.func @transform_4(%arg0: i32) -> (i32, i32) {
    %c0_i32 = arith.constant 0 : i32
    %c0_i32_0 = arith.constant 0 : i32
    %c0_i32_1 = arith.constant 0 : i32
    return %c0_i32, %c0_i32_0 : i32, i32
  }
  func.func @transform_5(%arg0: i32) -> (i32, i32) {
    %c0_i32 = arith.constant 0 : i32
    %c0_i32_0 = arith.constant 0 : i32
    %c0_i32_1 = arith.constant 0 : i32
    return %c0_i32, %c0_i32_0 : i32, i32
  }
  func.func @transform_6(%arg0: i32) -> (i32, i32, i32) {
    %c0_i32 = arith.constant 0 : i32
    %c0_i32_0 = arith.constant 0 : i32
    %c0_i32_1 = arith.constant 0 : i32
    %c0_i32_2 = arith.constant 0 : i32
    return %c0_i32, %c0_i32_0, %c0_i32_1 : i32, i32, i32
  }
  func.func @transform_7(%arg0: i32) -> (i32, i32, i32) {
    %c0_i32 = arith.constant 0 : i32
    %c0_i32_0 = arith.constant 0 : i32
    %c0_i32_1 = arith.constant 0 : i32
    return %arg0, %c0_i32, %c0_i32_0 : i32, i32, i32
  }
  func.func @transform_8(%arg0: i32) -> (i32, i32, i32) {
    %c0_i32 = arith.constant 0 : i32
    %c0_i32_0 = arith.constant 0 : i32
    %c0_i32_1 = arith.constant 0 : i32
    return %arg0, %c0_i32, %c0_i32_0 : i32, i32, i32
  }
}

</mosaic_0001>

<bundles_post_ra>
// kernel: baseline_demo_forward.1
= control target key start
LH: loop header
LB: loop body
LE: loop exit
PB: predicated region body
PF: predicated region fallthrough
CT: control target
= control target key end

     0   :  { %14 = vsyncpa [#allocation6], 0  ;;  %s6275_s0 = inlined_call_operand.vmem [shape: f32[2,8,16,16], index: 0, kind: input, shape index: {}]   ;;  %s6276_s1 = inlined_call_operand.vmem [shape: f32[8,9], index: 1, kind: input, shape index: {}]   ;;  %s6277_s2 = inlined_call_operand.vmem [shape: f32[8], index: 2, kind: input, shape index: {}]   ;;  %s6278_s3 = inlined_call_operand.vmem [shape: f32[16,8,31], index: 3, kind: input, shape index: {}]   ;;  %s6279_s4 = inlined_call_operand.vmem [shape: f32[16,31], index: 4, kind: input, shape index: {}]   ;;  %s6280_s5 = inlined_call_operand.vmem [shape: f32[16,31], index: 5, kind: input, shape index: {}]   ;;  %s6281_s6 = inlined_call_operand.vmem [shape: f32[32,16,31], index: 6, kind: input, shape index: {}]   ;;  %s6282_s7 = inlined_call_operand.hbm [shape: f32[2,16,31], index: 7, kind: output, shape index: {0}]   ;;  %s6283_s8 = inlined_call_operand.vmem [shape: f32[2,32,31], index: 8, kind: output, shape index: {1}]  }
   0x1   :  { %15 = vsyncpa [#allocation8], 0 }
   0x2   :  { %16 = vsyncpa [#allocation5], 0 }
   0x3   :  { %18 = vsyncpa [#allocation5 + $0x1], 0  ;;  %s3900_s27 = smov 0   ;;  %s3902_s28 = smov 0  }
   0x4   :  { %s3904_s29 = smov 0   ;;  %s3906_s30 = smov 0  }
   0x5 LB: > { %s3921_s9 = sadd.s32 4294967295, %s3838_s30   ;;  %s3553_s10 = sadd.s32 4294967294, %s3838_s30   ;;  %s3838_s30 = sphi %s3906_s30, %s6319_s30   ;;  %s3834_s29 = sphi %s3904_s29, %s6318_s29   ;;  %s3830_s28 = sphi %s3902_s28, %s6317_s28   ;;  %s3826_s27 = sphi %s3900_s27, %s6316_s27  }
   0x6   : > { %s3925_s11 = sadd.s32 1, %s3838_s30   ;;  %s183_s12 = sadd.s32 1, %s3834_s29 }
   0x7   : > { %s180_s13 = ssub.s32 %s3838_s30, %s3925_s11  ;;  %p193_p0 = scmp.ne.s32.totalorder %s3834_s29, %s3830_s28 }
   0x8   : > { %p181_p1 = scmp.eq.s32.totalorder %s180_s13, 0  ;;  %p194_p2 = scmp.eq.s32.totalorder %s3921_s9, 1 }
   0x9   : > { %p199_p3 = scmp.ne.s32.totalorder %s3830_s28, %s3826_s27  ;;  %p200_p4 = scmp.eq.s32.totalorder %s3553_s10, 1 }
   0xa   : > { %s3936_s14 = scalar_select %p181_p1, %s3834_s29, %s183_s12  }
   0xb   : > { %p3938_p5 = por %p194_p2, %p193_p0  ;;  %p3942_p6 = por %p200_p4, %p199_p3 }
   0xc   : > { %p3554_p7 = scmp.ge.s32.totalorder %s3838_s30, 1  ;;  %p233_p8 = scmp.lt.s32.totalorder %s3838_s30, 3 }
   0xd   : > { %p3673_p9 = scmp.eq.s32.totalorder %s3921_s9, 0  ;;  %s245_s19 = sshll.u32 %s6276_s1, 4  ;;  %s246_s19 = int_to_ptr.vmem [resolvable:$true] %s245_s19 }
   0xe   : > { %p234_p10 = pnand %p3554_p7, %p233_p8  ;;  %s255_s22 = sshll.u32 %s6277_s2, 4  ;;  %s256_s22 = int_to_ptr.vmem [resolvable:$true] %s255_s22 }
   0xf   : > { %s3844_s23 = smov [#allocation4]   ;;  %s3845_s24 = smov [#allocation7]  }
  0x10   : > { %p3662_p11 = pneg %p234_p10 }
  0x11   : > { %288 = sbr.rel (%p234_p10) target bundleno = 1257 (0x4e9), region = 48 }
  0x12   : > { %p3663_p12 = pnand %p3673_p9, %p3662_p11 }
  0x14   : > { %3665 = dma.vmem_to_smem (!%p3663_p12), %s246_s19, 128, %s3844_s23, [#allocation6]  }
  0x15   : > { %3668 = dma.vmem_to_smem (!%p3663_p12), %s256_s22, 16, %s3845_s24, [#allocation8]  }
  0x16   : > { %3813 = dma.done.wait (%p3673_p9), [#allocation6], 128  }
  0x17   : > { %3815 = vsyncadd (%p3673_p9), [#allocation6], 4294967168 }
  0x18   : > { %3817 = dma.done.wait (%p3673_p9), [#allocation8], 16  }
  0x19   : > { %3819 = vsyncadd (%p3673_p9), [#allocation8], 4294967280 }
  0x1a   : > { %300 = sfence }
  0x1b   : > { %p334_p13 = scmp.lt.s32.totalorder %s3921_s9, 1  ;;  %s3846_s21 = smov 1   ;;  %vm424_vm0 = vcmask 7168   ;;  %vm441_vm1 = vcmask 138240   ;;  %vm474_vm2 = vcmask 1040384   ;;  %vm539_vm3 = vcmask 146432  }
  0x1c   : > { %s324_s22 = sand.u32 1, %s3830_s28   ;;  %vm542_vm4 = vcmask 140288   ;;  %vm565_vm5 = vcmask 130048  }
  0x1d   : > { %s335_s25 = scalar_select %p334_p13, %s3921_s9, 1 }
  0x1e   : > { %s4010_s23 = sshll.u32 %s324_s22, 4 }
  0x1f   : > { %s3649_s26 = sshll.u32 %s335_s25, 7  ;;  %s3650_s10 = sshll.u32 %s335_s25, 5 }
  0x20   : > { %s3970_s17 = scalar_lea.vmem %s6275_s0, %s3649_s26  ;;  %s3975_s20 = scalar_lea.vmem %s6283_s8, %s3650_s10 }
  0x21   : > { %v346_v0 = vld [vmem:[%s3970_s17 + $0x10] sm:$0xff]  ;;  %v344_v1 = vld [vmem:[%s3970_s17] sm:$0xff]  ;;  %v347_v3 = vld [vmem:[%s3970_s17 + $0x18] sm:$0xff]  ;;  %s4132_s24 = scalar_lea.vmem [#allocation9], %s4010_s23  ;;  %s4134_s25 = smov 0  }
  0x22   : > { %380 = vrot.lane.b32.xlu1 %v346_v0, %s3846_s21  ;;  %376 = vrot.lane.b32.xlu0 %v344_v1, %s3846_s21  ;;  %v348_v2 = vld [vmem:[%s3970_s17 + $0x20] sm:$0xff]  ;;  %v345_v4 = vld [vmem:[%s3970_s17 + $0x8] sm:$0xff] }
  0x23   : > { %384 = vrot.lane.b32.xlu2 %v348_v2, %s3846_s21  ;;  %v349_v5 = vld [vmem:[%s3970_s17 + $0x28] sm:$0xff]  ;;  %v351_v6 = vld [vmem:[%s3970_s17 + $0x38] sm:$0xff]  ;;  %v350_v7 = vld [vmem:[%s3970_s17 + $0x30] sm:$0xff] }
  0x24   : > { %v352_v8 = vld [vmem:[%s3970_s17 + $0x40] sm:$0xff]  ;;  %v354_v9 = vld [vmem:[%s3970_s17 + $0x50] sm:$0xff]  ;;  %v353_v10 = vld [vmem:[%s3970_s17 + $0x48] sm:$0xff] }
  0x25   : > { %v355_v11 = vld [vmem:[%s3970_s17 + $0x58] sm:$0xff]  ;;  %v357_v12 = vld [vmem:[%s3970_s17 + $0x68] sm:$0xff]  ;;  %v356_v13 = vld [vmem:[%s3970_s17 + $0x60] sm:$0xff] }
  0x26   : > { %v358_v14 = vld [vmem:[%s3970_s17 + $0x70] sm:$0xff]  ;;  %v359_v15 = vld [vmem:[%s3970_s17 + $0x78] sm:$0xff] }
  0x2a   : > { %382 = vrot.lane.b32.xlu1 %v347_v3, %s3846_s21  ;;  %378 = vrot.lane.b32.xlu0 %v345_v4, %s3846_s21 }
  0x2b   : > { %386 = vrot.lane.b32.xlu2 %v349_v5, %s3846_s21 }
  0x32   : > { %390 = vrot.lane.b32.xlu1 %v351_v6, %s3846_s21  ;;  %388 = vrot.lane.b32.xlu0 %v350_v7, %s3846_s21 }
  0x33   : > { %392 = vrot.lane.b32.xlu2 %v352_v8, %s3846_s21  ;;  %v3847_v8 = vmov 0.0  }
  0x34   : > { %566 = vst.msk [vmem:[#allocation3] sm:$0xff] %vm565_vm5, %v3847_v8 }
  0x35   : > { %567 = vst.msk [vmem:[#allocation3 + $0x8] sm:$0xff] %vm565_vm5, %v3847_v8 }
  0x36   : > { %568 = vst.msk [vmem:[#allocation3 + $0x10] sm:$0xff] %vm565_vm5, %v3847_v8 }
  0x37   : > { %569 = vst.msk [vmem:[#allocation3 + $0x18] sm:$0xff] %vm565_vm5, %v3847_v8 }
  0x38   : > { %570 = vst.msk [vmem:[#allocation3 + $0x20] sm:$0xff] %vm565_vm5, %v3847_v8 }
  0x39   : > { %571 = vst.msk [vmem:[#allocation3 + $0x28] sm:$0xff] %vm565_vm5, %v3847_v8 }
  0x3a   : > { %396 = vrot.lane.b32.xlu1 %v354_v9, %s3846_s21  ;;  %394 = vrot.lane.b32.xlu0 %v353_v10, %s3846_s21  ;;  %572 = vst.msk [vmem:[#allocation3 + $0x30] sm:$0xff] %vm565_vm5, %v3847_v8 }
  0x3b   : > { %398 = vrot.lane.b32.xlu2 %v355_v11, %s3846_s21  ;;  %573 = vst.msk [vmem:[#allocation3 + $0x38] sm:$0xff] %vm565_vm5, %v3847_v8 }
  0x3c   : > { %574 = vst.msk [vmem:[#allocation3 + $0x40] sm:$0xff] %vm565_vm5, %v3847_v8 }
  0x3d   : > { %575 = vst.msk [vmem:[#allocation3 + $0x48] sm:$0xff] %vm565_vm5, %v3847_v8 }
  0x3e   : > { %576 = vst.msk [vmem:[#allocation3 + $0x50] sm:$0xff] %vm565_vm5, %v3847_v8 }
  0x3f   : > { %577 = vst.msk [vmem:[#allocation3 + $0x58] sm:$0xff] %vm565_vm5, %v3847_v8 }
  0x40   : > { %578 = vst.msk [vmem:[#allocation3 + $0x60] sm:$0xff] %vm565_vm5, %v3847_v8 }
  0x41   : > { %579 = vst.msk [vmem:[#allocation3 + $0x68] sm:$0xff] %vm565_vm5, %v3847_v8 }
  0x42   : > { %402 = vrot.lane.b32.xlu1 %v357_v12, %s3846_s21  ;;  %400 = vrot.lane.b32.xlu0 %v356_v13, %s3846_s21  ;;  %580 = vst.msk [vmem:[#allocation3 + $0x70] sm:$0xff] %vm565_vm5, %v3847_v8 }
  0x43   : > { %404 = vrot.lane.b32.xlu2 %v358_v14, %s3846_s21  ;;  %581 = vst.msk [vmem:[#allocation3 + $0x78] sm:$0xff] %vm565_vm5, %v3847_v8 }
  0x4a   : > { %406 = vrot.lane.b32.xlu0 %v359_v15, %s3846_s21 }
  0x7d   : > { %v385_v16 = vpop.permute.xlu2 %384 }
  0x7e   : > { %v429_v17 = vsel %vm424_vm0, 0.0, %v385_v16 }
  0x7f   : > { %v446_v18 = vsel %vm441_vm1, %v429_v17, 0.0 }
  0x80   : > { %v481_v19 = vrot.slane %v446_v18, 7 }
  0x82   : > { %v525_v20 = vsel %vm474_vm2, 0.0, %v481_v19 }
  0x83   : > { %547 = vst.msk [vmem:[#allocation2 + $0x30] sm:$0xff] %vm539_vm3, %v525_v20 }
  0x85   : > { %v387_v21 = vpop.permute.xlu2 %386 }
  0x86   : > { %v430_v22 = vsel %vm424_vm0, 0.0, %v387_v21 }
  0x87   : > { %v447_v23 = vsel %vm441_vm1, %v430_v22, 0.0 }
  0x88   : > { %v482_v24 = vrot.slane %v447_v23, 7 }
  0x8a   : > { %v483_v25 = vsel %vm474_vm2, %v481_v19, %v482_v24  ;;  %v533_v26 = vsel %vm474_vm2, %v482_v24, 0.0 }
  0x8b   : > { %548 = vst.msk [vmem:[#allocation2 + $0x38] sm:$0xff] %vm539_vm3, %v483_v25 }
  0x8c   : > { %549 = vst.msk [vmem:[#allocation2 + $0x40] sm:$0x3] %vm542_vm4, %v533_v26 }
  0x8d   : > { %v393_v27 = vpop.permute.xlu2 %392 }
  0x8e   : > { %v433_v28 = vsel %vm424_vm0, 0.0, %v393_v27 }
  0x8f   : > { %v4026_v29 = vsel %vm441_vm1, %v433_v28, 0.0 }
  0x90   : > { %v487_v30 = vrot.slane %v4026_v29, 7 }
  0x92   : > { %v527_v31 = vsel %vm474_vm2, 0.0, %v487_v30 }
  0x93   : > { %553 = vst.msk [vmem:[#allocation2 + $0x60] sm:$0xff] %vm539_vm3, %v527_v31 }
  0x94   : > { %v381_v32 = vpop.permute.xlu1 %380  ;;  %v377_v33 = vpop.permute.xlu0 %376 }
  0x95   : > { %v427_v34 = vsel %vm424_vm0, 0.0, %v381_v32  ;;  %v425_v35 = vsel %vm424_vm0, 0.0, %v377_v33  ;;  %v399_v38 = vpop.permute.xlu2 %398 }
  0x96   : > { %v444_v36 = vsel %vm441_vm1, %v427_v34, 0.0  ;;  %v442_v37 = vsel %vm441_vm1, %v425_v35, 0.0  ;;  %v436_v41 = vsel %vm424_vm0, 0.0, %v399_v38 }
  0x97   : > { %v478_v39 = vrot.slane %v444_v36, 7  ;;  %v475_v40 = vrot.slane %v442_v37, 7  ;;  %v4039_v42 = vsel %vm441_vm1, %v436_v41, 0.0 }
  0x98   : > { %v491_v45 = vrot.slane %v4039_v42, 7 }
  0x99   : > { %v524_v43 = vsel %vm474_vm2, 0.0, %v478_v39  ;;  %v523_v44 = vsel %vm474_vm2, 0.0, %v475_v40 }
  0x9a   : > { %544 = vst.msk [vmem:[#allocation2 + $0x18] sm:$0xff] %vm539_vm3, %v524_v43  ;;  %v536_v46 = vsel %vm474_vm2, %v491_v45, 0.0 }
  0x9b   : > { %540 = vst.msk [vmem:[#allocation2] sm:$0xff] %vm539_vm3, %v523_v44 }
  0x9c   : > { %v383_v47 = vpop.permute.xlu1 %382  ;;  %v379_v48 = vpop.permute.xlu0 %378  ;;  %558 = vst.msk [vmem:[#allocation2 + $0x88] sm:$0x3] %vm542_vm4, %v536_v46 }
  0x9d   : > { %v428_v49 = vsel %vm424_vm0, 0.0, %v383_v47  ;;  %v426_v50 = vsel %vm424_vm0, 0.0, %v379_v48  ;;  %v405_v53 = vpop.permute.xlu2 %404 }
  0x9e   : > { %v445_v51 = vsel %vm441_vm1, %v428_v49, 0.0  ;;  %v443_v52 = vsel %vm441_vm1, %v426_v50, 0.0  ;;  %v439_v56 = vsel %vm424_vm0, 0.0, %v405_v53 }
  0x9f   : > { %v479_v54 = vrot.slane %v445_v51, 7  ;;  %v476_v55 = vrot.slane %v443_v52, 7  ;;  %v4056_v57 = vsel %vm441_vm1, %v439_v56, 0.0 }
  0xa0   : > { %v496_v62 = vrot.slane %v4056_v57, 7 }
  0xa1   : > { %v480_v58 = vsel %vm474_vm2, %v478_v39, %v479_v54  ;;  %v532_v59 = vsel %vm474_vm2, %v479_v54, 0.0  ;;  %v477_v60 = vsel %vm474_vm2, %v475_v40, %v476_v55  ;;  %v531_v61 = vsel %vm474_vm2, %v476_v55, 0.0 }
  0xa2   : > { %545 = vst.msk [vmem:[#allocation2 + $0x20] sm:$0xff] %vm539_vm3, %v480_v58  ;;  %v530_v1 = vsel %vm474_vm2, 0.0, %v496_v62 }
  0xa3   : > { %546 = vst.msk [vmem:[#allocation2 + $0x28] sm:$0x3] %vm542_vm4, %v532_v59 }
  0xa4   : > { %541 = vst.msk [vmem:[#allocation2 + $0x8] sm:$0xff] %vm539_vm3, %v477_v60  ;;  %v391_v63 = vpop.permute.xlu1 %390  ;;  %v389_v0 = vpop.permute.xlu0 %388 }
  0xa5   : > { %543 = vst.msk [vmem:[#allocation2 + $0x10] sm:$0x3] %vm542_vm4, %v531_v61  ;;  %v432_v2 = vsel %vm424_vm0, 0.0, %v391_v63  ;;  %v431_v3 = vsel %vm424_vm0, 0.0, %v389_v0 }
  0xa6   : > { %v449_v4 = vsel %vm441_vm1, %v432_v2, 0.0  ;;  %v448_v5 = vsel %vm441_vm1, %v431_v3, 0.0  ;;  %562 = vst.msk [vmem:[#allocation2 + $0xa8] sm:$0xff] %vm539_vm3, %v530_v1 }
  0xa7   : > { %v485_v6 = vrot.slane %v449_v4, 7  ;;  %v484_v7 = vrot.slane %v448_v5, 7 }
  0xa9   : > { %v534_v9 = vsel %vm474_vm2, %v485_v6, 0.0  ;;  %v486_v10 = vsel %vm474_vm2, %v484_v7, %v485_v6  ;;  %v526_v11 = vsel %vm474_vm2, 0.0, %v484_v7 }
  0xaa   : > { %552 = vst.msk [vmem:[#allocation2 + $0x58] sm:$0x3] %vm542_vm4, %v534_v9 }
  0xab   : > { %550 = vst.msk [vmem:[#allocation2 + $0x48] sm:$0xff] %vm539_vm3, %v526_v11 }
  0xac   : > { %551 = vst.msk [vmem:[#allocation2 + $0x50] sm:$0xff] %vm539_vm3, %v486_v10  ;;  %v397_v12 = vpop.permute.xlu1 %396  ;;  %v395_v13 = vpop.permute.xlu0 %394 }
  0xad   : > { %v435_v14 = vsel %vm424_vm0, 0.0, %v397_v12  ;;  %v434_v15 = vsel %vm424_vm0, 0.0, %v395_v13 }
  0xae   : > { %v452_v16 = vsel %vm441_vm1, %v435_v14, 0.0  ;;  %v451_v17 = vsel %vm441_vm1, %v434_v15, 0.0 }
  0xaf   : > { %v490_v18 = vrot.slane %v452_v16, 7  ;;  %v488_v19 = vrot.slane %v451_v17, 7 }
  0xb1   : > { %v528_v20 = vsel %vm474_vm2, 0.0, %v490_v18  ;;  %v489_v21 = vsel %vm474_vm2, %v487_v30, %v488_v19  ;;  %v535_v22 = vsel %vm474_vm2, %v488_v19, 0.0  ;;  %v492_v23 = vsel %vm474_vm2, %v490_v18, %v491_v45 }
  0xb2   : > { %556 = vst.msk [vmem:[#allocation2 + $0x78] sm:$0xff] %vm539_vm3, %v528_v20 }
  0xb3   : > { %554 = vst.msk [vmem:[#allocation2 + $0x68] sm:$0xff] %vm539_vm3, %v489_v21 }
  0xb4   : > { %555 = vst.msk [vmem:[#allocation2 + $0x70] sm:$0x3] %vm542_vm4, %v535_v22  ;;  %v403_v24 = vpop.permute.xlu1 %402  ;;  %v401_v25 = vpop.permute.xlu0 %400 }
  0xb5   : > { %557 = vst.msk [vmem:[#allocation2 + $0x80] sm:$0xff] %vm539_vm3, %v492_v23  ;;  %v438_v26 = vsel %vm424_vm0, 0.0, %v403_v24  ;;  %v437_v27 = vsel %vm424_vm0, 0.0, %v401_v25 }
  0xb6   : > { %v455_v28 = vsel %vm441_vm1, %v438_v26, 0.0  ;;  %v454_v29 = vsel %vm441_vm1, %v437_v27, 0.0 }
  0xb7   : > { %v494_v30 = vrot.slane %v455_v28, 7  ;;  %v493_v31 = vrot.slane %v454_v29, 7 }
  0xb9   : > { %v537_v32 = vsel %vm474_vm2, %v494_v30, 0.0  ;;  %v495_v33 = vsel %vm474_vm2, %v493_v31, %v494_v30  ;;  %v529_v34 = vsel %vm474_vm2, 0.0, %v493_v31 }
  0xba   : > { %561 = vst.msk [vmem:[#allocation2 + $0xa0] sm:$0x3] %vm542_vm4, %v537_v32 }
  0xbb   : > { %559 = vst.msk [vmem:[#allocation2 + $0x90] sm:$0xff] %vm539_vm3, %v529_v34 }
  0xbc   : > { %560 = vst.msk [vmem:[#allocation2 + $0x98] sm:$0xff] %vm539_vm3, %v495_v33  ;;  %v407_v35 = vpop.permute.xlu0 %406 }
  0xbd   : > { %v440_v36 = vsel %vm424_vm0, 0.0, %v407_v35 }
  0xbe   : > { %v457_v37 = vsel %vm441_vm1, %v440_v36, 0.0 }
  0xbf   : > { %v497_v38 = vrot.slane %v457_v37, 7 }
  0xc1   : > { %v498_v39 = vsel %vm474_vm2, %v496_v62, %v497_v38  ;;  %v538_v40 = vsel %vm474_vm2, %v497_v38, 0.0 }
  0xc2   : > { %563 = vst.msk [vmem:[#allocation2 + $0xb0] sm:$0xff] %vm539_vm3, %v498_v39 }
  0xc3   : > { %564 = vst.msk [vmem:[#allocation2 + $0xb8] sm:$0x3] %vm542_vm4, %v538_v40 }
  0xc4 LB: >> { %s3567_s26 = sld [smem:[#allocation4 + $0x2]]  ;;  %s588_s10 = smul.u32 24, %s3842_s25  ;;  %vm633_vm6 = vcmask 1046528   ;;  %vm693_vm7 = vcmask 1045504   ;;  %s3842_s25 = sphi %s4134_s25, %s587_s25  }
  0xc5   : >> { %s3566_s12 = sld [smem:[#allocation4 + $0x1]]  ;;  %s3848_s19 = smov 126  }
  0xc6   : >> { %s3569_s13 = sld [smem:[#allocation4 + $0x4]]  ;;  %s4140_s18 = scalar_lea.vmem [#allocation2], %s588_s10 }
  0xc7   : >> { %s3570_s17 = sld [smem:[#allocation4 + $0x5]]  ;;  %s3849_s23 = smov 127  }
  0xc8   : >> { %s3573_s21 = sld [smem:[#allocation4 + $0x8]]  ;;  %s587_s25 = sadd.s32 1, %s3842_s25  }
  0xc9   : >> { %s3575_s10 = sld [smem:[#allocation4 + $0x81]]  ;;  %p584_p0 = scmp.ge.s32.totalorder %s587_s25, 8  }
  0xca   : >> { %v4143_v41 = vld [vmem:[%s4140_s18] sm:$0xff]  ;;  %v612_v42 = vstv %s3567_s26  ;;  %v4147_v45 = vld [vmem:[%s4140_s18 + $0x8] sm:$0xff]  ;;  %v4155_v50 = vld [vmem:[%s4140_s18 + $0x10] sm:$0x3]  ;;  %s3572_s26 = sld [smem:[#allocation4 + $0x7]]  ;;  %vm2382_vm8 = vcmask (%p584_p0), 130112  }
  0xcb   : >> { %v613_v43 = vmul.f32 %v612_v42, %v4143_v41  ;;  %v598_v44 = vstv %s3566_s12  ;;  %v614_v55 = vmul.f32 %v612_v42, %v4147_v45  ;;  %s3578_s12 = sld [smem:[#allocation4 + $0x84]]  ;;  %vm2060_vm9 = vcmask (%p584_p0), 1041409   ;;  %s3850_s25 = smov (%p584_p0), 16  }
  0xcc   : >> { %v599_v46 = vmul.f32 %v598_v44, %v4143_v41  ;;  %v644_v47 = vstv %s3569_s13  ;;  %v600_v59 = vmul.f32 %v598_v44, %v4147_v45  ;;  %s3576_s13 = sld [smem:[#allocation4 + $0x82]]  ;;  %vm2062_vm10 = vcmask (%p584_p0), 1042434  }
  0xcd   : >> { %617 = vrot.lane.b32.xlu1 %v613_v43, %s3848_s19  ;;  %v645_v48 = vmul.f32 %v644_v47, %v4143_v41  ;;  %v646_v49 = vmul.f32 %v644_v47, %v4147_v45  ;;  %v665_v51 = vstv %s3570_s17  ;;  %v647_v54 = vmul.f32 %v644_v47, %v4155_v50  ;;  %s3579_s17 = sld [smem:[#allocation4 + $0x85]] }
  0xce   : >> { %603 = vrot.lane.b32.xlu0 %v599_v46, %s3849_s23  ;;  %v667_v57 = vmul.f32 %v665_v51, %v4147_v45  ;;  %v668_v58 = vmul.f32 %v665_v51, %v4155_v50  ;;  %v666_v60 = vmul.f32 %v665_v51, %v4143_v41  ;;  %v725_v0 = vstv %s3573_s21  ;;  %s3582_s21 = sld [smem:[#allocation4 + $0x88]] }
  0xcf   : >> { %v651_v52 = vrot.slane %v645_v48, 1  ;;  %v652_v53 = vrot.slane %v646_v49, 1  ;;  %v654_v61 = vrot.slane %v647_v54, 1  ;;  %v726_v6 = vmul.f32 %v725_v0, %v4143_v41 }
  0xd0   : >> { %v673_v62 = vrot.slane %v667_v57, 1  ;;  %v675_v63 = vrot.slane %v668_v58, 1  ;;  %v704_v1 = vstv %s3572_s26  ;;  %v672_v2 = vrot.slane %v666_v60, 1  ;;  %s3581_s26 = sld [smem:[#allocation4 + $0x87]] }
  0xd1   : >> { %v653_v56 = vsel %vm633_vm6, %v651_v52, %v652_v53  ;;  %v655_v3 = vsel %vm633_vm6, %v652_v53, %v654_v61  ;;  %v705_v4 = vmul.f32 %v704_v1, %v4143_v41  ;;  %v727_v7 = vmul.f32 %v725_v0, %v4147_v45 }
  0xd2   : >> { %656 = vrot.lane.b32.xlu2 %v653_v56, %s3849_s23  ;;  %v676_v5 = vsel %vm633_vm6, %v673_v62, %v675_v63  ;;  %v706_v8 = vmul.f32 %v704_v1, %v4147_v45  ;;  %v674_v9 = vsel %vm633_vm6, %v672_v2, %v673_v62  ;;  %v707_v10 = vmul.f32 %v704_v1, %v4155_v50 }
  0xd3   : >> { %v711_v11 = vrot.slane %v705_v4, 2  ;;  %v732_v12 = vrot.slane %v726_v6, 2  ;;  %v733_v13 = vrot.slane %v727_v7, 2  ;;  %v728_v17 = vmul.f32 %v725_v0, %v4155_v50 }
  0xd4   : >> { %v712_v14 = vrot.slane %v706_v8, 2  ;;  %v714_v15 = vrot.slane %v707_v10, 2  ;;  %v762_v21 = vstv %s3575_s10  ;;  %v807_v22 = vstv %s3578_s12  ;;  %s3585_s10 = sld [smem:[#allocation4 + $0x101]] }
  0xd5   : >> { %619 = vrot.lane.b32.xlu1 %v614_v55, %s3848_s19  ;;  %v734_v18 = vsel %vm693_vm7, %v732_v12, %v733_v13  ;;  %v735_v20 = vrot.slane %v728_v17, 2  ;;  %v764_v24 = vmul.f32 %v762_v21, %v4147_v45  ;;  %v808_v25 = vmul.f32 %v807_v22, %v4143_v41  ;;  %s3588_s12 = sld [smem:[#allocation4 + $0x104]] }
  0xd6   : >> { %605 = vrot.lane.b32.xlu0 %v600_v59, %s3849_s23  ;;  %v713_v16 = vsel %vm693_vm7, %v711_v11, %v712_v14  ;;  %v715_v19 = vsel %vm693_vm7, %v712_v14, %v714_v15  ;;  %v809_v26 = vmul.f32 %v807_v22, %v4147_v45  ;;  %v763_v27 = vmul.f32 %v762_v21, %v4143_v41 }
  0xd7   : >> { %v736_v23 = vsel %vm693_vm7, %v733_v13, %v735_v20  ;;  %v814_v28 = vrot.slane %v808_v25, 1  ;;  %v776_v30 = vstv %s3576_s13  ;;  %v828_v32 = vstv %s3579_s17  ;;  %s3586_s13 = sld [smem:[#allocation4 + $0x102]] }
  0xd8   : >> { %v815_v29 = vrot.slane %v809_v26, 1  ;;  %v777_v31 = vmul.f32 %v776_v30, %v4143_v41  ;;  %v810_v33 = vmul.f32 %v807_v22, %v4155_v50  ;;  %v830_v35 = vmul.f32 %v828_v32, %v4147_v45  ;;  %s3589_s17 = sld [smem:[#allocation4 + $0x105]] }
  0xd9   : >> { %v831_v36 = vmul.f32 %v828_v32, %v4155_v50  ;;  %v778_v37 = vmul.f32 %v776_v30, %v4147_v45  ;;  %v829_v38 = vmul.f32 %v828_v32, %v4143_v41  ;;  %v887_v43 = vstv %s3582_s21  ;;  %s3592_s21 = sld [smem:[#allocation4 + $0x108]] }
  0xda   : >> { %658 = vrot.lane.b32.xlu2 %v655_v3, %s3849_s23  ;;  %v816_v34 = vsel %vm633_vm6, %v814_v28, %v815_v29  ;;  %v817_v39 = vrot.slane %v810_v33, 1  ;;  %v836_v40 = vrot.slane %v830_v35, 1  ;;  %v866_v44 = vstv %s3581_s26  ;;  %s3591_s26 = sld [smem:[#allocation4 + $0x107]] }
  0xdb   : >> { %v838_v42 = vrot.slane %v831_v36, 1  ;;  %v835_v46 = vrot.slane %v829_v38, 1  ;;  %v867_v48 = vmul.f32 %v866_v44, %v4143_v41  ;;  %v888_v51 = vmul.f32 %v887_v43, %v4143_v41 }
  0xdc   : >> { %v818_v47 = vsel %vm633_vm6, %v815_v29, %v817_v39  ;;  %v889_v52 = vmul.f32 %v887_v43, %v4147_v45  ;;  %v868_v53 = vmul.f32 %v866_v44, %v4147_v45  ;;  %v869_v55 = vmul.f32 %v866_v44, %v4155_v50 }
  0xdd   : >> { %679 = vrot.lane.b32.xlu1 %v676_v5, %s3848_s19  ;;  %v839_v49 = vsel %vm633_vm6, %v836_v40, %v838_v42  ;;  %v837_v54 = vsel %vm633_vm6, %v835_v46, %v836_v40  ;;  %v873_v56 = vrot.slane %v867_v48, 2  ;;  %v894_v57 = vrot.slane %v888_v51, 2 }
  0xde   : >> { %677 = vrot.lane.b32.xlu0 %v674_v9, %s3848_s19  ;;  %v895_v58 = vrot.slane %v889_v52, 2  ;;  %v874_v59 = vrot.slane %v868_v53, 2  ;;  %v876_v60 = vrot.slane %v869_v55, 2  ;;  %v890_v62 = vmul.f32 %v887_v43, %v4155_v50 }
  0xdf   : >> { %v925_v2 = vstv %s3585_s10  ;;  %v970_v3 = vstv %s3588_s12  ;;  %v939_v11 = vstv %s3586_s13  ;;  %v991_v13 = vstv %s3589_s17  ;;  %s3595_s10 = sld [smem:[#allocation4 + $0x181]] }
  0xe0   : >> { %v875_v61 = vsel %vm693_vm7, %v873_v56, %v874_v59  ;;  %v896_v63 = vsel %vm693_vm7, %v894_v57, %v895_v58  ;;  %v877_v0 = vsel %vm693_vm7, %v874_v59, %v876_v60  ;;  %v897_v1 = vrot.slane %v890_v62, 2  ;;  %s3598_s12 = sld [smem:[#allocation4 + $0x184]] }
  0xe1   : >> { %v927_v5 = vmul.f32 %v925_v2, %v4147_v45  ;;  %v971_v6 = vmul.f32 %v970_v3, %v4143_v41  ;;  %v972_v7 = vmul.f32 %v970_v3, %v4147_v45  ;;  %v926_v8 = vmul.f32 %v925_v2, %v4143_v41  ;;  %s3596_s13 = sld [smem:[#allocation4 + $0x182]] }
  0xe2   : >> { %716 = vrot.lane.b32.xlu2 %v713_v16, %s3849_s23  ;;  %v898_v4 = vsel %vm693_vm7, %v895_v58, %v897_v1  ;;  %v940_v12 = vmul.f32 %v939_v11, %v4143_v41  ;;  %v973_v14 = vmul.f32 %v970_v3, %v4155_v50  ;;  %v993_v16 = vmul.f32 %v991_v13, %v4147_v45  ;;  %s3599_s17 = sld [smem:[#allocation4 + $0x185]] }
  0xe3   : >> { %v977_v9 = vrot.slane %v971_v6, 1  ;;  %v978_v10 = vrot.slane %v972_v7, 1  ;;  %v994_v17 = vmul.f32 %v991_v13, %v4155_v50  ;;  %vm2064_vm11 = vcmask (%p584_p0), 1043459  }
  0xe4   : >> { %v980_v20 = vrot.slane %v973_v14, 1  ;;  %v999_v21 = vrot.slane %v993_v16, 1  ;;  %vm2066_vm12 = vcmask (%p584_p0), 1044484   ;;  %vm2068_vm13 = vcmask (%p584_p0), 1045509  }
  0xe5   : >> { %737 = vrot.lane.b32.xlu1 %v734_v18, %s3848_s19  ;;  %v979_v15 = vsel %vm633_vm6, %v977_v9, %v978_v10  ;;  %v941_v18 = vmul.f32 %v939_v11, %v4147_v45  ;;  %v1001_v22 = vrot.slane %v994_v17, 1  ;;  %v1088_v46 = vstv %s3595_s10  ;;  %s4275_s10 = sld [smem:[#allocation4]] }
  0xe6   : >> { %718 = vrot.lane.b32.xlu0 %v715_v19, %s3849_s23  ;;  %v992_v19 = vmul.f32 %v991_v13, %v4143_v41  ;;  %v981_v26 = vsel %vm633_vm6, %v978_v10, %v980_v20  ;;  %v1089_v53 = vmul.f32 %v1088_v46, %v4143_v41  ;;  %vm2070_vm14 = vcmask (%p584_p0), 1046534  }
  0xe7   : >> { %v1002_v28 = vsel %vm633_vm6, %v999_v21, %v1001_v22  ;;  %v1102_v57 = vstv %s3596_s13  ;;  %s4291_s13 = sld [smem:[#allocation4 + $0x201]]  ;;  %vm2072_vm15 = vcmask (%p584_p0), 1047559   ;;  %vm2075_vm1 = vcmask (%p584_p0), 15360  }
  0xe8   : >> { %v998_v25 = vrot.slane %v992_v19, 1  ;;  %v1103_v58 = vmul.f32 %v1102_v57, %v4143_v41  ;;  %v1154_v59 = vstv %s3599_s17  ;;  %s3571_s17 = sld [smem:[#allocation4 + $0x6]]  ;;  %vm2180_vm2 = vcmask (%p584_p0), 64560  }
  0xe9   : >> { %v1156_v62 = vmul.f32 %v1154_v59, %v4147_v45  ;;  %v1155_v1 = vmul.f32 %v1154_v59, %v4143_v41  ;;  %vm2128_vm3 = vcmask (%p584_p0), 31760   ;;  %vm2154_vm4 = vcmask (%p584_p0), 48160  }
  0xea   : >> { %739 = vrot.lane.b32.xlu2 %v736_v23, %s3848_s19  ;;  %v1050_v23 = vstv %s3592_s21  ;;  %v1000_v32 = vsel %vm633_vm6, %v998_v25, %v999_v21  ;;  %s3602_s21 = sld [smem:[#allocation4 + $0x188]] }
  0xeb   : >> { %v1051_v29 = vmul.f32 %v1050_v23, %v4143_v41  ;;  %v1052_v30 = vmul.f32 %v1050_v23, %v4147_v45  ;;  %v1053_v40 = vmul.f32 %v1050_v23, %v4155_v50  ;;  %v1161_v6 = vrot.slane %v1155_v1, 1 }
  0xec   : >> { %v594_v16 = vstv %s4275_s10  ;;  %s3609_s10 = sld [smem:[#allocation4 + $0x205]] }
  0xed   : >> { %769 = vrot.lane.b32.xlu1 %v764_v24, %s3849_s23  ;;  %v1029_v24 = vstv %s3591_s26  ;;  %v1057_v35 = vrot.slane %v1051_v29, 2  ;;  %v1058_v36 = vrot.slane %v1052_v30, 2  ;;  %v1060_v44 = vrot.slane %v1053_v40, 2  ;;  %s3601_s26 = sld [smem:[#allocation4 + $0x187]] }
  0xee   : >> { %767 = vrot.lane.b32.xlu0 %v763_v27, %s3849_s23  ;;  %v1030_v27 = vmul.f32 %v1029_v24, %v4143_v41  ;;  %v1032_v33 = vmul.f32 %v1029_v24, %v4155_v50  ;;  %v595_v25 = vmul.f32 %v594_v16, %v4143_v41  ;;  %v596_v40 = vmul.f32 %v594_v16, %v4147_v45 }
  0xef   : >> { %v1059_v42 = vsel %vm693_vm7, %v1057_v35, %v1058_v36  ;;  %v1061_v48 = vsel %vm693_vm7, %v1058_v36, %v1060_v44 }
  0xf0   : >> { %v1039_v38 = vrot.slane %v1032_v33, 2  ;;  %v1213_v7 = vstv %s3602_s21  ;;  %s3608_s21 = sld [smem:[#allocation4 + $0x204]] }
  0xf1   : >> { %v1215_v13 = vmul.f32 %v1213_v7, %v4147_v45  ;;  %v1216_v30 = vmul.f32 %v1213_v7, %v4155_v50 }
  0xf2   : >> { %781 = vrot.lane.b32.xlu2 %v777_v31, %s3848_s19  ;;  %v1031_v31 = vmul.f32 %v1029_v24, %v4147_v45 }
  0xf3   : >> { %v1221_v22 = vrot.slane %v1215_v13, 2 }
  0xf5   : >> { %819 = vrot.lane.b32.xlu1 %v816_v34, %s3849_s23  ;;  %v1036_v34 = vrot.slane %v1030_v27, 2 }
  0xf6   : >> { %783 = vrot.lane.b32.xlu0 %v778_v37, %s3848_s19  ;;  %v1037_v37 = vrot.slane %v1031_v31, 2  ;;  %v1296_v44 = vstv %s3608_s21  ;;  %s4348_s21 = sld [smem:[#allocation4 + $0x80]] }
  0xf8   : >> { %v1038_v39 = vsel %vm693_vm7, %v1036_v34, %v1037_v37  ;;  %v1040_v43 = vsel %vm693_vm7, %v1037_v37, %v1039_v38  ;;  %v1223_v38 = vrot.slane %v1216_v30, 2 }
  0xfa   : >> { %821 = vrot.lane.b32.xlu2 %v818_v47, %s3849_s23  ;;  %v1133_v47 = vstv %s3598_s12  ;;  %s3568_s12 = sld [smem:[#allocation4 + $0x3]] }
  0xfb   : >> { %v1134_v51 = vmul.f32 %v1133_v47, %v4143_v41  ;;  %v1135_v52 = vmul.f32 %v1133_v47, %v4147_v45  ;;  %v1136_v60 = vmul.f32 %v1133_v47, %v4155_v50 }
  0xfd   : >> { %842 = vrot.lane.b32.xlu1 %v839_v49, %s3848_s19  ;;  %v1090_v49 = vmul.f32 %v1088_v46, %v4147_v45  ;;  %v1140_v55 = vrot.slane %v1134_v51, 1  ;;  %v1141_v56 = vrot.slane %v1135_v52, 1  ;;  %v1143_v2 = vrot.slane %v1136_v60, 1 }
  0xfe   : >> { %840 = vrot.lane.b32.xlu0 %v837_v54, %s3848_s19  ;;  %v1224_v51 = vsel %vm693_vm7, %v1221_v22, %v1223_v38 }
  0xff   : >> { %v1144_v9 = vsel %vm633_vm6, %v1141_v56, %v1143_v2 }
 0x100   : >> { %v626_v19 = vstv %s3568_s12  ;;  %s4327_s12 = sld [smem:[#allocation7]] }
 0x101   : >> { %v627_v29 = vmul.f32 %v626_v19, %v4143_v41  ;;  %v629_v33 = vmul.f32 %v626_v19, %v4155_v50 }
 0x102   : >> { %878 = vrot.lane.b32.xlu2 %v875_v61, %s3849_s23  ;;  %v1142_v61 = vsel %vm633_vm6, %v1140_v55, %v1141_v56 }
 0x103   : >> { %v634_v37 = vrot.slane %v627_v29, 1  ;;  %v637_v47 = vrot.slane %v629_v33, 1 }
 0x105   : >> { %899 = vrot.lane.b32.xlu1 %v896_v63, %s3848_s19  ;;  %v1157_v63 = vmul.f32 %v1154_v59, %v4155_v50  ;;  %v1298_v59 = vmul.f32 %v1296_v44, %v4147_v45 }
 0x106   : >> { %880 = vrot.lane.b32.xlu0 %v877_v0, %s3849_s23  ;;  %v1104_v0 = vmul.f32 %v1102_v57, %v4147_v45  ;;  %v1297_v57 = vmul.f32 %v1296_v44, %v4143_v41 }
 0x10a   : >> { %901 = vrot.lane.b32.xlu2 %v898_v4, %s3848_s19  ;;  %v1162_v4 = vrot.slane %v1156_v62, 1 }
 0x10d   : >> { %932 = vrot.lane.b32.xlu1 %v927_v5, %s3849_s23  ;;  %v1164_v5 = vrot.slane %v1157_v63, 1 }
 0x10e   : >> { %930 = vrot.lane.b32.xlu0 %v926_v8, %s3849_s23  ;;  %v1192_v8 = vstv %s3601_s26  ;;  %s4309_s26 = sld [smem:[#allocation4 + $0x202]] }
 0x10f   : >> { %v1193_v10 = vmul.f32 %v1192_v8, %v4143_v41  ;;  %v1165_v11 = vsel %vm633_vm6, %v1162_v4, %v1164_v5  ;;  %v1194_v14 = vmul.f32 %v1192_v8, %v4147_v45  ;;  %v1195_v17 = vmul.f32 %v1192_v8, %v4155_v50 }
 0x111   : >> { %v1200_v23 = vrot.slane %v1194_v14, 2  ;;  %v1202_v27 = vrot.slane %v1195_v17, 2  ;;  %v1299_v14 = vmul.f32 %v1296_v44, %v4155_v50 }
 0x112   : >> { %944 = vrot.lane.b32.xlu2 %v940_v12, %s3848_s19  ;;  %v1214_v12 = vmul.f32 %v1213_v7, %v4143_v41  ;;  %v1304_v7 = vrot.slane %v1298_v59, 1 }
 0x113   : >> { %v1203_v36 = vsel %vm693_vm7, %v1200_v23, %v1202_v27 }
 0x114   : >> { %v1220_v21 = vrot.slane %v1214_v12, 2  ;;  %v1265_v8 = vstv %s4309_s26  ;;  %s4352_s26 = sld [smem:[#allocation4 + $0x83]] }
 0x115   : >> { %982 = vrot.lane.b32.xlu1 %v979_v15, %s3849_s23  ;;  %v1163_v15 = vsel %vm633_vm6, %v1161_v6, %v1162_v4  ;;  %v1303_v4 = vrot.slane %v1297_v57, 1 }
 0x116   : >> { %946 = vrot.lane.b32.xlu0 %v941_v18, %s3848_s19  ;;  %v1199_v18 = vrot.slane %v1193_v10, 2 }
 0x11a   : >> { %984 = vrot.lane.b32.xlu2 %v981_v26, %s3849_s23  ;;  %v628_v26 = vmul.f32 %v626_v19, %v4147_v45 }
 0x11c   : >> { %v635_v34 = vrot.slane %v628_v26, 1 }
 0x11d   : >> { %1005 = vrot.lane.b32.xlu1 %v1002_v28, %s3848_s19  ;;  %v1201_v28 = vsel %vm693_vm7, %v1199_v18, %v1200_v23  ;;  %v1267_v23 = vmul.f32 %v1265_v8, %v4147_v45 }
 0x11e   : >> { %1003 = vrot.lane.b32.xlu0 %v1000_v32, %s3848_s19  ;;  %v1222_v32 = vsel %vm693_vm7, %v1220_v21, %v1221_v22  ;;  %v1305_v22 = vsel %vm633_vm6, %v1303_v4, %v1304_v7 }
 0x122   : >> { %1041 = vrot.lane.b32.xlu2 %v1038_v39, %s3849_s23 }
 0x125   : >> { %1062 = vrot.lane.b32.xlu1 %v1059_v42, %s3848_s19  ;;  %v1251_v42 = vstv %s4291_s13  ;;  %s3612_s13 = sld [smem:[#allocation4 + $0x208]] }
 0x126   : >> { %1043 = vrot.lane.b32.xlu0 %v1040_v43, %s3849_s23  ;;  %v686_v43 = vstv %s3571_s17  ;;  %v1252_v60 = vmul.f32 %v1251_v42, %v4143_v41  ;;  %s3611_s17 = sld [smem:[#allocation4 + $0x207]] }
 0x127   : >> { %v687_v55 = vmul.f32 %v686_v43, %v4143_v41  ;;  %v688_v56 = vmul.f32 %v686_v43, %v4147_v45  ;;  %v689_v5 = vmul.f32 %v686_v43, %v4155_v50 }
 0x129   : >> { %v695_v1 = vrot.slane %v688_v56, 2  ;;  %v697_v17 = vrot.slane %v689_v5, 2 }
 0x12a   : >> { %1064 = vrot.lane.b32.xlu2 %v1061_v48, %s3848_s19 }
 0x12b   : >> { %v698_v26 = vsel %vm693_vm7, %v695_v1, %v697_v17 }
 0x12c   : >> { %v4264_v54 = vpop.permute.xlu2 %656 }
 0x12d   : >> { %1095 = vrot.lane.b32.xlu1 %v1090_v49, %s3849_s23  ;;  %v636_v49 = vsel %vm633_vm6, %v634_v37, %v635_v34 }
 0x12e   : >> { %1093 = vrot.lane.b32.xlu0 %v1089_v53, %s3849_s23  ;;  %v1253_v53 = vmul.f32 %v1251_v42, %v4147_v45 }
 0x132   : >> { %1107 = vrot.lane.b32.xlu2 %v1103_v58, %s3848_s19 }
 0x134   : >> { %v4278_v3 = vpop.permute.xlu2 %658 }
 0x135   : >> { %1145 = vrot.lane.b32.xlu1 %v1142_v61, %s3849_s23  ;;  %v638_v61 = vsel %vm633_vm6, %v635_v34, %v637_v47 }
 0x136   : >> { %1109 = vrot.lane.b32.xlu0 %v1104_v0, %s3848_s19  ;;  %v694_v0 = vrot.slane %v687_v55, 2 }
 0x13a   : >> { %1147 = vrot.lane.b32.xlu2 %v1144_v9, %s3849_s23  ;;  %v1317_v9 = vstv %s3609_s10  ;;  %s4364_s10 = sld [smem:[#allocation4 + $0x281]] }
 0x13b   : >> { %v1319_v18 = vmul.f32 %v1317_v9, %v4147_v45  ;;  %v1320_v19 = vmul.f32 %v1317_v9, %v4155_v50 }
 0x13c   : >> { %v4294_v20 = vpop.permute.xlu2 %716 }
 0x13d   : >> { %1168 = vrot.lane.b32.xlu1 %v1165_v11, %s3848_s19  ;;  %v1266_v11 = vmul.f32 %v1265_v8, %v4143_v41  ;;  %v1327_v29 = vrot.slane %v1320_v19, 1 }
 0x13e   : >> { %1166 = vrot.lane.b32.xlu0 %v1163_v15, %s3848_s19  ;;  %v696_v15 = vsel %vm693_vm7, %v694_v0, %v695_v1  ;;  %v790_v1 = vstv %s4352_s26  ;;  %s4411_s26 = sld [smem:[#allocation7 + $0x1]] }
 0x13f   : >> { %v618_v24 = vpop.permute.xlu1 %617 }
 0x140   : >> { %v604_v31 = vpop.permute.xlu0 %603  ;;  %v1414_v19 = vstv %s4364_s10  ;;  %s3622_s10 = sld [smem:[#allocation4 + $0x288]] }
 0x141   : >> { %v609_v35 = vadd.f32 %v604_v31, %v595_v25  ;;  %v1306_v25 = vrot.slane %v1299_v14, 1  ;;  %v1376_v31 = vstv %s3612_s13  ;;  %s3618_s13 = sld [smem:[#allocation4 + $0x284]]  ;;  %v793_v14 = vmul.f32 %v790_v1, %v4155_v50 }
 0x142   : >> { %1204 = vrot.lane.b32.xlu2 %v1201_v28, %s3849_s23  ;;  %v1325_v28 = vrot.slane %v1319_v18, 1  ;;  %v1377_v43 = vmul.f32 %v1376_v31, %v4143_v41  ;;  %v1378_v47 = vmul.f32 %v1376_v31, %v4147_v45 }
 0x143   : >> { %v623_v48 = vadd.f32 %v618_v24, %v609_v35  ;;  %v1355_v35 = vstv %s3611_s17  ;;  %v1307_v38 = vsel %vm633_vm6, %v1304_v7, %v1306_v25  ;;  %v1379_v7 = vmul.f32 %v1376_v31, %v4155_v50  ;;  %s4390_s17 = sld [smem:[#allocation4 + $0x282]] }
 0x144   : >> { %v4307_v39 = vpop.permute.xlu2 %739  ;;  %v1358_v55 = vmul.f32 %v1355_v35, %v4155_v50  ;;  %v800_v25 = vrot.slane %v793_v14, 1 }
 0x145   : >> { %1225 = vrot.lane.b32.xlu1 %v1222_v32, %s3848_s19  ;;  %v641_v63 = vadd.f32 %v636_v49, %v623_v48  ;;  %v746_v32 = vstv %s4327_s12  ;;  %v1357_v48 = vmul.f32 %v1355_v35, %v4147_v45  ;;  %v751_v49 = vld [vmem:[#allocation3] sm:$0xff]  ;;  %s4369_s12 = sld [smem:[#allocation4 + $0x86]]  ;;  %v1386_v17 = vrot.slane %v1379_v7, 2 }
 0x146   : >> { %1206 = vrot.lane.b32.xlu0 %v1203_v36, %s3849_s23  ;;  %v1365_v5 = vrot.slane %v1358_v55, 2 }
 0x147   : >> { %v620_v46 = vpop.permute.xlu1 %619  ;;  %v662_v13 = vadd.f32 %v4264_v54, %v641_v63  ;;  %v1318_v54 = vmul.f32 %v1317_v9, %v4143_v41  ;;  %v752_v63 = vld [vmem:[#allocation3 + $0x8] sm:$0xff] }
 0x148   : >> { %v606_v52 = vpop.permute.xlu0 %605 }
 0x149   : >> { %v610_v58 = vadd.f32 %v606_v52, %v596_v40  ;;  %v1324_v34 = vrot.slane %v1318_v54, 1  ;;  %v1356_v40 = vmul.f32 %v1355_v35, %v4143_v41 }
 0x14a   : >> { %1227 = vrot.lane.b32.xlu2 %v1224_v51, %s3848_s19 }
 0x14b   : >> { %v624_v62 = vadd.f32 %v620_v46, %v610_v58  ;;  %v1326_v51 = vsel %vm633_vm6, %v1324_v34, %v1325_v28  ;;  %v1362_v56 = vrot.slane %v1356_v40, 2  ;;  %v1383_v58 = vrot.slane %v1377_v43, 2 }
 0x14c   : >> { %v4325_v2 = vpop.permute.xlu2 %781  ;;  %v1415_v40 = vmul.f32 %v1414_v19, %v4143_v41 }
 0x14d   : >> { %1258 = vrot.lane.b32.xlu1 %v1253_v53, %s3849_s23  ;;  %v642_v6 = vadd.f32 %v638_v61, %v624_v62  ;;  %v1384_v61 = vrot.slane %v1378_v47, 2  ;;  %v1363_v62 = vrot.slane %v1357_v48, 2 }
 0x14e   : >> { %1256 = vrot.lane.b32.xlu0 %v1252_v60, %s3849_s23 }
 0x14f   : >> { %v680_v10 = vpop.permute.xlu1 %679  ;;  %v663_v12 = vadd.f32 %v4278_v3, %v642_v6  ;;  %v1364_v6 = vsel %vm693_vm7, %v1362_v56, %v1363_v62 }
 0x150   : >> { %v678_v16 = vpop.permute.xlu0 %677 }
 0x151   : >> { %v683_v21 = vadd.f32 %v678_v16, %v662_v13  ;;  %v684_v3 = vadd.f32 %v680_v10, %v663_v12  ;;  %v791_v12 = vmul.f32 %v790_v1, %v4143_v41  ;;  %v792_v13 = vmul.f32 %v790_v1, %v4147_v45 }
 0x152   : >> { %1270 = vrot.lane.b32.xlu2 %v1266_v11, %s3848_s19  ;;  %v1385_v11 = vsel %vm693_vm7, %v1383_v58, %v1384_v61  ;;  %v1366_v16 = vsel %vm693_vm7, %v1363_v62, %v1365_v5 }
 0x153   : >> { %v701_v24 = vadd.f32 %v696_v15, %v683_v21  ;;  %v702_v37 = vadd.f32 %v698_v26, %v684_v3  ;;  %v797_v54 = vrot.slane %v791_v12, 1  ;;  %v798_v3 = vrot.slane %v792_v13, 1 }
 0x154   : >> { %v4345_v27 = vpop.permute.xlu2 %821  ;;  %v1539_v12 = vstv %s3622_s10  ;;  %v908_v13 = vstv %s4411_s26  ;;  %s3590_s26 = sld [smem:[#allocation4 + $0x106]] }
 0x155   : >> { %1308 = vrot.lane.b32.xlu1 %v1305_v22, %s3849_s23  ;;  %v722_v30 = vadd.f32 %v4294_v20, %v701_v24  ;;  %v1328_v20 = vsel %vm633_vm6, %v1325_v28, %v1327_v29  ;;  %v849_v22 = vstv %s4369_s12  ;;  %v1416_v28 = vmul.f32 %v1414_v19, %v4147_v45  ;;  %s3621_s12 = sld [smem:[#allocation4 + $0x287]] }
 0x156   : >> { %1272 = vrot.lane.b32.xlu0 %v1267_v23, %s3848_s19  ;;  %v1459_v23 = vstv %s3618_s13  ;;  %v1387_v29 = vsel %vm693_vm7, %v1384_v61, %v1386_v17  ;;  %v850_v31 = vmul.f32 %v849_v22, %v4143_v41  ;;  %s4431_s13 = sld [smem:[#allocation4 + $0x100]] }
 0x157   : >> { %v738_v33 = vpop.permute.xlu1 %737  ;;  %v1461_v34 = vmul.f32 %v1459_v23, %v4147_v45  ;;  %v1462_v56 = vmul.f32 %v1459_v23, %v4155_v50  ;;  %s4470_s10 = sld [smem:[#allocation4 + $0x381]] }
 0x158   : >> { %v743_v36 = vadd.f32 %v738_v33, %v722_v30  ;;  %v719_v42 = vpop.permute.xlu0 %718  ;;  %v1460_v33 = vmul.f32 %v1459_v23, %v4143_v41 }
 0x159   : >> { %v723_v46 = vadd.f32 %v719_v42, %v702_v37  ;;  %v799_v37 = vsel %vm633_vm6, %v797_v54, %v798_v3  ;;  %v852_v42 = vmul.f32 %v849_v22, %v4155_v50  ;;  %v1469_v7 = vrot.slane %v1462_v56, 1 }
 0x15a   : >> { %v747_v44 = vadd.f32 %v746_v32, %v743_v36  ;;  %1310 = vrot.lane.b32.xlu2 %v1307_v38, %s3849_s23  ;;  %v801_v38 = vsel %vm633_vm6, %v798_v3, %v800_v25  ;;  %v1540_v54 = vmul.f32 %v1539_v12, %v4143_v41  ;;  %v1541_v25 = vmul.f32 %v1539_v12, %v4147_v45 }
 0x15b   : >> { %v744_v53 = vadd.f32 %v4307_v39, %v723_v46  ;;  %v758_v39 = vstv %s4348_s21  ;;  %s4393_s21 = sld [smem:[#allocation4 + $0x285]]  ;;  %v1467_v46 = vrot.slane %v1461_v34, 1 }
 0x15c   : >> { %v749_v52 = vmax.f32 %v747_v44, 0.0  ;;  %v4367_v57 = vpop.permute.xlu2 %878  ;;  %v759_v10 = vmul.f32 %v758_v39, %v4143_v41  ;;  %v760_v15 = vmul.f32 %v758_v39, %v4147_v45 }
 0x15d   : >> { %1331 = vrot.lane.b32.xlu1 %v1328_v20, %s3848_s19  ;;  %v748_v60 = vadd.f32 %v746_v32, %v744_v53  ;;  %v851_v32 = vmul.f32 %v849_v22, %v4147_v45  ;;  %v856_v20 = vrot.slane %v850_v31, 2 }
 0x15e   : >> { %v753_v59 = vmax.f32 %v751_v49, %v749_v52  ;;  %1329 = vrot.lane.b32.xlu0 %v1326_v51, %s3848_s19  ;;  %v1428_v49 = vstv %s4390_s17  ;;  %s4435_s17 = sld [smem:[#allocation4 + $0x103]] }
 0x15f   : >> { %v770_v0 = vpop.permute.xlu1 %769  ;;  %v750_v4 = vmax.f32 %v748_v60, 0.0  ;;  %v857_v43 = vrot.slane %v851_v32, 2  ;;  %v1429_v53 = vmul.f32 %v1428_v49, %v4143_v41  ;;  %v859_v60 = vrot.slane %v852_v42, 2  ;;  %v915_v42 = vld [vmem:[#allocation3 + $0x18] sm:$0xff] }
 0x160   : >> { %755 = vst.msk [vmem:[#allocation3] sm:$0xff] %vm565_vm5, %v753_v59  ;;  %v768_v8 = vpop.permute.xlu0 %767  ;;  %v774_v26 = vadd.f32 %v770_v0, %v760_v15  ;;  %v1430_v1 = vmul.f32 %v1428_v49, %v4147_v45 }
 0x161   : >> { %v754_v9 = vmax.f32 %v752_v63, %v750_v4  ;;  %v773_v21 = vadd.f32 %v768_v8, %v759_v10  ;;  %v1480_v51 = vstv %s4393_s21  ;;  %v858_v58 = vsel %vm693_vm7, %v856_v20, %v857_v43  ;;  %s4450_s21 = sld [smem:[#allocation4 + $0x301]] }
 0x162   : >> { %1367 = vrot.lane.b32.xlu2 %v1364_v6, %s3849_s23  ;;  %v1482_v61 = vmul.f32 %v1480_v51, %v4147_v45  ;;  %v1483_v62 = vmul.f32 %v1480_v51, %v4155_v50  ;;  %v1481_v4 = vmul.f32 %v1480_v51, %v4143_v41  ;;  %v860_v8 = vsel %vm693_vm7, %v857_v43, %v859_v60 }
 0x163   : >> { %756 = vst.msk [vmem:[#allocation3 + $0x8] sm:$0xff] %vm565_vm5, %v754_v9  ;;  %v787_v35 = vadd.f32 %v4325_v2, %v773_v21  ;;  %v1466_v2 = vrot.slane %v1460_v33, 1  ;;  %v1470_v21 = vsel %vm633_vm6, %v1467_v46, %v1469_v7  ;;  %v4478_v7 = vld [vmem:[%s4140_s18 + $0x8] sm:$0xff] }
 0x164   : >> { %v4387_v18 = vpop.permute.xlu2 %901  ;;  %v1490_v10 = vrot.slane %v1483_v62, 1  ;;  %v1487_v15 = vrot.slane %v1481_v4, 1  ;;  %v953_v43 = vstv %s4435_s17  ;;  %s4500_s17 = sld [smem:[#allocation4 + $0x382]] }
 0x165   : >> { %1388 = vrot.lane.b32.xlu1 %v1385_v11, %s3848_s19  ;;  %v804_v47 = vadd.f32 %v799_v37, %v787_v35  ;;  %v1468_v0 = vsel %vm633_vm6, %v1466_v2, %v1467_v46  ;;  %v1546_v35 = vrot.slane %v1540_v54, 2  ;;  %v955_v56 = vmul.f32 %v953_v43, %v4147_v45 }
 0x166   : >> { %1369 = vrot.lane.b32.xlu0 %v1366_v16, %s3849_s23  ;;  %v1518_v16 = vstv %s3621_s12  ;;  %s4473_s12 = sld [smem:[#allocation4 + $0x302]]  ;;  %v1740_v54 = vstv %s4470_s10 }
 0x167   : >> { %v820_v24 = vpop.permute.xlu1 %819  ;;  %v1519_v22 = vmul.f32 %v1518_v16, %v4143_v41  ;;  %v1521_v32 = vmul.f32 %v1518_v16, %v4155_v50  ;;  %s4519_s10 = sld [smem:[#allocation4 + $0x305]] }
 0x168   : >> { %v784_v30 = vpop.permute.xlu0 %783  ;;  %v825_v55 = vadd.f32 %v820_v24, %v804_v47 }
 0x169   : >> { %v788_v36 = vadd.f32 %v784_v30, %v774_v26  ;;  %v1520_v26 = vmul.f32 %v1518_v16, %v4147_v45  ;;  %v1525_v33 = vrot.slane %v1519_v22, 2  ;;  %v1528_v46 = vrot.slane %v1521_v32, 2 }
 0x16a   : >> { %1390 = vrot.lane.b32.xlu2 %v1387_v29, %s3848_s19 }
 0x16b   : >> { %v805_v48 = vadd.f32 %v801_v38, %v788_v36  ;;  %v1547_v38 = vrot.slane %v1541_v25, 2 }
 0x16c   : >> { %v4409_v44 = vpop.permute.xlu2 %944 }
 0x16d   : >> { %1421 = vrot.lane.b32.xlu1 %v1416_v28, %s3849_s23  ;;  %v826_v63 = vadd.f32 %v4345_v27, %v805_v48  ;;  %v1488_v27 = vrot.slane %v1482_v61, 1  ;;  %v914_v28 = vld [vmem:[#allocation3 + $0x10] sm:$0xff]  ;;  %v1542_v48 = vmul.f32 %v1539_v12, %v4155_v50 }
 0x16e   : >> { %1419 = vrot.lane.b32.xlu0 %v1415_v40, %s3849_s23  ;;  %v1526_v40 = vrot.slane %v1520_v26, 2 }
 0x16f   : >> { %v843_v52 = vpop.permute.xlu1 %842  ;;  %v1489_v29 = vsel %vm633_vm6, %v1487_v15, %v1488_v27  ;;  %v1549_v61 = vrot.slane %v1542_v48, 2 }
 0x170   : >> { %v841_v59 = vpop.permute.xlu0 %840  ;;  %v847_v5 = vadd.f32 %v843_v52, %v826_v63  ;;  %v1527_v47 = vsel %vm693_vm7, %v1525_v33, %v1526_v40  ;;  %v1529_v60 = vsel %vm693_vm7, %v1526_v40, %v1528_v46  ;;  %v1577_v63 = vstv %s4450_s21  ;;  %s3638_s21 = sld [smem:[#allocation4 + $0x384]] }
 0x171   : >> { %v846_v39 = vadd.f32 %v841_v59, %v825_v55  ;;  %v954_v55 = vmul.f32 %v953_v43, %v4143_v41 }
 0x172   : >> { %1433 = vrot.lane.b32.xlu2 %v1429_v53, %s3848_s19  ;;  %v864_v19 = vadd.f32 %v860_v8, %v847_v5  ;;  %v1548_v53 = vsel %vm693_vm7, %v1546_v35, %v1547_v38  ;;  %v1550_v5 = vsel %vm693_vm7, %v1547_v38, %v1549_v61  ;;  %v1579_v8 = vmul.f32 %v4478_v7, %v1577_v63 }
 0x173   : >> { %v863_v6 = vadd.f32 %v858_v58, %v846_v39  ;;  %v956_v58 = vmul.f32 %v953_v43, %v4155_v50  ;;  %v1012_v50 = vstv %s3590_s26  ;;  %v960_v39 = vrot.slane %v954_v55, 1  ;;  %s3628_s26 = sld [smem:[#allocation4 + $0x304]] }
 0x174   : >> { %v4428_v9 = vpop.permute.xlu2 %984 }
 0x175   : >> { %1471 = vrot.lane.b32.xlu1 %v1468_v0, %s3849_s23  ;;  %v884_v11 = vadd.f32 %v4367_v57, %v863_v6  ;;  %v1491_v57 = vsel %vm633_vm6, %v1488_v27, %v1490_v10  ;;  %v4482_v27 = vld [vmem:[%s4140_s18] sm:$0xff] }
 0x176   : >> { %1435 = vrot.lane.b32.xlu0 %v1430_v1, %s3848_s19  ;;  %v963_v1 = vrot.slane %v956_v58, 1  ;;  %v1013_v10 = vmul.f32 %v4482_v27, %v1012_v50  ;;  %v1578_v16 = vmul.f32 %v4482_v27, %v1577_v63 }
 0x177   : >> { %v900_v14 = vpop.permute.xlu1 %899 }
 0x178   : >> { %v905_v17 = vadd.f32 %v900_v14, %v884_v11  ;;  %v881_v23 = vpop.permute.xlu0 %880  ;;  %v1014_v11 = vmul.f32 %v4478_v7, %v1012_v50 }
 0x179   : >> { %v885_v24 = vadd.f32 %v881_v23, %v864_v19  ;;  %v1622_v46 = vstv %s3628_s26  ;;  %s4571_s26 = sld [smem:[#allocation4 + $0x387]] }
 0x17a   : >> { %v909_v3 = vadd.f32 %v908_v13, %v905_v17  ;;  %1473 = vrot.lane.b32.xlu2 %v1470_v21, %s3849_s23  ;;  %v1019_v17 = vrot.slane %v1013_v10, 2  ;;  %v1020_v19 = vrot.slane %v1014_v11, 2  ;;  %v1624_v58 = vmul.f32 %v4478_v7, %v1622_v46 }
 0x17b   : >> { %v906_v31 = vadd.f32 %v4387_v18, %v885_v24  ;;  %v921_v18 = vstv %s4431_s13  ;;  %s4491_s13 = sld [smem:[#allocation7 + $0x2]] }
 0x17c   : >> { %v911_v30 = vmax.f32 %v909_v3, 0.0  ;;  %v4448_v34 = vpop.permute.xlu2 %1041  ;;  %v922_v52 = vmul.f32 %v921_v18, %v4143_v41  ;;  %v923_v59 = vmul.f32 %v921_v18, %v4147_v45  ;;  %v961_v45 = vrot.slane %v955_v56, 1 }
 0x17d   : >> { %1494 = vrot.lane.b32.xlu1 %v1491_v57, %s3848_s19  ;;  %v910_v37 = vadd.f32 %v908_v13, %v906_v31  ;;  %v1591_v3 = vstv %s4473_s12  ;;  %v1754_v18 = vstv %s4500_s17  ;;  %s4524_s12 = sld [smem:[#allocation4 + $0x183]] }
 0x17e   : >> { %v916_v36 = vmax.f32 %v914_v28, %v911_v30  ;;  %1492 = vrot.lane.b32.xlu0 %v1489_v29, %s3848_s19  ;;  %v962_v14 = vsel %vm633_vm6, %v960_v39, %v961_v45  ;;  %v964_v15 = vsel %vm633_vm6, %v961_v45, %v963_v1  ;;  %v1592_v25 = vmul.f32 %v4482_v27, %v1591_v3  ;;  %s4544_s17 = sld [smem:[#allocation4 + $0x307]] }
 0x17f   : >> { %v933_v20 = vpop.permute.xlu1 %932  ;;  %v912_v2 = vmax.f32 %v910_v37, 0.0  ;;  %v1021_v28 = vsel %vm693_vm7, %v1019_v17, %v1020_v19  ;;  %v1741_v30 = vmul.f32 %v4482_v27, %v1740_v54  ;;  %v1593_v35 = vmul.f32 %v4478_v7, %v1591_v3 }
 0x180   : >> { %918 = vst.msk [vmem:[#allocation3 + $0x10] sm:$0xff] %vm565_vm5, %v916_v36  ;;  %v931_v49 = vpop.permute.xlu0 %930  ;;  %v937_v4 = vadd.f32 %v933_v20, %v923_v59  ;;  %v1785_v20 = vstv %s3638_s21  ;;  %v1077_v59 = vld [vmem:[#allocation3 + $0x20] sm:$0xff]  ;;  %s4549_s21 = sld [smem:[#allocation4 + $0x385]] }
 0x181   : >> { %v917_v51 = vmax.f32 %v915_v42, %v912_v2  ;;  %v936_v41 = vadd.f32 %v931_v49, %v922_v52  ;;  %v1742_v2 = vmul.f32 %v4478_v7, %v1740_v54  ;;  %v1623_v49 = vmul.f32 %v4482_v27, %v1622_v46 }
 0x182   : >> { %1530 = vrot.lane.b32.xlu2 %v1527_v47, %s3849_s23  ;;  %v1786_v52 = vmul.f32 %v4482_v27, %v1785_v20 }
 0x183   : >> { %919 = vst.msk [vmem:[#allocation3 + $0x18] sm:$0xff] %vm565_vm5, %v917_v51  ;;  %v950_v12 = vadd.f32 %v4409_v44, %v936_v41  ;;  %v4497_v44 = vld [vmem:[%s4140_s18 + $0x10] sm:$0x3]  ;;  %s4515_s18 = sld [smem:[#allocation4 + $0x180]]  ;;  %v1116_v11 = vstv %s4524_s12 }
 0x184   : >> { %v4468_v62 = vpop.permute.xlu2 %1064  ;;  %v1015_v22 = vmul.f32 %v4497_v44, %v1012_v50  ;;  %v1625_v63 = vmul.f32 %v4497_v44, %v1622_v46  ;;  %v1629_v50 = vrot.slane %v1623_v49, 1  ;;  %v1792_v45 = vrot.slane %v1786_v52, 1  ;;  %s4600_s12 = sld [smem:[#allocation4 + $0x308]] }
 0x185   : >> { %1551 = vrot.lane.b32.xlu1 %v1548_v53, %s3848_s19  ;;  %v967_v23 = vadd.f32 %v962_v14, %v950_v12  ;;  %v4530_v53 = vmul.f32 %v4478_v7, %v1785_v20  ;;  %v1117_v54 = vmul.f32 %v4482_v27, %v1116_v11  ;;  %v1118_v3 = vmul.f32 %v4478_v7, %v1116_v11 }
 0x186   : >> { %1532 = vrot.lane.b32.xlu0 %v1529_v60, %s3849_s23  ;;  %v1022_v31 = vrot.slane %v1015_v22, 2  ;;  %v1755_v60 = vmul.f32 %v4482_v27, %v1754_v18 }
 0x187   : >> { %v983_v0 = vpop.permute.xlu1 %982 }
 0x188   : >> { %v947_v6 = vpop.permute.xlu0 %946  ;;  %v988_v26 = vadd.f32 %v983_v0, %v967_v23  ;;  %v1023_v38 = vsel %vm693_vm7, %v1020_v19, %v1022_v31  ;;  %v1793_v0 = vrot.slane %v4530_v53, 1 }
 0x189   : >> { %v951_v13 = vadd.f32 %v947_v6, %v937_v4  ;;  %v1643_v6 = vstv %s4519_s10  ;;  %s3642_s10 = sld [smem:[#allocation4 + $0x388]] }
 0x18a   : >> { %1553 = vrot.lane.b32.xlu2 %v1550_v5, %s3848_s19  ;;  %v1630_v5 = vrot.slane %v1624_v58, 1  ;;  %v1645_v17 = vmul.f32 %v4478_v7, %v1643_v6  ;;  %v1794_v23 = vsel %vm633_vm6, %v1792_v45, %v1793_v0 }
 0x18b   : >> { %v968_v57 = vadd.f32 %v964_v15, %v951_v13  ;;  %v1632_v13 = vrot.slane %v1625_v63, 1  ;;  %v1788_v15 = vmul.f32 %v4497_v44, %v1785_v20  ;;  %v1806_v20 = vstv %s4549_s21  ;;  %s3610_s21 = sld [smem:[#allocation4 + $0x206]] }
 0x18c   : >> { %v4494_v21 = vpop.permute.xlu2 %1107  ;;  %v1631_v14 = vsel %vm633_vm6, %v1629_v50, %v1630_v5  ;;  %v1651_v31 = vrot.slane %v1645_v17, 1  ;;  %v1807_v46 = vmul.f32 %v4482_v27, %v1806_v20 }
 0x18d   : >> { %1584 = vrot.lane.b32.xlu1 %v1579_v8, %s3849_s23  ;;  %v989_v32 = vadd.f32 %v4428_v9, %v968_v57  ;;  %v1071_v9 = vstv %s4491_s13  ;;  %s4541_s13 = sld [smem:[#allocation4 + $0x186]]  ;;  %v1084_v8 = vstv %s4515_s18  ;;  %v1646_v57 = vmul.f32 %v4497_v44, %v1643_v6 }
 0x18e   : >> { %1582 = vrot.lane.b32.xlu0 %v1578_v16, %s3849_s23  ;;  %v1085_v22 = vmul.f32 %v4482_v27, %v1084_v8  ;;  %v1813_v63 = vrot.slane %v1807_v46, 1  ;;  %s4596_s18 = sld [smem:[#allocation7 + $0x3]] }
 0x18f   : >> { %v1006_v24 = vpop.permute.xlu1 %1005 }
 0x190   : >> { %v1004_v29 = vpop.permute.xlu0 %1003  ;;  %v1010_v36 = vadd.f32 %v1006_v24, %v989_v32  ;;  %v1119_v24 = vmul.f32 %v4497_v44, %v1116_v11 }
 0x191   : >> { %v1009_v33 = vadd.f32 %v1004_v29, %v988_v26  ;;  %v1633_v26 = vsel %vm633_vm6, %v1630_v5, %v1632_v13  ;;  %v1795_v29 = vrot.slane %v1788_v15, 1 }
 0x192   : >> { %1596 = vrot.lane.b32.xlu2 %v1592_v25, %s3848_s19  ;;  %v1027_v48 = vadd.f32 %v1023_v38, %v1010_v36  ;;  %v1086_v25 = vmul.f32 %v4478_v7, %v1084_v8  ;;  %v1681_v36 = vstv %s4544_s17  ;;  %v1124_v38 = vrot.slane %v1118_v3, 1  ;;  %s4622_s17 = sld [smem:[#allocation4 + $0x203]] }
 0x193   : >> { %v1026_v37 = vadd.f32 %v1021_v28, %v1009_v33  ;;  %v1644_v28 = vmul.f32 %v4482_v27, %v1643_v6  ;;  %v1653_v33 = vrot.slane %v1646_v57, 1  ;;  %v1684_v13 = vmul.f32 %v4497_v44, %v1681_v36 }
 0x194   : >> { %v4513_v40 = vpop.permute.xlu2 %1147 }
 0x195   : >> { %1745 = vrot.lane.b32.xlu1 %v1741_v30, %s3849_s23  ;;  %v1047_v42 = vadd.f32 %v4448_v34, %v1026_v37  ;;  %v1756_v34 = vmul.f32 %v4478_v7, %v1754_v18  ;;  %v1123_v37 = vrot.slane %v1117_v54, 1  ;;  %v1126_v18 = vrot.slane %v1119_v24, 1 }
 0x196   : >> { %1598 = vrot.lane.b32.xlu0 %v1593_v35, %s3848_s19  ;;  %v1175_v35 = vstv %s4541_s13  ;;  %s4617_s13 = sld [smem:[#allocation4 + $0x200]] }
 0x197   : >> { %v1063_v43 = vpop.permute.xlu1 %1062  ;;  %v1177_v49 = vmul.f32 %v4478_v7, %v1175_v35  ;;  %v1125_v58 = vsel %vm633_vm6, %v1123_v37, %v1124_v38 }
 0x198   : >> { %v1068_v47 = vadd.f32 %v1063_v43, %v1047_v42  ;;  %v1044_v51 = vpop.permute.xlu0 %1043  ;;  %v1650_v43 = vrot.slane %v1644_v28, 1 }
 0x199   : >> { %v1048_v56 = vadd.f32 %v1044_v51, %v1027_v48  ;;  %v1176_v48 = vmul.f32 %v4482_v27, %v1175_v35  ;;  %v1682_v51 = vmul.f32 %v4482_v27, %v1681_v36  ;;  %v1183_v50 = vrot.slane %v1177_v49, 2 }
 0x19a   : >> { %v1072_v55 = vadd.f32 %v1071_v9, %v1068_v47  ;;  %1747 = vrot.lane.b32.xlu2 %v1742_v2, %s3849_s23  ;;  %v1796_v2 = vsel %vm633_vm6, %v1793_v0, %v1795_v29 }
 0x19b   : >> { %v1069_v41 = vadd.f32 %v4468_v62, %v1048_v56  ;;  %v1078_v62 = vld [vmem:[#allocation3 + $0x28] sm:$0xff]  ;;  %v1808_v56 = vmul.f32 %v4478_v7, %v1806_v20  ;;  %v1688_v0 = vrot.slane %v1682_v51, 2  ;;  %v1240_v51 = vld [vmem:[#allocation3 + $0x30] sm:$0xff] }
 0x19c   : >> { %v1074_v61 = vmax.f32 %v1072_v55, 0.0  ;;  %v4538_v39 = vpop.permute.xlu2 %1204  ;;  %v1654_v55 = vsel %vm633_vm6, %v1651_v31, %v1653_v33  ;;  %v1865_v33 = vstv %s3642_s10  ;;  %s3623_s10 = sld [smem:[#allocation7 + $0x5]] }
 0x19d   : >> { %1761 = vrot.lane.b32.xlu1 %v1756_v34, %s3848_s19  ;;  %v1073_v4 = vadd.f32 %v1071_v9, %v1069_v41  ;;  %v4581_v34 = vmul.f32 %v4478_v7, %v1681_v36  ;;  %v1178_v41 = vmul.f32 %v4497_v44, %v1175_v35  ;;  %v1814_v6 = vrot.slane %v1808_v56, 1 }
 0x19e   : >> { %v1079_v1 = vmax.f32 %v1077_v59, %v1074_v61  ;;  %1759 = vrot.lane.b32.xlu0 %v1755_v60, %s3848_s19  ;;  %v1127_v59 = vsel %vm633_vm6, %v1124_v38, %v1126_v18  ;;  %v1652_v60 = vsel %vm633_vm6, %v1650_v43, %v1651_v31  ;;  %v1809_v61 = vmul.f32 %v4497_v44, %v1806_v20 }
 0x19f   : >> { %v1096_v10 = vpop.permute.xlu1 %1095  ;;  %v1075_v12 = vmax.f32 %v1073_v4, 0.0  ;;  %v1234_v35 = vstv %s4596_s18  ;;  %v1702_v38 = vstv %s4600_s12  ;;  %s3620_s18 = sld [smem:[#allocation4 + $0x286]] }
 0x1a0   : >> { %1081 = vst.msk [vmem:[#allocation3 + $0x20] sm:$0xff] %vm565_vm5, %v1079_v1  ;;  %v1094_v16 = vpop.permute.xlu0 %1093  ;;  %v1100_v9 = vadd.f32 %v1096_v10, %v1086_v25  ;;  %v1689_v1 = vrot.slane %v4581_v34, 2  ;;  %v1816_v11 = vrot.slane %v1809_v61, 1  ;;  %v1704_v49 = vmul.f32 %v4478_v7, %v1702_v38  ;;  %s4684_s12 = sld [smem:[#allocation4 + $0x300]] }
 0x1a1   : >> { %v1080_v19 = vmax.f32 %v1078_v62, %v1075_v12  ;;  %v1099_v32 = vadd.f32 %v1094_v16, %v1085_v22  ;;  %v1844_v62 = vstv %s4571_s26  ;;  %v1815_v12 = vsel %vm633_vm6, %v1813_v63, %v1814_v6  ;;  %s3617_s26 = sld [smem:[#allocation4 + $0x283]] }
 0x1a2   : >> { %1634 = vrot.lane.b32.xlu2 %v1631_v14, %s3849_s23  ;;  %v1185_v16 = vrot.slane %v1178_v41, 2  ;;  %v1846_v17 = vmul.f32 %v4478_v7, %v1844_v62  ;;  %v1690_v57 = vsel %vm693_vm7, %v1688_v0, %v1689_v1  ;;  %v1845_v54 = vmul.f32 %v4482_v27, %v1844_v62 }
 0x1a3   : >> { %1082 = vst.msk [vmem:[#allocation3 + $0x28] sm:$0xff] %vm565_vm5, %v1080_v19  ;;  %v1113_v52 = vadd.f32 %v4494_v21, %v1099_v32  ;;  %v1182_v21 = vrot.slane %v1176_v48, 2  ;;  %v1847_v19 = vmul.f32 %v4497_v44, %v1844_v62  ;;  %v1817_v25 = vsel %vm633_vm6, %v1814_v6, %v1816_v11 }
 0x1a4   : >> { %v4567_v30 = vpop.permute.xlu2 %1227  ;;  %v1186_v28 = vsel %vm693_vm7, %v1183_v50, %v1185_v16  ;;  %v1851_v37 = vrot.slane %v1845_v54, 2  ;;  %v1867_v48 = vmul.f32 %v4478_v7, %v1865_v33  ;;  %v1710_v63 = vrot.slane %v1704_v49, 2 }
 0x1a5   : >> { %1797 = vrot.lane.b32.xlu1 %v1794_v23, %s3849_s23  ;;  %v1130_v4 = vadd.f32 %v1125_v58, %v1113_v52  ;;  %v1184_v14 = vsel %vm693_vm7, %v1182_v21, %v1183_v50  ;;  %v1854_v31 = vrot.slane %v1847_v19, 2  ;;  %v1241_v21 = vld [vmem:[#allocation3 + $0x38] sm:$0xff]  ;;  %v1247_v50 = vstv %s4617_s13  ;;  %s3627_s13 = sld [smem:[#allocation4 + $0x303]] }
 0x1a6   : >> { %1636 = vrot.lane.b32.xlu0 %v1633_v26, %s3849_s23  ;;  %v1691_v26 = vrot.slane %v1684_v13, 2  ;;  %v1873_v41 = vrot.slane %v1867_v48, 2  ;;  %v1868_v6 = vmul.f32 %v4497_v44, %v1865_v33 }
 0x1a7   : >> { %v1146_v42 = vpop.permute.xlu1 %1145 }
 0x1a8   : >> { %v1110_v47 = vpop.permute.xlu0 %1109  ;;  %v1151_v10 = vadd.f32 %v1146_v42, %v1130_v4  ;;  %v1692_v20 = vsel %vm693_vm7, %v1689_v1, %v1691_v26  ;;  %v1279_v1 = vstv %s4622_s17  ;;  %s3637_s17 = sld [smem:[#allocation4 + $0x383]] }
 0x1a9   : >> { %v1114_v53 = vadd.f32 %v1110_v47, %v1100_v9  ;;  %v1703_v9 = vmul.f32 %v4482_v27, %v1702_v38  ;;  %v1281_v13 = vmul.f32 %v4478_v7, %v1279_v1 }
 0x1aa   : >> { %1799 = vrot.lane.b32.xlu2 %v1796_v2, %s3849_s23  ;;  %v1866_v2 = vmul.f32 %v4482_v27, %v1865_v33 }
 0x1ab   : >> { %v1131_v5 = vadd.f32 %v1127_v59, %v1114_v53  ;;  %v1709_v56 = vrot.slane %v1703_v9, 2  ;;  %v1287_v54 = vrot.slane %v1281_v13, 1 }
 0x1ac   : >> { %v4593_v45 = vpop.permute.xlu2 %1270  ;;  %v1872_v59 = vrot.slane %v1866_v2, 2 }
 0x1ad   : >> { %1657 = vrot.lane.b32.xlu1 %v1654_v55, %s3848_s19  ;;  %v1152_v22 = vadd.f32 %v4513_v40, %v1131_v5  ;;  %v1852_v40 = vrot.slane %v1846_v17, 2  ;;  %v1705_v55 = vmul.f32 %v4497_v44, %v1702_v38  ;;  %v1711_v5 = vsel %vm693_vm7, %v1709_v56, %v1710_v63 }
 0x1ae   : >> { %1655 = vrot.lane.b32.xlu0 %v1652_v60, %s3848_s19  ;;  %v1874_v11 = vsel %vm693_vm7, %v1872_v59, %v1873_v41  ;;  %v1875_v17 = vrot.slane %v1868_v6, 2 }
 0x1af   : >> { %v1169_v8 = vpop.permute.xlu1 %1168  ;;  %v1853_v34 = vsel %vm693_vm7, %v1851_v37, %v1852_v40  ;;  %v1712_v4 = vrot.slane %v1705_v55, 2 }
 0x1b0   : >> { %v1167_v15 = vpop.permute.xlu0 %1166  ;;  %v1173_v3 = vadd.f32 %v1169_v8, %v1152_v22  ;;  %v1876_v26 = vsel %vm693_vm7, %v1873_v41, %v1875_v17 }
 0x1b1   : >> { %v1172_v23 = vadd.f32 %v1167_v15, %v1151_v10  ;;  %v1248_v10 = vmul.f32 %v4482_v27, %v1247_v50  ;;  %v1249_v15 = vmul.f32 %v4478_v7, %v1247_v50  ;;  %v1713_v16 = vsel %vm693_vm7, %v1710_v63, %v1712_v4  ;;  %v1404_v4 = vld [vmem:[#allocation3 + $0x48] sm:$0xff] }
 0x1b2   : >> { %1818 = vrot.lane.b32.xlu2 %v1815_v12, %s3848_s19  ;;  %v1190_v18 = vadd.f32 %v1186_v28, %v1173_v3  ;;  %v1280_v12 = vmul.f32 %v4482_v27, %v1279_v1 }
 0x1b3   : >> { %v1189_v24 = vadd.f32 %v1184_v14, %v1172_v23  ;;  %v1282_v14 = vmul.f32 %v4497_v44, %v1279_v1  ;;  %v1338_v23 = vstv %s3610_s21  ;;  %s4689_s21 = sld [smem:[#allocation4 + $0x380]] }
 0x1b4   : >> { %v4614_v29 = vpop.permute.xlu2 %1310 }
 0x1b5   : >> { %1693 = vrot.lane.b32.xlu1 %v1690_v57, %s3849_s23  ;;  %v1210_v32 = vadd.f32 %v4538_v39, %v1189_v24  ;;  %v1855_v39 = vsel %vm693_vm7, %v1852_v40, %v1854_v31  ;;  %v1286_v57 = vrot.slane %v1280_v12, 1  ;;  %v1289_v24 = vrot.slane %v1282_v14, 1 }
 0x1b6   : >> { %1820 = vrot.lane.b32.xlu0 %v1817_v25, %s3848_s19  ;;  %v1339_v40 = vmul.f32 %v4482_v27, %v1338_v23  ;;  %v1340_v31 = vmul.f32 %v4478_v7, %v1338_v23 }
 0x1b7   : >> { %v1226_v36 = vpop.permute.xlu1 %1225 }
 0x1b8   : >> { %v1231_v42 = vadd.f32 %v1226_v36, %v1210_v32  ;;  %v1207_v43 = vpop.permute.xlu0 %1206  ;;  %v1290_v36 = vsel %vm633_vm6, %v1287_v54, %v1289_v24  ;;  %v1345_v37 = vrot.slane %v1339_v40, 2  ;;  %v1346_v38 = vrot.slane %v1340_v31, 2 }
 0x1b9   : >> { %v1211_v47 = vadd.f32 %v1207_v43, %v1190_v18  ;;  %v1341_v18 = vmul.f32 %v4497_v44, %v1338_v23 }
 0x1ba   : >> { %v1235_v46 = vadd.f32 %v1234_v35, %v1231_v42  ;;  %1695 = vrot.lane.b32.xlu2 %v1692_v20, %s3849_s23  ;;  %v1347_v2 = vsel %vm693_vm7, %v1345_v37, %v1346_v38 }
 0x1bb   : >> { %v1232_v53 = vadd.f32 %v4567_v30, %v1211_v47 }
 0x1bc   : >> { %v1237_v52 = vmax.f32 %v1235_v46, 0.0  ;;  %v4635_v58 = vpop.permute.xlu2 %1367  ;;  %v1348_v46 = vrot.slane %v1341_v18, 2 }
 0x1bd   : >> { %1858 = vrot.lane.b32.xlu1 %v1855_v39, %s3849_s23  ;;  %v1236_v61 = vadd.f32 %v1234_v35, %v1232_v53  ;;  %v1288_v35 = vsel %vm633_vm6, %v1286_v57, %v1287_v54 }
 0x1be   : >> { %v1242_v60 = vmax.f32 %v1240_v51, %v1237_v52  ;;  %1856 = vrot.lane.b32.xlu0 %v1853_v34, %s3849_s23  ;;  %s3613_s23 = sld [smem:[#allocation7 + $0x4]]  ;;  %v1349_v34 = vsel %vm693_vm7, %v1346_v38, %v1348_v46 }
 0x1bf   : >> { %v1259_v0 = vpop.permute.xlu1 %1258  ;;  %v1238_v30 = vmax.f32 %v1236_v61, 0.0 }
 0x1c0   : >> { %1244 = vst.msk [vmem:[#allocation3 + $0x30] sm:$0xff] %vm565_vm5, %v1242_v60  ;;  %v1257_v62 = vpop.permute.xlu0 %1256  ;;  %v1263_v25 = vadd.f32 %v1259_v0, %v1249_v15 }
 0x1c1   : >> { %v1243_v8 = vmax.f32 %v1241_v21, %v1238_v30  ;;  %v1262_v22 = vadd.f32 %v1257_v62, %v1248_v10  ;;  %v1403_v21 = vld [vmem:[#allocation3 + $0x40] sm:$0xff]  ;;  %v1442_v62 = vstv %s3617_s26  ;;  %s4712_s26 = sld [smem:[#allocation7 + $0x6]] }
 0x1c2   : >> { %1714 = vrot.lane.b32.xlu2 %v1711_v5, %s3848_s19  ;;  %v1443_v12 = vmul.f32 %v4482_v27, %v1442_v62  ;;  %v1444_v13 = vmul.f32 %v4478_v7, %v1442_v62  ;;  %v1445_v14 = vmul.f32 %v4497_v44, %v1442_v62 }
 0x1c3   : >> { %1245 = vst.msk [vmem:[#allocation3 + $0x38] sm:$0xff] %vm565_vm5, %v1243_v8  ;;  %v1276_v32 = vadd.f32 %v4593_v45, %v1262_v22 }
 0x1c4   : >> { %v1391_v19 = vpop.permute.xlu2 %1390  ;;  %v1397_v55 = vstv %s3613_s23  ;;  %v1449_v22 = vrot.slane %v1443_v12, 1  ;;  %v1450_v23 = vrot.slane %v1444_v13, 1  ;;  %v1452_v54 = vrot.slane %v1445_v14, 1  ;;  %s3630_s23 = sld [smem:[#allocation4 + $0x306]] }
 0x1c5   : >> { %1877 = vrot.lane.b32.xlu1 %v1874_v11, %s3848_s19  ;;  %v1293_v20 = vadd.f32 %v1288_v35, %v1276_v32 }
 0x1c6   : >> { %1716 = vrot.lane.b32.xlu0 %v1713_v16, %s3848_s19  ;;  %v1451_v31 = vsel %vm633_vm6, %v1449_v22, %v1450_v23  ;;  %v1453_v32 = vsel %vm633_vm6, %v1450_v23, %v1452_v54  ;;  %v1768_v23 = vstv %s3637_s17 }
 0x1c7   : >> { %v1309_v3 = vpop.permute.xlu1 %1308 }
 0x1c8   : >> { %v1273_v28 = vpop.permute.xlu0 %1272  ;;  %v1314_v39 = vadd.f32 %v1309_v3, %v1293_v20 }
 0x1c9   : >> { %v1277_v33 = vadd.f32 %v1273_v28, %v1263_v25 }
 0x1ca   : >> { %1879 = vrot.lane.b32.xlu2 %v1876_v26, %s3848_s19  ;;  %s3614_s19 = sld [smem:[#allocation4 + $0x280]] }
 0x1cb   : >> { %v1294_v9 = vadd.f32 %v1290_v36, %v1277_v33 }
 0x1cc   : >> { %v1434_v42 = vpop.permute.xlu2 %1433 }
 0x1cd   : >> { %v1315_v47 = vadd.f32 %v4614_v29, %v1294_v9 }
 0x1cf   : >> { %v1332_v43 = vpop.permute.xlu1 %1331 }
 0x1d0   : >> { %v1330_v45 = vpop.permute.xlu0 %1329  ;;  %v1336_v49 = vadd.f32 %v1332_v43, %v1315_v47  ;;  %v1410_v5 = vstv %s3614_s19  ;;  %s3640_s19 = sld [smem:[#allocation4 + $0x386]] }
 0x1d1   : >> { %v1335_v48 = vadd.f32 %v1330_v45, %v1314_v39  ;;  %v1411_v11 = vmul.f32 %v4482_v27, %v1410_v5  ;;  %v1412_v15 = vmul.f32 %v4478_v7, %v1410_v5 }
 0x1d2   : >> { %v1353_v60 = vadd.f32 %v1349_v34, %v1336_v49  ;;  %v1560_v34 = vstv %s3623_s10  ;;  %s3851_s10 = smov (%p584_p0), 24  }
 0x1d3   : >> { %v1352_v51 = vadd.f32 %v1347_v2, %v1335_v48 }
 0x1d4   : >> { %v1474_v52 = vpop.permute.xlu2 %1473 }
 0x1d5   : >> { %v1373_v53 = vadd.f32 %v4635_v58, %v1352_v51 }
 0x1d7   : >> { %v1389_v56 = vpop.permute.xlu1 %1388 }
 0x1d8   : >> { %v1394_v59 = vadd.f32 %v1389_v56, %v1373_v53  ;;  %v1370_v61 = vpop.permute.xlu0 %1369 }
 0x1d9   : >> { %v1374_v63 = vadd.f32 %v1370_v61, %v1353_v60 }
 0x1da   : >> { %v1398_v41 = vadd.f32 %v1397_v55, %v1394_v59 }
 0x1db   : >> { %v1395_v29 = vadd.f32 %v1391_v19, %v1374_v63  ;;  %v1501_v19 = vstv %s3620_s18  ;;  %s4725_s18 = sld [smem:[#allocation7 + $0x7]] }
 0x1dc   : >> { %v1400_v50 = vmax.f32 %v1398_v41, 0.0  ;;  %v1531_v0 = vpop.permute.xlu2 %1530  ;;  %v1502_v25 = vmul.f32 %v4482_v27, %v1501_v19  ;;  %v1503_v26 = vmul.f32 %v4478_v7, %v1501_v19  ;;  %v1504_v37 = vmul.f32 %v4497_v44, %v1501_v19  ;;  %v1566_v41 = vld [vmem:[#allocation3 + $0x50] sm:$0xff] }
 0x1dd   : >> { %v1399_v30 = vadd.f32 %v1397_v55, %v1395_v29 }
 0x1de   : >> { %v1405_v1 = vmax.f32 %v1403_v21, %v1400_v50  ;;  %v1508_v33 = vrot.slane %v1502_v25, 2  ;;  %v1509_v35 = vrot.slane %v1503_v26, 2  ;;  %v1511_v2 = vrot.slane %v1504_v37, 2 }
 0x1df   : >> { %v1422_v6 = vpop.permute.xlu1 %1421  ;;  %v1401_v58 = vmax.f32 %v1399_v30, 0.0  ;;  %v1770_v26 = vmul.f32 %v4478_v7, %v1768_v23 }
 0x1e0   : >> { %1407 = vst.msk [vmem:[#allocation3 + $0x40] sm:$0xff] %vm565_vm5, %v1405_v1  ;;  %v1420_v8 = vpop.permute.xlu0 %1419  ;;  %v1426_v3 = vadd.f32 %v1422_v6, %v1412_v15  ;;  %v1510_v43 = vsel %vm693_vm7, %v1508_v33, %v1509_v35  ;;  %v1512_v48 = vsel %vm693_vm7, %v1509_v35, %v1511_v2 }
 0x1e1   : >> { %v1406_v10 = vmax.f32 %v1404_v4, %v1401_v58  ;;  %v1425_v17 = vadd.f32 %v1420_v8, %v1411_v11  ;;  %v1573_v8 = vstv %s4684_s12  ;;  %s3852_s12 = smov (%p584_p0), 28  }
 0x1e2   : >> { %v1574_v12 = vmul.f32 %v4482_v27, %v1573_v8 }
 0x1e3   : >> { %1408 = vst.msk [vmem:[#allocation3 + $0x48] sm:$0xff] %vm565_vm5, %v1406_v10  ;;  %v1439_v28 = vadd.f32 %v1434_v42, %v1425_v17  ;;  %v1605_v10 = vstv %s3627_s13  ;;  %s3651_s13 = sshll.u32 (%p584_p0), %s3921_s9, 4 }
 0x1e4   : >> { %v1554_v16 = vpop.permute.xlu2 %1553  ;;  %v1606_v13 = vmul.f32 %v4482_v27, %v1605_v10  ;;  %v1607_v14 = vmul.f32 %v4478_v7, %v1605_v10 }
 0x1e5   : >> { %v1456_v38 = vadd.f32 %v1451_v31, %v1439_v28  ;;  %v1771_v28 = vmul.f32 %v4497_v44, %v1768_v23 }
 0x1e6   : >> { %v1612_v19 = vrot.slane %v1606_v13, 1  ;;  %v1613_v22 = vrot.slane %v1607_v14, 1 }
 0x1e7   : >> { %v1472_v57 = vpop.permute.xlu1 %1471 }
 0x1e8   : >> { %v1436_v24 = vpop.permute.xlu0 %1435  ;;  %v1477_v9 = vadd.f32 %v1472_v57, %v1456_v38  ;;  %v1736_v57 = vstv %s4689_s21  ;;  %v1614_v25 = vsel %vm633_vm6, %v1612_v19, %v1613_v22  ;;  %v1778_v38 = vrot.slane %v1771_v28, 1 }
 0x1e9   : >> { %v1440_v40 = vadd.f32 %v1436_v24, %v1426_v3  ;;  %v1664_v24 = vstv %s3630_s23  ;;  %v1738_v31 = vmul.f32 %v4478_v7, %v1736_v57  ;;  %s3430_s23 = scalar_lea.hbm (%p584_p0), %s6282_s7, %s3651_s13 }
 0x1ea   : >> { %v1665_v35 = vmul.f32 %v4482_v27, %v1664_v24 }
 0x1eb   : >> { %v1457_v18 = vadd.f32 %v1453_v32, %v1440_v40  ;;  %v4702_v32 = vmul.f32 %v4478_v7, %v1664_v24 }
 0x1ec   : >> { %v1597_v36 = vpop.permute.xlu2 %1596 }
 0x1ed   : >> { %v1478_v42 = vadd.f32 %v1474_v52, %v1457_v18  ;;  %v1567_v52 = vld [vmem:[#allocation3 + $0x58] sm:$0xff] }
 0x1ef   : >> { %v1495_v20 = vpop.permute.xlu1 %1494 }
 0x1f0   : >> { %v1493_v39 = vpop.permute.xlu0 %1492  ;;  %v1499_v46 = vadd.f32 %v1495_v20, %v1478_v42  ;;  %v1769_v20 = vmul.f32 %v4482_v27, %v1768_v23  ;;  %v1737_v42 = vmul.f32 %v4482_v27, %v1736_v57  ;;  %v1729_v23 = vld [vmem:[#allocation3 + $0x60] sm:$0xff] }
 0x1f1   : >> { %v1498_v45 = vadd.f32 %v1493_v39, %v1477_v9  ;;  %v1671_v39 = vrot.slane %v1665_v35, 2 }
 0x1f2   : >> { %v1516_v56 = vadd.f32 %v1512_v48, %v1499_v46  ;;  %v1608_v46 = vmul.f32 %v4497_v44, %v1605_v10  ;;  %v1667_v10 = vmul.f32 %v4497_v44, %v1664_v24 }
 0x1f3   : >> { %v1515_v47 = vadd.f32 %v1510_v43, %v1498_v45  ;;  %v1672_v43 = vrot.slane %v4702_v32, 2 }
 0x1f4   : >> { %v1748_v49 = vpop.permute.xlu2 %1747 }
 0x1f5   : >> { %v1536_v51 = vadd.f32 %v1531_v0, %v1515_v47  ;;  %v1752_v18 = vadd.f32 %v1748_v49, %v1738_v31 }
 0x1f7   : >> { %v1552_v53 = vpop.permute.xlu1 %1551 }
 0x1f8   : >> { %v1557_v55 = vadd.f32 %v1552_v53, %v1536_v51  ;;  %v1533_v59 = vpop.permute.xlu0 %1532  ;;  %v1575_v51 = vmul.f32 %v4478_v7, %v1573_v8  ;;  %v1775_v53 = vrot.slane %v1769_v20, 1 }
 0x1f9   : >> { %v1537_v61 = vadd.f32 %v1533_v59, %v1516_v56 }
 0x1fa   : >> { %v1561_v60 = vadd.f32 %v1560_v34, %v1557_v55  ;;  %v1673_v55 = vsel %vm693_vm7, %v1671_v39, %v1672_v43  ;;  %v1893_v39 = vld [vmem:[#allocation3 + $0x78] sm:$0xff] }
 0x1fb   : >> { %v1558_v21 = vadd.f32 %v1554_v16, %v1537_v61  ;;  %v1615_v61 = vrot.slane %v1608_v46, 1 }
 0x1fc   : >> { %v1563_v63 = vmax.f32 %v1561_v60, 0.0  ;;  %v1635_v30 = vpop.permute.xlu2 %1634 }
 0x1fd   : >> { %v1562_v29 = vadd.f32 %v1560_v34, %v1558_v21  ;;  %v1827_v34 = vstv %s3640_s19  ;;  %v1616_v8 = vsel %vm633_vm6, %v1613_v22, %v1615_v61  ;;  %v1674_v22 = vrot.slane %v1667_v10, 2  ;;  %s3431_s19 = sshll.u32 (%p584_p0), %s4132_s24, 4  ;;  %s3432_s19 = int_to_ptr.vmem [resolvable:$true] %s3431_s19 }
 0x1fe   : >> { %v1568_v50 = vmax.f32 %v1566_v41, %v1563_v63  ;;  %v1830_v56 = vmul.f32 %v4497_v44, %v1827_v34  ;;  %v1829_v63 = vmul.f32 %v4478_v7, %v1827_v34  ;;  %v1828_v7 = vmul.f32 %v4482_v27, %v1827_v34 }
 0x1ff   : >> { %v4680_v1 = vpop.permute.xlu1 %1584  ;;  %v1564_v4 = vmax.f32 %v1562_v29, 0.0  ;;  %v1675_v35 = vsel %vm693_vm7, %v1672_v43, %v1674_v22 }
 0x200   : >> { %1570 = vst.msk [vmem:[#allocation3 + $0x50] sm:$0xff] %vm565_vm5, %v1568_v50  ;;  %v1583_v0 = vpop.permute.xlu0 %1582  ;;  %v1589_v21 = vadd.f32 %v4680_v1, %v1575_v51  ;;  %v1835_v13 = vrot.slane %v1829_v63, 2  ;;  %v1834_v57 = vrot.slane %v1828_v7, 2  ;;  %v1892_v51 = vld [vmem:[#allocation3 + $0x70] sm:$0xff] }
 0x201   : >> { %v1569_v5 = vmax.f32 %v1567_v52, %v1564_v4  ;;  %v1588_v17 = vadd.f32 %v1583_v0, %v1574_v12  ;;  %v1837_v4 = vrot.slane %v1830_v56, 2  ;;  %v1723_v12 = vstv %s4712_s26  ;;  %s3433_s26 = sshll.u32 (%p584_p0), %s3430_s23, 4  ;;  %s3434_s26 = int_to_ptr.hbm [resolvable:$true] %s3433_s26 }
 0x203   : >> { %1571 = vst.msk [vmem:[#allocation3 + $0x58] sm:$0xff] %vm565_vm5, %v1569_v5  ;;  %v1602_v3 = vadd.f32 %v1597_v36, %v1588_v17  ;;  %v1776_v36 = vrot.slane %v1770_v26, 1  ;;  %v1838_v17 = vsel %vm693_vm7, %v1835_v13, %v1837_v4  ;;  %v1901_v4 = vld [vmem:[#allocation3 + $0x18] sm:$0xff] (%p584_p0) }
 0x204   : >> { %v4686_v58 = vpop.permute.xlu2 %1799 }
 0x205   : >> { %v1619_v37 = vadd.f32 %v1614_v25, %v1602_v3  ;;  %v1779_v47 = vsel %vm633_vm6, %v1776_v36, %v1778_v38  ;;  %v1777_v52 = vsel %vm633_vm6, %v1775_v53, %v1776_v36  ;;  %v1886_v36 = vstv %s4725_s18  ;;  %v1730_v53 = vld [vmem:[#allocation3 + $0x68] sm:$0xff]  ;;  %s3414_s18 = scalar_lea.sflag (%p584_p0), [#allocation5], %s324_s22 }
 0x206   : > { %vm2318_vm6 = vcmask (%p584_p0), 31744  }
 0x207   : >> { %v1746_v6 = vpop.permute.xlu1 %1745  ;;  %v1640_v2 = vadd.f32 %v1635_v30, %v1619_v37 }
 0x208   : >> { %v1599_v62 = vpop.permute.xlu0 %1598  ;;  %v1751_v59 = vadd.f32 %v1746_v6, %v1737_v42 }
 0x209   : >> { %v1603_v0 = vadd.f32 %v1599_v62, %v1589_v21  ;;  %v1904_v21 = vld [vmem:[#allocation3 + $0x30] sm:$0xff] (%p584_p0) }
 0x20b   : >> { %v1620_v19 = vadd.f32 %v1616_v8, %v1603_v0  ;;  %v1906_v0 = vld [vmem:[#allocation3 + $0x40] sm:$0xff] (%p584_p0)  ;;  %v1923_v8 = vsel (%p584_p0), %vm565_vm5, %v1901_v4, 0.0 }
 0x20c   : >> { %v4694_v16 = vpop.permute.xlu2 %1818  ;;  %v1986_v22 = vsel (%p584_p0), %vm565_vm5, %v1906_v0, -inf }
 0x20f   : >> { %v1762_v11 = vpop.permute.xlu1 %1761 }
 0x210   : >> { %v1760_v15 = vpop.permute.xlu0 %1759  ;;  %v1766_v45 = vadd.f32 %v1762_v11, %v1752_v18 }
 0x211   : >> { %v1765_v50 = vadd.f32 %v1760_v15, %v1751_v59 }
 0x212   : >> { %v1783_v60 = vadd.f32 %v1779_v47, %v1766_v45 }
 0x213   : >> { %v1782_v1 = vadd.f32 %v1777_v52, %v1765_v50  ;;  %v1900_v50 = vld [vmem:[#allocation3 + $0x10] sm:$0xff] (%p584_p0) }
 0x214   : >> { %v4704_v33 = vpop.permute.xlu2 %1695  ;;  %v1804_v5 = vadd.f32 %v4686_v58, %v1783_v60  ;;  %v1898_v60 = vld [vmem:[#allocation3] sm:$0xff] (%p584_p0)  ;;  %v1968_v52 = vsel (%p584_p0), %vm565_vm5, %v1900_v50, -inf }
 0x215   : > { %v1914_v63 = vsel (%p584_p0), %vm565_vm5, %v1898_v60, 0.0 }
 0x216   : > { %1915 = vadd.xlane.f32.xlu0 (%p584_p0), %v1914_v63 }
 0x217   : >> { %v1798_v54 = vpop.permute.xlu1 %1797 }
 0x218   : >> { %v1637_v40 = vpop.permute.xlu0 %1636  ;;  %v1803_v62 = vadd.f32 %v1798_v54, %v1782_v1  ;;  %v1836_v54 = vsel %vm693_vm7, %v1834_v57, %v1835_v13  ;;  %vm2362_vm7 = vcmask (%p584_p0), 64512  }
 0x219   : >> { %v1641_v44 = vadd.f32 %v1637_v40, %v1620_v19  ;;  %v1980_v19 = vsel (%p584_p0), %vm565_vm5, %v1904_v21, -inf }
 0x21a   : >> { %v1824_v27 = vadd.f32 %v4694_v16, %v1803_v62 }
 0x21c   : >> { %v1715_v41 = vpop.permute.xlu2 %1714  ;;  %v1841_v40 = vadd.f32 %v1836_v54, %v1824_v27 }
 0x21f   : >> { %v1658_v9 = vpop.permute.xlu1 %1657 }
 0x220   : >> { %v1656_v48 = vpop.permute.xlu0 %1655  ;;  %v1662_v28 = vadd.f32 %v1658_v9, %v1641_v44  ;;  %v1907_v44 = vld [vmem:[#allocation3 + $0x48] sm:$0xff] (%p584_p0) }
 0x221   : >> { %v1661_v49 = vadd.f32 %v1656_v48, %v1640_v2  ;;  %v1989_v54 = vsel (%p584_p0), %vm565_vm5, %v1907_v44, -inf }
 0x222   : >> { %v1679_v18 = vadd.f32 %v1675_v35, %v1662_v28 }
 0x223   : >> { %v1678_v29 = vadd.f32 %v1673_v55, %v1661_v49 }
 0x224   : >> { %v1880_v26 = vpop.permute.xlu2 %1879  ;;  %v1700_v16 = vadd.f32 %v4704_v33, %v1679_v18  ;;  %v1902_v33 = vld [vmem:[#allocation3 + $0x20] sm:$0xff] (%p584_p0) }
 0x225   : > { %v1926_v61 = vsel (%p584_p0), %vm565_vm5, %v1902_v33, 0.0  ;;  %v1974_v1 = vsel (%p584_p0), %vm565_vm5, %v1902_v33, -inf }
 0x226   : > { %1927 = vadd.xlane.f32.xlu1 (%p584_p0), %v1926_v61 }
 0x227   : >> { %v1694_v30 = vpop.permute.xlu1 %1693 }
 0x228   : >> { %v1699_v6 = vadd.f32 %v1694_v30, %v1678_v29  ;;  %v1821_v11 = vpop.permute.xlu0 %1820  ;;  %v1932_v29 = vsel (%p584_p0), %vm565_vm5, %v1904_v21, 0.0  ;;  %v1920_v30 = vsel (%p584_p0), %vm565_vm5, %v1900_v50, 0.0 }
 0x229   : >> { %v1825_v14 = vadd.f32 %v1821_v11, %v1804_v5  ;;  %1921 = vadd.xlane.f32.xlu0 (%p584_p0), %v1920_v30  ;;  %v1899_v5 = vld [vmem:[#allocation3 + $0x8] sm:$0xff] (%p584_p0) }
 0x22a   : >> { %v1720_v15 = vadd.f32 %v1715_v41, %v1699_v6  ;;  %v1962_v41 = vsel (%p584_p0), %vm565_vm5, %v1898_v60, -inf  ;;  %v1938_v6 = vsel (%p584_p0), %vm565_vm5, %v1906_v0, 0.0  ;;  %v1917_v10 = vsel (%p584_p0), %vm565_vm5, %v1899_v5, 0.0  ;;  %v1903_v11 = vld [vmem:[#allocation3 + $0x28] sm:$0xff] (%p584_p0) }
 0x22b   : >> { %v1842_v24 = vadd.f32 %v1838_v17, %v1825_v14  ;;  %1963 = vmax.xlane.f32.xlu2 (%p584_p0), %v1962_v41  ;;  %v1929_v13 = vsel (%p584_p0), %vm565_vm5, %v1903_v11, 0.0  ;;  %v1905_v14 = vld [vmem:[#allocation3 + $0x38] sm:$0xff] (%p584_p0) }
 0x22c   : >> { %v1724_v58 = vadd.f32 %v1723_v12, %v1720_v15  ;;  %v1935_v17 = vsel (%p584_p0), %vm565_vm5, %v1905_v14, 0.0  ;;  %v1983_v28 = vsel (%p584_p0), %vm565_vm5, %v1905_v14, -inf }
 0x22e   : >> { %v1726_v3 = vmax.f32 %v1724_v58, 0.0  ;;  %1933 = vadd.xlane.f32.xlu1 (%p584_p0), %v1932_v29  ;;  %v1971_v58 = vsel (%p584_p0), %vm565_vm5, %v1901_v4, -inf }
 0x22f   : >> { %v1859_v25 = vpop.permute.xlu1 %1858 }
 0x230   : >> { %v1731_v31 = vmax.f32 %v1729_v23, %v1726_v3  ;;  %v1863_v32 = vadd.f32 %v1859_v25, %v1842_v24  ;;  %v1857_v37 = vpop.permute.xlu0 %1856  ;;  %v1965_v23 = vsel (%p584_p0), %vm565_vm5, %v1899_v5, -inf  ;;  %v1977_v24 = vsel (%p584_p0), %vm565_vm5, %v1903_v11, -inf }
 0x231   : >> { %v1862_v2 = vadd.f32 %v1857_v37, %v1841_v40  ;;  %1918 = vadd.xlane.f32.xlu0 (%p584_p0), %v1917_v10  ;;  %v1941_v25 = vsel (%p584_p0), %vm565_vm5, %v1907_v44, 0.0 }
 0x232   : >> { %1733 = vst.msk [vmem:[#allocation3 + $0x60] sm:$0xff] %vm565_vm5, %v1731_v31  ;;  %v1884_v38 = vadd.f32 %v1880_v26, %v1863_v32  ;;  %v1909_v26 = vld [vmem:[#allocation3 + $0x58] sm:$0xff] (%p584_p0) }
 0x233   : > { %1969 = vmax.xlane.f32.xlu2 (%p584_p0), %v1968_v52  ;;  %v1947_v27 = vsel (%p584_p0), %vm565_vm5, %v1909_v26, 0.0  ;;  %v1995_v18 = vsel (%p584_p0), %vm565_vm5, %v1909_v26, -inf }
 0x234   : >> { %v1888_v20 = vadd.f32 %v1886_v36, %v1884_v38 }
 0x236   : >> { %v1890_v42 = vmax.f32 %v1888_v20, 0.0  ;;  %1924 = vadd.xlane.f32.xlu1 (%p584_p0), %v1923_v8 }
 0x237   : >> { %v1878_v45 = vpop.permute.xlu1 %1877 }
 0x238   : >> { %v1895_v9 = vmax.f32 %v1893_v39, %v1890_v42  ;;  %v1883_v46 = vadd.f32 %v1878_v45, %v1862_v2  ;;  %v1717_v47 = vpop.permute.xlu0 %1716 }
 0x239   : >> { %v1721_v48 = vadd.f32 %v1717_v47, %v1700_v16  ;;  %1975 = vmax.xlane.f32.xlu0 (%p584_p0), %v1974_v1  ;;  %v1910_v15 = vld [vmem:[#allocation3 + $0x60] sm:$0xff] (%p584_p0) }
 0x23a   : >> { %1897 = vst.msk [vmem:[#allocation3 + $0x78] sm:$0xff] %vm565_vm5, %v1895_v9  ;;  %v1887_v43 = vadd.f32 %v1886_v36, %v1883_v46  ;;  %v1950_v62 = vsel (%p584_p0), %vm565_vm5, %v1910_v15, 0.0  ;;  %v1998_v37 = vsel (%p584_p0), %vm565_vm5, %v1910_v15, -inf  ;;  %v2050_v46 = vlaneseq (%p584_p0) }
 0x23b   : >> { %v1725_v34 = vadd.f32 %v1723_v12, %v1721_v48  ;;  %1939 = vadd.xlane.f32.xlu2 (%p584_p0), %v1938_v6  ;;  %v1908_v12 = vld [vmem:[#allocation3 + $0x50] sm:$0xff] (%p584_p0) }
 0x23c   : >> { %v1889_v49 = vmax.f32 %v1887_v43, 0.0  ;;  %v1944_v7 = vsel (%p584_p0), %vm565_vm5, %v1908_v12, 0.0  ;;  %v1992_v31 = vsel (%p584_p0), %vm565_vm5, %v1908_v12, -inf }
 0x23d   : >> { %v1727_v56 = vmax.f32 %v1725_v34, 0.0  ;;  %586 = sbr.rel (!%p584_p0) target bundleno = 196 (0xc4), region = 119 }
 0x23e   : >> { %v1894_v55 = vmax.f32 %v1892_v51, %v1889_v49  ;;  %1930 = vadd.xlane.f32.xlu1 (%p584_p0), %v1929_v13  ;;  %v4786_v49 = vand.u32 (%p584_p0), 127, %v2050_v46 }
 0x23f   : >> { %v1732_v59 = vmax.f32 %v1730_v53, %v1727_v56 }
 0x240   : >> { %1896 = vst.msk [vmem:[#allocation3 + $0x70] sm:$0xff] %vm565_vm5, %v1894_v55  ;;  %v4792_v53 = vadd.s32 (%p584_p0), 4294967288, %v4786_v49  ;;  %v4804_v60 = vadd.s32 (%p584_p0), 6, %v4786_v49 }
 0x241   : >> { %1734 = vst.msk [vmem:[#allocation3 + $0x68] sm:$0xff] %vm565_vm5, %v1732_v59  ;;  %1981 = vmax.xlane.f32.xlu0 (%p584_p0), %v1980_v19  ;;  %v1913_v36 = vld [vmem:[#allocation3 + $0x78] sm:$0xff] (%p584_p0)  ;;  %v4799_v59 = vadd.s32 (%p584_p0), 2, %v4786_v49 }
 0x242   : > { %v1959_v38 = vsel %vm565_vm5, %v1913_v36, 0.0  ;;  %v2007_v20 = vsel %vm565_vm5, %v1913_v36, -inf }
 0x243   : > { %1945 = vadd.xlane.f32.xlu2 %v1944_v7 }
 0x246   : > { %1936 = vadd.xlane.f32.xlu1 %v1935_v17 }
 0x247   : > { %v1912_v57 = vld [vmem:[#allocation3 + $0x70] sm:$0xff] }
 0x248   : > { %v1956_v3 = vsel %vm565_vm5, %v1912_v57, 0.0  ;;  %v1911_v32 = vld [vmem:[#allocation3 + $0x68] sm:$0xff]  ;;  %v2004_v40 = vsel %vm565_vm5, %v1912_v57, -inf }
 0x249   : > { %1966 = vmax.xlane.f32.xlu0 %v1965_v23  ;;  %v1953_v35 = vsel %vm565_vm5, %v1911_v32, 0.0  ;;  %v2001_v39 = vsel %vm565_vm5, %v1911_v32, -inf }
 0x24b   : > { %1951 = vadd.xlane.f32.xlu2 %v1950_v62  ;;  %v4847_v62 = vadd.s32 4, %v4786_v49 }
 0x24e   : > { %1972 = vmax.xlane.f32.xlu1 %v1971_v58 }
 0x251   : > { %1942 = vadd.xlane.f32.xlu0 %v1941_v25 }
 0x253   : > { %1987 = vmax.xlane.f32.xlu2 %v1986_v22 }
 0x256   : > { %1957 = vadd.xlane.f32.xlu1 %v1956_v3 }
 0x259   : > { %1993 = vmax.xlane.f32.xlu0 %v1992_v31 }
 0x25b   : > { %1978 = vmax.xlane.f32.xlu2 %v1977_v24 }
 0x25e   : > { %1948 = vadd.xlane.f32.xlu1 %v1947_v27 }
 0x261   : > { %1999 = vmax.xlane.f32.xlu0 %v1998_v37 }
 0x263   : > { %1984 = vmax.xlane.f32.xlu2 %v1983_v28 }
 0x266   : > { %1954 = vadd.xlane.f32.xlu1 %v1953_v35 }
 0x269   : > { %2005 = vmax.xlane.f32.xlu0 %v2004_v40 }
 0x26b   : > { %1990 = vmax.xlane.f32.xlu2 %v1989_v54 }
 0x26e   : > { %1960 = vadd.xlane.f32.xlu1 %v1959_v38 }
 0x271   : > { %2002 = vmax.xlane.f32.xlu0 %v2001_v39 }
 0x273   : > { %1996 = vmax.xlane.f32.xlu2 %v1995_v18 }
 0x276   : > { %2008 = vmax.xlane.f32.xlu1 %v2007_v20 }
 0x289   : > { %v4774_v45 = vpop.xlane.xlu0 %1915 }
 0x28a   : > { %v2010_v16 = vmul.f32 0.0625, %v4774_v45  ;;  %v2052_v63 = vperm.slane %v4774_v45, %v4786_v49  ;;  %v2109_v27 = vperm.slane %v4774_v45, %v4799_v59  ;;  %v2135_v37 = vperm.slane %v4774_v45, %v4847_v62 }
 0x28b   : > { %v2161_v38 = vperm.slane %v4774_v45, %v4804_v60 }
 0x299   : > { %v4772_v2 = vpop.xlane.xlu1 %1927 }
 0x29a   : > { %v2014_v12 = vmul.f32 0.0625, %v4772_v2  ;;  %v2054_v15 = vperm.slane %v4772_v2, %v4786_v49  ;;  %v2111_v3 = vperm.slane %v4772_v2, %v4799_v59  ;;  %v2137_v24 = vperm.slane %v4772_v2, %v4847_v62 }
 0x29b   : > { %v2163_v35 = vperm.slane %v4772_v2, %v4804_v60 }
 0x29c   : > { %v4783_v48 = vpop.xlane.xlu0 %1921 }
 0x29d   : > { %v2012_v51 = vmul.f32 0.0625, %v4783_v48  ;;  %v2053_v61 = vperm.slane %v4783_v48, %v4786_v49  ;;  %v2110_v58 = vperm.slane %v4783_v48, %v4799_v59  ;;  %v2136_v25 = vperm.slane %v4783_v48, %v4847_v62 }
 0x29e   : > { %v1964_v42 = vpop.xlane.xlu2 %1963  ;;  %v2162_v36 = vperm.slane %v4783_v48, %v4804_v60 }
 0x29f   : > { %v4777_v9 = vadd.f32 %v2010_v16, %v1964_v42  ;;  %v4878_v54 = vperm.slane %v1964_v42, %v4786_v49  ;;  %v2117_v20 = vsel %vm2060_vm9, %v2110_v58, %v2109_v27  ;;  %v2061_v2 = vsel %vm2060_vm9, %v2053_v61, %v2052_v63 }
 0x2a0   : > { %v2143_v42 = vsel %vm2060_vm9, %v2136_v25, %v2135_v37 }
 0x2a1   : > { %v4779_v47 = vpop.xlane.xlu1 %1933  ;;  %v2454_v18 = vperm.slane %v4777_v9, %v4786_v49 }
 0x2a2   : > { %v2016_v57 = vmul.f32 0.0625, %v4779_v47  ;;  %v2055_v40 = vperm.slane %v4779_v47, %v4786_v49  ;;  %v2112_v39 = vperm.slane %v4779_v47, %v4799_v59  ;;  %v2138_v45 = vperm.slane %v4779_v47, %v4847_v62 }
 0x2a3   : > { %v2164_v9 = vperm.slane %v4779_v47, %v4804_v60 }
 0x2a4   : > { %v4801_v33 = vpop.xlane.xlu0 %1918 }
 0x2a5   : > { %v2242_v50 = vperm.slane %v4801_v33, %v4799_v59  ;;  %v2290_v30 = vperm.slane %v4801_v33, %v4804_v60  ;;  %v2381_v4 = vperm.slane %v4801_v33, %v4792_v53 }
 0x2a6   : > { %v4781_v43 = vpop.xlane.xlu2 %1969 }
 0x2a7   : > { %v4789_v34 = vadd.f32 %v2012_v51, %v4781_v43  ;;  %v2383_v0 = vsel %vm2382_vm8, %v2381_v4, %v2052_v63  ;;  %v2169_v51 = vsel %vm2060_vm9, %v2162_v36, %v2161_v38 }
 0x2a9   : > { %v4794_v55 = vpop.xlane.xlu1 %1924  ;;  %v2457_v4 = vperm.slane %v4789_v34, %v4786_v49 }
 0x2aa   : > { %v2384_v41 = vperm.slane %v4794_v55, %v4792_v53  ;;  %v2243_v21 = vperm.slane %v4794_v55, %v4799_v59  ;;  %v2291_v29 = vperm.slane %v4794_v55, %v4804_v60 }
 0x2ac   : > { %v2385_v52 = vsel %vm2382_vm8, %v2384_v41, %v2053_v61  ;;  %v4825_v5 = vsel %vm2060_vm9, %v2243_v21, %v2242_v50  ;;  %v2298_v10 = vsel %vm2060_vm9, %v2291_v29, %v2290_v30  ;;  %v4834_v13 = vpop.xlane.xlu0 %1975  ;;  %v2013_v61 = vmul.f32 0.0625, %v4794_v55 }
 0x2ad   : > { %v2398_v11 = vsel %vm2060_vm9, %v2385_v52, %v2383_v0  ;;  %v4841_v14 = vadd.f32 %v2014_v12, %v4834_v13  ;;  %v2118_v41 = vsel %vm2062_vm10, %v2111_v3, %v2117_v20  ;;  %v4912_v21 = vperm.slane %v4781_v43, %v4786_v49 }
 0x2ae   : > { %v4796_v56 = vpop.xlane.xlu2 %1939  ;;  %v2011_v29 = vmul.f32 0.0625, %v4801_v33  ;;  %v2144_v52 = vsel %vm2062_vm10, %v2137_v24, %v2143_v42  ;;  %v2063_v30 = vsel %vm2062_vm10, %v2054_v15, %v2061_v2 }
 0x2af   : > { %v2018_v16 = vmul.f32 0.0625, %v4796_v56  ;;  %v2065_v58 = vsel %vm2064_vm11, %v2055_v40, %v2063_v30  ;;  %v4950_v25 = vperm.slane %v4796_v56, %v4786_v49 }
 0x2b1   : > { %v4827_v8 = vpop.xlane.xlu1 %1930  ;;  %v2067_v30 = vsel %vm2066_vm12, %v4950_v25, %v2065_v58 }
 0x2b2   : > { %v2292_v7 = vperm.slane %v4827_v8, %v4804_v60  ;;  %v2386_v1 = vperm.slane %v4827_v8, %v4792_v53 }
 0x2b4   : > { %v2299_v17 = vsel %vm2062_vm10, %v2292_v7, %v2298_v10  ;;  %v2387_v19 = vsel %vm2382_vm8, %v2386_v1, %v2054_v15  ;;  %v4864_v26 = vpop.xlane.xlu0 %1981  ;;  %v2119_v1 = vsel %vm2064_vm11, %v2112_v39, %v2118_v41  ;;  %v2170_v15 = vsel %vm2062_vm10, %v2163_v35, %v2169_v51 }
 0x2b5   : > { %v2399_v44 = vsel %vm2062_vm10, %v2387_v19, %v2398_v11  ;;  %v4873_v32 = vadd.f32 %v2016_v57, %v4864_v26  ;;  %v2145_v19 = vsel %vm2064_vm11, %v2138_v45, %v2144_v52  ;;  %v2113_v57 = vperm.slane %v4796_v56, %v4799_v59 }
 0x2b6   : > { %v4829_v6 = vpop.xlane.xlu2 %1945  ;;  %v2165_v35 = vperm.slane %v4796_v56, %v4804_v60  ;;  %v2015_v39 = vmul.f32 0.0625, %v4827_v8 }
 0x2b7   : > { %v2114_v37 = vperm.slane %v4829_v6, %v4799_v59  ;;  %v2140_v36 = vperm.slane %v4829_v6, %v4847_v62  ;;  %v2166_v41 = vperm.slane %v4829_v6, %v4804_v60 }
 0x2b9   : > { %v4852_v22 = vpop.xlane.xlu1 %1936 }
 0x2ba   : > { %v2293_v28 = vperm.slane %v4852_v22, %v4804_v60  ;;  %v2388_v31 = vperm.slane %v4852_v22, %v4792_v53 }
 0x2bc   : > { %v4901_v46 = vsel %vm2064_vm11, %v2293_v28, %v2299_v17  ;;  %v2389_v48 = vsel %vm2382_vm8, %v2388_v31, %v2055_v40  ;;  %v4929_v11 = vpop.xlane.xlu0 %1966  ;;  %v2171_v31 = vsel %vm2064_vm11, %v2164_v9, %v2170_v15  ;;  %v4966_v40 = vperm.slane %v4829_v6, %v4786_v49 }
 0x2bd   : > { %v4908_v63 = vsel %vm2064_vm11, %v2389_v48, %v2399_v44  ;;  %v2027_v12 = vadd.f32 %v2011_v29, %v4929_v11  ;;  %v2409_v7 = vperm.slane %v4929_v11, %v4792_v53  ;;  %v2139_v44 = vperm.slane %v4796_v56, %v4847_v62 }
 0x2be   : > { %v4854_v23 = vpop.xlane.xlu2 %1951 }
 0x2bf   : > { %v2410_v3 = vsel %vm2382_vm8, %v2409_v7, %v4878_v54  ;;  %v2455_v24 = vperm.slane %v2027_v12, %v4792_v53  ;;  %v2141_v2 = vperm.slane %v4854_v23, %v4847_v62  ;;  %v4980_v45 = vperm.slane %v4854_v23, %v4786_v49 }
 0x2c0   : > { %v2069_v12 = vsel %vm2068_vm13, %v4966_v40, %v2067_v30 }
 0x2c1   : > { %v4914_v47 = vpop.xlane.xlu1 %1972  ;;  %v2456_v38 = vsel %vm2382_vm8, %v2455_v24, %v2454_v18  ;;  %v2120_v18 = vsel %vm2066_vm12, %v2113_v57, %v2119_v1  ;;  %v2071_v58 = vsel %vm2070_vm14, %v4980_v45, %v2069_v12 }
 0x2c2   : > { %v2029_v0 = vadd.f32 %v2013_v61, %v4914_v47  ;;  %v2411_v43 = vperm.slane %v4914_v47, %v4792_v53  ;;  %v2115_v61 = vperm.slane %v4854_v23, %v4799_v59  ;;  %v2121_v52 = vsel %vm2068_vm13, %v2114_v37, %v2120_v18 }
 0x2c4   : > { %v2412_v34 = vsel %vm2382_vm8, %v2411_v43, %v4912_v21  ;;  %v2458_v17 = vperm.slane %v2029_v0, %v4792_v53  ;;  %v4983_v48 = vpop.xlane.xlu0 %1942 }
 0x2c5   : > { %v4954_v28 = vsel %vm2060_vm9, %v2412_v34, %v2410_v3 }
 0x2c6   : > { %v4916_v50 = vpop.xlane.xlu2 %1987  ;;  %v2459_v27 = vsel %vm2382_vm8, %v2458_v17, %v2457_v4  ;;  %v2460_v4 = vperm.slane %v4841_v14, %v4786_v49  ;;  %v2167_v14 = vperm.slane %v4854_v23, %v4804_v60 }
 0x2c7   : > { %v4927_v10 = vadd.f32 %v2018_v16, %v4916_v50  ;;  %v2478_v20 = vsel %vm2060_vm9, %v2459_v27, %v2456_v38  ;;  %v2146_v16 = vsel %vm2066_vm12, %v2139_v44, %v2145_v19  ;;  %v2122_v19 = vsel %vm2070_vm14, %v2115_v61, %v2121_v52 }
 0x2c8   : > { %v2147_v29 = vsel %vm2068_vm13, %v2140_v36, %v2146_v16  ;;  %v2017_v36 = vmul.f32 0.0625, %v4852_v22  ;;  %v2172_v38 = vsel %vm2066_vm12, %v2165_v35, %v2171_v31  ;;  %v2267_v61 = vperm.slane %v4794_v55, %v4847_v62 }
 0x2c9   : > { %v4972_v56 = vpop.xlane.xlu1 %1957  ;;  %v2148_v43 = vsel %vm2070_vm14, %v2141_v2, %v2147_v29  ;;  %v2020_v2 = vmul.f32 0.0625, %v4829_v6  ;;  %v2173_v16 = vsel %vm2068_vm13, %v2166_v41, %v2172_v38  ;;  %v2266_v31 = vperm.slane %v4801_v33, %v4847_v62 }
 0x2ca   : > { %v2142_v51 = vperm.slane %v4972_v56, %v4847_v62  ;;  %v2116_v1 = vperm.slane %v4972_v56, %v4799_v59  ;;  %v5008_v15 = vperm.slane %v4972_v56, %v4786_v49  ;;  %v2168_v24 = vperm.slane %v4972_v56, %v4804_v60 }
 0x2cb   : > { %v2463_v6 = vperm.slane %v4873_v32, %v4786_v49  ;;  %v2390_v41 = vperm.slane %v4983_v48, %v4792_v53  ;;  %v2466_v38 = vperm.slane %v4927_v10, %v4786_v49 }
 0x2cc   : > { %v5002_v7 = vsel %vm2072_vm15, %v2142_v51, %v2148_v43  ;;  %v2123_v44 = vsel %vm2072_vm15, %v2116_v1, %v2122_v19  ;;  %v5022_v3 = vsel %vm2072_vm15, %v5008_v15, %v2071_v58  ;;  %v2174_v51 = vsel %vm2070_vm14, %v2167_v14, %v2173_v16 }
 0x2cd   : > { %v2151_v17 = vsel %vm2075_vm1, %v5002_v7, 0.0  ;;  %v2125_v27 = vsel %vm2075_vm1, %v2123_v44, 0.0  ;;  %v2076_v37 = vsel %vm2075_vm1, %v5022_v3, 0.0  ;;  %v2175_v29 = vsel %vm2072_vm15, %v2168_v24, %v2174_v51 }
 0x2ce   : > { %v4974_v42 = vpop.xlane.xlu2 %1978  ;;  %2152 = vadd.xlane.f32.xlu1 %v2151_v17  ;;  %2126 = vadd.xlane.f32.xlu0 %v2125_v27  ;;  %v5059_v43 = vperm.slane %v4834_v13, %v4786_v49  ;;  %v2177_v12 = vsel %vm2075_vm1, %v2175_v29, 0.0  ;;  %v2095_v1 = vsel %vm2060_vm9, %v4912_v21, %v4878_v54  ;;  %v2196_v14 = vperm.slane %v4827_v8, %v4786_v49 }
 0x2cf   : > { %v2031_v9 = vadd.f32 %v2015_v39, %v4974_v42  ;;  %2077 = vadd.xlane.f32.xlu2 %v2076_v37  ;;  %v2019_v13 = vmul.f32 0.0625, %v4983_v48  ;;  %v2268_v54 = vperm.slane %v4827_v8, %v4847_v62  ;;  %v2022_v58 = vmul.f32 0.0625, %v4854_v23 }
 0x2d0   : > { %v2197_v23 = vperm.slane %v4852_v22, %v4786_v49  ;;  %v2223_v10 = vperm.slane %v4974_v42, %v4786_v49 }
 0x2d1   : > { %v2461_v0 = vperm.slane %v2031_v9, %v4792_v53  ;;  %v1994_v9 = vpop.xlane.xlu0 %1993 }
 0x2d2   : > { %v5043_v35 = vadd.f32 %v2020_v2, %v1994_v9  ;;  %v2221_v2 = vperm.slane %v4929_v11, %v4786_v49  ;;  %v2270_v11 = vperm.slane %v4983_v48, %v4847_v62  ;;  %v5127_v29 = vperm.slane %v1994_v9, %v4786_v49 }
 0x2d3   : > { %v2462_v34 = vsel %vm2382_vm8, %v2461_v0, %v2460_v4  ;;  %v2195_v4 = vperm.slane %v4794_v55, %v4786_v49  ;;  %v2194_v0 = vperm.slane %v4801_v33, %v4786_v49  ;;  %v2274_v55 = vsel %vm2060_vm9, %v2267_v61, %v2266_v31 }
 0x2d4   : > { %v2479_v57 = vsel %vm2062_vm10, %v2462_v34, %v2478_v20  ;;  %v5031_v20 = vpop.xlane.xlu1 %1948  ;;  %v2244_v33 = vperm.slane %v4827_v8, %v4799_v59  ;;  %v2391_v34 = vsel %vm2382_vm8, %v2390_v41, %v4950_v25  ;;  %v2096_v25 = vsel %vm2062_vm10, %v5059_v43, %v2095_v1 }
 0x2d5   : > { %v2392_v52 = vperm.slane %v5031_v20, %v4792_v53  ;;  %v2401_v44 = vsel %vm2066_vm12, %v2391_v34, %v4908_v63  ;;  %v2202_v37 = vsel %vm2060_vm9, %v2195_v4, %v2194_v0  ;;  %v2269_v63 = vperm.slane %v4852_v22, %v4847_v62 }
 0x2d6   : > { %v5033_v39 = vpop.xlane.xlu2 %1984  ;;  %2178 = vadd.xlane.f32.xlu1 %v2177_v12  ;;  %v2275_v51 = vsel %vm2062_vm10, %v2268_v54, %v2274_v55  ;;  %v5117_v61 = vsel %vm2062_vm10, %v2244_v33, %v4825_v5  ;;  %v2024_v12 = vmul.f32 0.0625, %v4972_v56  ;;  %v2246_v55 = vperm.slane %v4983_v48, %v4799_v59 }
 0x2d7   : > { %v2033_v18 = vadd.f32 %v2017_v36, %v5033_v39  ;;  %v2393_v17 = vsel %vm2382_vm8, %v2392_v52, %v4966_v40  ;;  %v5090_v40 = vperm.slane %v4864_v26, %v4786_v49  ;;  %v5104_v26 = vperm.slane %v4916_v50, %v4786_v49 }
 0x2d8   : > { %v5131_v41 = vsel %vm2068_vm13, %v2393_v17, %v2401_v44  ;;  %v2224_v17 = vperm.slane %v5033_v39, %v4786_v49 }
 0x2d9   : > { %v2464_v30 = vperm.slane %v2033_v18, %v4792_v53  ;;  %v2000_v27 = vpop.xlane.xlu0 %1999  ;;  %v2245_v18 = vperm.slane %v4852_v22, %v4799_v59  ;;  %v2097_v50 = vsel %vm2064_vm11, %v5090_v40, %v2096_v25 }
 0x2da   : > { %v5100_v36 = vadd.f32 %v2022_v58, %v2000_v27  ;;  %v2098_v52 = vsel %vm2066_vm12, %v5104_v26, %v2097_v50  ;;  %v5140_v4 = vperm.slane %v2000_v27, %v4786_v49 }
 0x2db   : > { %v2465_v32 = vsel %vm2382_vm8, %v2464_v30, %v2463_v6  ;;  %v2276_v6 = vsel %vm2064_vm11, %v2269_v63, %v2275_v51  ;;  %v2099_v56 = vsel %vm2068_vm13, %v5127_v29, %v2098_v52  ;;  %v2247_v52 = vperm.slane %v5031_v20, %v4799_v59 }
 0x2dc   : > { %v5078_v21 = vpop.xlane.xlu1 %1954  ;;  %v2480_v24 = vsel %vm2064_vm11, %v2465_v32, %v2479_v57  ;;  %v2222_v57 = vperm.slane %v4914_v47, %v4786_v49  ;;  %v2203_v47 = vsel %vm2062_vm10, %v2196_v14, %v2202_v37  ;;  %v2021_v32 = vmul.f32 0.0625, %v5031_v20 }
 0x2dd   : > { %v2204_v0 = vsel %vm2064_vm11, %v2197_v23, %v2203_v47  ;;  %v2198_v14 = vperm.slane %v4983_v48, %v4786_v49  ;;  %v2277_v34 = vsel %vm2066_vm12, %v2270_v11, %v2276_v6  ;;  %v2100_v44 = vsel %vm2070_vm14, %v5140_v4, %v2099_v56 }
 0x2de   : > { %v5080_v19 = vpop.xlane.xlu2 %1990  ;;  %v2229_v30 = vsel %vm2060_vm9, %v2222_v57, %v2221_v2  ;;  %v2272_v25 = vperm.slane %v5078_v21, %v4847_v62  ;;  %v2200_v23 = vperm.slane %v5078_v21, %v4786_v49  ;;  %v2394_v63 = vperm.slane %v5078_v21, %v4792_v53 }
 0x2df   : > { %v2035_v8 = vadd.f32 %v2019_v13, %v5080_v19  ;;  %v2230_v1 = vsel %vm2062_vm10, %v2223_v10, %v2229_v30  ;;  %v2023_v51 = vmul.f32 0.0625, %v5078_v21  ;;  %v2205_v10 = vsel %vm2066_vm12, %v2198_v14, %v2204_v0 }
 0x2e0   : > { %v2231_v11 = vsel %vm2064_vm11, %v2224_v17, %v2230_v1  ;;  %v2225_v30 = vperm.slane %v5080_v19, %v4786_v49 }
 0x2e1   : > { %v2467_v16 = vperm.slane %v2035_v8, %v4792_v53  ;;  %v2006_v13 = vpop.xlane.xlu0 %2005  ;;  %v2199_v8 = vperm.slane %v5031_v20, %v4786_v49 }
 0x2e2   : > { %v2040_v54 = vadd.f32 %v2024_v12, %v2006_v13  ;;  %v5160_v58 = vperm.slane %v2006_v13, %v4786_v49  ;;  %v2395_v12 = vsel %vm2382_vm8, %v2394_v63, %v4980_v45  ;;  %v2248_v63 = vperm.slane %v5078_v21, %v4799_v59 }
 0x2e3   : > { %v2468_v31 = vsel %vm2382_vm8, %v2467_v16, %v2466_v38  ;;  %v2206_v0 = vsel %vm2068_vm13, %v2199_v8, %v2205_v10 }
 0x2e4   : > { %v5134_v5 = vsel %vm2066_vm12, %v2468_v31, %v2480_v24  ;;  %v5143_v9 = vpop.xlane.xlu1 %1960  ;;  %v2271_v24 = vperm.slane %v5031_v20, %v4847_v62  ;;  %v5173_v37 = vsel %vm2072_vm15, %v5160_v58, %v2100_v44  ;;  %v2469_v31 = vperm.slane %v5043_v35, %v4786_v49 }
 0x2e5   : > { %v2181_v57 = vsel %vm2180_vm2, %v5173_v37, -inf  ;;  %v2129_v38 = vsel %vm2128_vm3, %v5173_v37, -inf  ;;  %v2103_v2 = vsel %vm2075_vm1, %v5173_v37, -inf  ;;  %v2025_v16 = vmul.f32 0.0625, %v5143_v9 }
 0x2e6   : > { %v5152_v33 = vpop.xlane.xlu2 %1996  ;;  %2182 = vmax.xlane.f32.xlu1 %v2181_v57  ;;  %2130 = vmax.xlane.f32.xlu0 %v2129_v38  ;;  %v2273_v47 = vperm.slane %v5143_v9, %v4847_v62  ;;  %v2201_v50 = vperm.slane %v5143_v9, %v4786_v49  ;;  %v2278_v6 = vsel %vm2068_vm13, %v2271_v24, %v2277_v34  ;;  %v2155_v10 = vsel %vm2154_vm4, %v5173_v37, -inf }
 0x2e7   : > { %v2037_v27 = vadd.f32 %v2021_v32, %v5152_v33  ;;  %2104 = vmax.xlane.f32.xlu2 %v2103_v2  ;;  %v2226_v35 = vperm.slane %v5152_v33, %v4786_v49  ;;  %v2279_v13 = vsel %vm2070_vm14, %v2272_v25, %v2278_v6  ;;  %v2207_v34 = vsel %vm2070_vm14, %v2200_v23, %v2206_v0 }
 0x2e8   : > { %v2475_v17 = vperm.slane %v2040_v54, %v4786_v49  ;;  %v2280_v44 = vsel %vm2072_vm15, %v2273_v47, %v2279_v13  ;;  %v5217_v24 = vsel %vm2072_vm15, %v2201_v50, %v2207_v34  ;;  %v2403_v25 = vsel %vm2070_vm14, %v2395_v12, %v5131_v41 }
 0x2e9   : > { %v2470_v62 = vperm.slane %v2037_v27, %v4792_v53  ;;  %v5209_v14 = vpop.xlane.xlu0 %2002  ;;  %v2396_v27 = vperm.slane %v5143_v9, %v4792_v53  ;;  %v2232_v54 = vsel %vm2066_vm12, %v2225_v30, %v2231_v11  ;;  %v2282_v38 = vsel %vm2075_vm1, %v2280_v44, 0.0 }
 0x2ea   : > { %v2039_v56 = vadd.f32 %v2023_v51, %v5209_v14  ;;  %v2227_v8 = vperm.slane %v5209_v14, %v4786_v49  ;;  %v2210_v2 = vsel %vm2075_vm1, %v5217_v24, 0.0  ;;  %v2472_v41 = vperm.slane %v5100_v36, %v4786_v49 }
 0x2eb   : > { %v2471_v57 = vsel %vm2382_vm8, %v2470_v62, %v2469_v31  ;;  %v2233_v47 = vsel %vm2068_vm13, %v2226_v35, %v2232_v54  ;;  %v2252_v36 = vsel %vm2064_vm11, %v2245_v18, %v5117_v61  ;;  %v2294_v12 = vperm.slane %v4983_v48, %v4804_v60 }
 0x2ec   : > { %v5201_v32 = vpop.xlane.xlu1 %2008  ;;  %v2473_v23 = vperm.slane %v2039_v56, %v4792_v53  ;;  %v2234_v11 = vsel %vm2070_vm14, %v2227_v8, %v2233_v47  ;;  %v2482_v30 = vsel %vm2068_vm13, %v2471_v57, %v5134_v5  ;;  %v2295_v13 = vperm.slane %v5031_v20, %v4804_v60 }
 0x2ed   : > { %v2041_v1 = vadd.f32 %v2025_v16, %v5201_v32  ;;  %v2397_v16 = vsel %vm2382_vm8, %v2396_v27, %v5008_v15  ;;  %v2228_v50 = vperm.slane %v5201_v32, %v4786_v49  ;;  %v2249_v15 = vperm.slane %v5143_v9, %v4799_v59 }
 0x2ee   : > { %2283 = vadd.xlane.f32.xlu1 %v2282_v38  ;;  %2211 = vadd.xlane.f32.xlu0 %v2210_v2  ;;  %v2253_v49 = vsel %vm2066_vm12, %v2246_v55, %v2252_v36  ;;  %v5257_v31 = vsel %vm2072_vm15, %v2397_v16, %v2403_v25  ;;  %v2474_v6 = vsel %vm2382_vm8, %v2473_v23, %v2472_v41  ;;  %v2326_v34 = vsel %vm2318_vm6, %v5022_v3, 0.0 }
 0x2ef   : > { %v2476_v45 = vperm.slane %v2041_v1, %v4792_v53  ;;  %2156 = vmax.xlane.f32.xlu2 %v2155_v10  ;;  %v2254_v62 = vsel %vm2068_vm13, %v2247_v52, %v2253_v49  ;;  %v2483_v0 = vsel %vm2070_vm14, %v2474_v6, %v2482_v30  ;;  %v5265_v22 = vsel %vm2072_vm15, %v2228_v50, %v2234_v11 }
 0x2f0   : > { %v2255_v18 = vsel %vm2070_vm14, %v2248_v63, %v2254_v62  ;;  %v2261_v55 = vsel %vm2128_vm3, %v5265_v22, -inf  ;;  %v2237_v5 = vsel %vm2075_vm1, %v5265_v22, -inf  ;;  %v2285_v35 = vsel %vm2154_vm4, %v5265_v22, -inf }
 0x2f1   : > { %v2477_v51 = vsel %vm2382_vm8, %v2476_v45, %v2475_v17  ;;  %v2256_v61 = vsel %vm2072_vm15, %v2249_v15, %v2255_v18  ;;  %v2334_v1 = vsel %vm2318_vm6, %v5002_v7, 0.0  ;;  %v2296_v17 = vperm.slane %v5078_v21, %v4804_v60 }
 0x2f2   : > { %v5269_v59 = vsel %vm2072_vm15, %v2477_v51, %v2483_v0  ;;  %v2258_v52 = vsel %vm2075_vm1, %v2256_v61, 0.0  ;;  %v2297_v48 = vperm.slane %v5143_v9, %v4804_v60  ;;  %v2301_v56 = vsel %vm2066_vm12, %v2294_v12, %v4901_v46 }
 0x2f3   : > { %v2302_v7 = vsel %vm2068_vm13, %v2295_v13, %v2301_v56  ;;  %v2351_v8 = vsel %vm2318_vm6, %v2280_v44, 0.0  ;;  %v2343_v27 = vsel %vm2318_vm6, %v5217_v24, 0.0  ;;  %vm2337_vm3 = vcmask 64544  }
 0x2f4   : > { %v2303_v45 = vsel %vm2070_vm14, %v2296_v17, %v2302_v7  ;;  %v2413_v60 = vperm.slane %v4974_v42, %v4792_v53  ;;  %v2415_v46 = vperm.slane %v5033_v39, %v4792_v53  ;;  %v2363_v9 = vsel %vm2362_vm7, %v5022_v3, 0.0 }
 0x2f5   : > { %v2304_v20 = vsel %vm2072_vm15, %v2297_v48, %v2303_v45  ;;  %v2338_v44 = vsel %vm2337_vm3, %v5173_v37, -inf  ;;  %v2417_v25 = vperm.slane %v5080_v19, %v4792_v53  ;;  %v2329_v54 = vsel %vm2318_vm6, %v5173_v37, -inf }
 0x2f6   : > { %2262 = vmax.xlane.f32.xlu1 %v2261_v55  ;;  %2238 = vmax.xlane.f32.xlu0 %v2237_v5  ;;  %v2306_v21 = vsel %vm2075_vm1, %v2304_v20, 0.0  ;;  %v2419_v42 = vperm.slane %v5152_v33, %v4792_v53  ;;  %v2414_v39 = vsel %vm2382_vm8, %v2413_v60, %v5059_v43  ;;  %v2421_v3 = vperm.slane %v5209_v14, %v4792_v53 }
 0x2f7   : > { %2259 = vadd.xlane.f32.xlu2 %v2258_v52  ;;  %v2416_v23 = vsel %vm2382_vm8, %v2415_v46, %v5090_v40  ;;  %v2418_v19 = vsel %vm2382_vm8, %v2417_v25, %v5104_v26  ;;  %v2426_v63 = vsel %vm2062_vm10, %v2414_v39, %v4954_v28  ;;  %v2423_v57 = vperm.slane %v5201_v32, %v4792_v53 }
 0x2f8   : > { %v2420_v33 = vsel %vm2382_vm8, %v2419_v42, %v5127_v29  ;;  %v2422_v43 = vsel %vm2382_vm8, %v2421_v3, %v5140_v4  ;;  %v2427_v14 = vsel %vm2064_vm11, %v2416_v23, %v2426_v63  ;;  %v2366_v40 = vsel %vm2362_vm7, %v5173_v37, -inf }
 0x2f9   : > { %v2346_v26 = vsel %vm2318_vm6, %v5265_v22, -inf  ;;  %v2428_v38 = vsel %vm2066_vm12, %v2418_v19, %v2427_v14  ;;  %v2309_v28 = vsel %vm2180_vm2, %v5265_v22, -inf  ;;  %v2424_v29 = vsel %vm2382_vm8, %v2423_v57, %v5160_v58 }
 0x2fa   : > { %v2429_v53 = vsel %vm2068_vm13, %v2420_v33, %v2428_v38  ;;  %v2354_v2 = vsel %vm2337_vm3, %v5265_v22, -inf  ;;  %v2371_v16 = vsel %vm2362_vm7, %v5217_v24, 0.0  ;;  %v2406_v51 = vsel %vm565_vm5, %v5257_v31, 0.0 }
 0x2fb   : > { %v2430_v4 = vsel %vm2070_vm14, %v2422_v43, %v2429_v53  ;;  %v2374_v58 = vsel %vm2362_vm7, %v5265_v22, -inf  ;;  %vm2316_vm8 = vcmask 23552   ;;  %vm2320_vm2 = vcmask 39936  }
 0x2fc   : > { %v2431_v37 = vsel %vm2072_vm15, %v2424_v29, %v2430_v4  ;;  %vm2322_vm4 = vcmask 48128   ;;  %vm2324_vm7 = vcmask 56320   ;;  %vm2503_vm3 = vcmask 244736  }
 0x2fd   : > { %v2433_v32 = vsel %vm565_vm5, %v2431_v37, -inf }
 0x2fe   : > { %2286 = vmax.xlane.f32.xlu1 %v2285_v35  ;;  %2335 = vadd.xlane.f32.xlu0 %v2334_v1 }
 0x2ff   : > { %2327 = vadd.xlane.f32.xlu2 %v2326_v34 }
 0x306   : > { %2352 = vadd.xlane.f32.xlu1 %v2351_v8  ;;  %2344 = vadd.xlane.f32.xlu0 %v2343_v27 }
 0x307   : > { %2307 = vadd.xlane.f32.xlu2 %v2306_v21 }
 0x30e   : > { %2364 = vadd.xlane.f32.xlu1 %v2363_v9  ;;  %2339 = vmax.xlane.f32.xlu0 %v2338_v44 }
 0x30f   : > { %2330 = vmax.xlane.f32.xlu2 %v2329_v54 }
 0x316   : > { %2367 = vmax.xlane.f32.xlu1 %v2366_v40  ;;  %2347 = vmax.xlane.f32.xlu0 %v2346_v26 }
 0x317   : > { %2310 = vmax.xlane.f32.xlu2 %v2309_v28 }
 0x31e   : > { %2434 = vmax.xlane.f32.xlu1 %v2433_v32  ;;  %2355 = vmax.xlane.f32.xlu0 %v2354_v2 }
 0x31f   : > { %2372 = vadd.xlane.f32.xlu2 %v2371_v16 }
 0x326   : > { %2407 = vadd.xlane.f32.xlu0 %v2406_v51 }
 0x327   : > { %2375 = vmax.xlane.f32.xlu2 %v2374_v58 }
 0x341   : > { %v2153_v41 = vpop.xlane.xlu1 %2152  ;;  %v2127_v47 = vpop.xlane.xlu0 %2126 }
 0x342   : > { %v2078_v50 = vpop.xlane.xlu2 %2077  ;;  %v2132_v52 = vmul.f32 0.03125, %v2127_v47  ;;  %v2158_v12 = vmul.f32 0.03125, %v2153_v41 }
 0x343   : > { %v2106_v5 = vmul.f32 0.03125, %v2078_v50 }
 0x349   : > { %v2179_v10 = vpop.xlane.xlu1 %2178 }
 0x34a   : > { %v2184_v56 = vmul.f32 0.03125, %v2179_v10 }
 0x359   : > { %v2131_v11 = vpop.xlane.xlu0 %2130  ;;  %v2183_v36 = vpop.xlane.xlu1 %2182 }
 0x35a   : > { %v2105_v15 = vpop.xlane.xlu2 %2104  ;;  %v2133_v1 = vadd.f32 %v2132_v52, %v2131_v11  ;;  %v2185_v21 = vadd.f32 %v2184_v56, %v2183_v36  ;;  %v2510_v52 = vld [vmem:[%s6278_s3 + $0x28] sm:$0xff] }
 0x35b   : > { %v2107_v35 = vadd.f32 %v2106_v5, %v2105_v15 }
 0x35d   : > { %v2314_v7 = vsel %vm424_vm0, %v2107_v35, %v2133_v1  ;;  %v2512_v35 = vld [vmem:[%s6278_s3 + $0x38] sm:$0xff]  ;;  %v2513_v1 = vld [vmem:[%s6278_s3 + $0x40] sm:$0xff] }
 0x361   : > { %v2212_v49 = vpop.xlane.xlu0 %2211  ;;  %v2284_v6 = vpop.xlane.xlu1 %2283 }
 0x362   : > { %v2157_v24 = vpop.xlane.xlu2 %2156  ;;  %v2240_v17 = vmul.f32 0.03125, %v2212_v49  ;;  %v2288_v60 = vmul.f32 0.03125, %v2284_v6 }
 0x363   : > { %v2159_v13 = vadd.f32 %v2158_v12, %v2157_v24  ;;  %v2511_v12 = vld [vmem:[%s6278_s3 + $0x30] sm:$0xff] }
 0x365   : > { %v2315_v20 = vsel %vm2075_vm1, %v2314_v7, %v2159_v13  ;;  %v2514_v13 = vld [vmem:[%s6278_s3 + $0x48] sm:$0xff] }
 0x366   : > { %v2317_v9 = vsel %vm2316_vm8, %v2315_v20, %v2185_v21 }
 0x369   : > { %v2239_v30 = vpop.xlane.xlu0 %2238  ;;  %v2263_v0 = vpop.xlane.xlu1 %2262 }
 0x36a   : > { %v2260_v62 = vpop.xlane.xlu2 %2259  ;;  %v2241_v8 = vadd.f32 %v2240_v17, %v2239_v30  ;;  %v2505_v30 = vld [vmem:[%s6278_s3] sm:$0xff] }
 0x36b   : > { %v2264_v45 = vmul.f32 0.03125, %v2260_v62 }
 0x36c   : > { %v2319_v44 = vsel %vm2318_vm6, %v2317_v9, %v2241_v8  ;;  %vm2499_vm6 = vcmask 195584  }
 0x36d   : > { %v2265_v46 = vadd.f32 %v2264_v45, %v2263_v0 }
 0x36f   : > { %v2321_v23 = vsel %vm2320_vm2, %v2319_v44, %v2265_v46 }
 0x371   : > { %v2336_v18 = vpop.xlane.xlu0 %2335  ;;  %v2287_v55 = vpop.xlane.xlu1 %2286 }
 0x372   : > { %v2328_v31 = vpop.xlane.xlu2 %2327  ;;  %v2289_v25 = vadd.f32 %v2288_v60, %v2287_v55  ;;  %v2341_v63 = vmul.f32 0.015625, %v2336_v18 }
 0x373   : > { %v2332_v19 = vmul.f32 0.015625, %v2328_v31  ;;  %v2506_v31 = vld [vmem:[%s6278_s3 + $0x8] sm:$0xff] }
 0x374   : > { %v2323_v57 = vsel %vm2322_vm4, %v2321_v23, %v2289_v25 }
 0x379   : > { %v2345_v61 = vpop.xlane.xlu0 %2344  ;;  %v2353_v27 = vpop.xlane.xlu1 %2352 }
 0x37a   : > { %v2308_v22 = vpop.xlane.xlu2 %2307  ;;  %v2349_v33 = vmul.f32 0.015625, %v2345_v61  ;;  %v2357_v28 = vmul.f32 0.015625, %v2353_v27  ;;  %v2507_v61 = vld [vmem:[%s6278_s3 + $0x10] sm:$0xff] }
 0x37b   : > { %v2312_v54 = vmul.f32 0.03125, %v2308_v22  ;;  %v2509_v22 = vld [vmem:[%s6278_s3 + $0x20] sm:$0xff] }
 0x381   : > { %v2340_v34 = vpop.xlane.xlu0 %2339  ;;  %v2365_v40 = vpop.xlane.xlu1 %2364 }
 0x382   : > { %v2331_v48 = vpop.xlane.xlu2 %2330  ;;  %v2342_v26 = vadd.f32 %v2341_v63, %v2340_v34  ;;  %v2369_v51 = vmul.f32 0.0078125, %v2365_v40 }
 0x383   : > { %v2333_v14 = vadd.f32 %v2332_v19, %v2331_v48 }
 0x385   : > { %v2359_v29 = vsel %vm424_vm0, %v2333_v14, %v2342_v26 }
 0x389   : > { %v2348_v42 = vpop.xlane.xlu0 %2347  ;;  %v2368_v16 = vpop.xlane.xlu1 %2367 }
 0x38a   : > { %v2311_v39 = vpop.xlane.xlu2 %2310  ;;  %v2350_v38 = vadd.f32 %v2349_v33, %v2348_v42  ;;  %v2370_v47 = vadd.f32 %v2369_v51, %v2368_v16 }
 0x38b   : > { %v2313_v3 = vadd.f32 %v2312_v54, %v2311_v39 }
 0x38c   : > { %v2360_v32 = vsel %vm2075_vm1, %v2359_v29, %v2350_v38  ;;  %vm2501_vm1 = vcmask 228352  }
 0x38d   : > { %v2325_v43 = vsel %vm2324_vm7, %v2323_v57, %v2313_v3 }
 0x38e   : > { %2487 = vrot.lane.b32.xlu2 %v2325_v43, %s3850_s25  ;;  %s3778_s25 = sshra.s32 %s3434_s26, 4  ;;  %s3779_s25 = int_to_ptr.hbm [resolvable:$true] %s3778_s25 }
 0x38f   : > { %s3780_s9 = scalar_lea.hbm %s3779_s25, 16  ;;  %p3785_p4 = scmp.lt.s32.totalorder %s3779_s25, %s6282_s7 }
 0x390   : > { %p3781_p1 = scmp.ne.s32.totalorder %s3779_s25, %s3780_s9 }
 0x391   : > { %v2356_v53 = vpop.xlane.xlu0 %2355  ;;  %v2435_v15 = vpop.xlane.xlu1 %2434 }
 0x392   : > { %v2373_v4 = vpop.xlane.xlu2 %2372  ;;  %v2358_v37 = vadd.f32 %v2357_v28, %v2356_v53  ;;  %p3782_p2 = pnand %p3781_p1, %p3938_p5 }
 0x393   : > { %v2377_v58 = vmul.f32 0.0078125, %v2373_v4 }
 0x394   : > { %v2361_v2 = vsel %vm2316_vm8, %v2360_v32, %v2358_v37  ;;  %v2515_v32 = vld [vmem:[%s6278_s3 + $0x50] sm:$0xff]  ;;  %p3783_p3 = pneg %p3782_p2 }
 0x395   : > { %2491 = vrot.lane.b32.xlu0 %v2361_v2, %s3851_s10  ;;  %v2516_v2 = vld [vmem:[%s6278_s3 + $0x58] sm:$0xff] }
 0x399   : > { %v2408_v11 = vpop.xlane.xlu0 %2407 }
 0x39a   : > { %v2376_v41 = vpop.xlane.xlu2 %2375  ;;  %v2436_v36 = vmul.f32 0.00390625, %v2408_v11 }
 0x39b   : > { %v2378_v50 = vadd.f32 %v2377_v58, %v2376_v41 }
 0x39c   : > { %v2437_v62 = vadd.f32 %v2436_v36, %v2435_v15 }
 0x39d   : > { %v2379_v10 = vsel %vm424_vm0, %v2370_v47, %v2378_v50  ;;  %vm2537_vm0 = vcmask 252928   ;;  %v2517_v47 = vld [vmem:[%s6278_s3 + $0x60] sm:$0xff]  ;;  %v2518_v50 = vld [vmem:[%s6278_s3 + $0x68] sm:$0xff] }
 0x39e   : > { %2495 = vrot.lane.b32.xlu1 %v2379_v10, %s3852_s12 }
 0x3e8   : > { %v2488_v49 = vpop.permute.xlu2 %2487 }
 0x3e9   : > { %v2498_v6 = vsel %vm565_vm5, %v5269_v59, %v2488_v49  ;;  %v2508_v59 = vld [vmem:[%s6278_s3 + $0x18] sm:$0xff]  ;;  %v2519_v49 = vld [vmem:[%s6278_s3 + $0x70] sm:$0xff] }
 0x407   : > { %v2492_v24 = vpop.permute.xlu0 %2491 }
 0x408   : > { %v2500_v0 = vsel %vm2499_vm6, %v2498_v6, %v2492_v24  ;;  %v2520_v24 = vld [vmem:[%s6278_s3 + $0x78] sm:$0xff] }
 0x410   : > { %v2496_v18 = vpop.permute.xlu1 %2495 }
 0x411   : > { %v2502_v55 = vsel %vm2501_vm1, %v2500_v0, %v2496_v18 }
 0x412   : > { %v5377_v5 = vsel %vm2503_vm3, %v2502_v55, %v2437_v62 }
 0x413   : > { %v2521_v34 = vmul.f32 %v2505_v30, %v5377_v5  ;;  %v2522_v17 = vmul.f32 %v2506_v31, %v5377_v5  ;;  %v2523_v48 = vmul.f32 %v2507_v61, %v5377_v5  ;;  %v2524_v56 = vmul.f32 %v2508_v59, %v5377_v5 }
 0x414   : > { %v2525_v7 = vmul.f32 %v2509_v22, %v5377_v5  ;;  %v2526_v45 = vmul.f32 %v2510_v52, %v5377_v5  ;;  %v2527_v20 = vmul.f32 %v2511_v12, %v5377_v5  ;;  %v2528_v8 = vmul.f32 %v2512_v35, %v5377_v5 }
 0x415   : > { %v2529_v27 = vmul.f32 %v2513_v1, %v5377_v5  ;;  %v2530_v21 = vmul.f32 %v2514_v13, %v5377_v5  ;;  %v2538_v60 = vsel %vm2537_vm0, %v2521_v34, 0.0  ;;  %v2545_v46 = vsel %vm2537_vm0, %v2522_v17, 0.0 }
 0x416   : > { %v2552_v9 = vsel %vm2537_vm0, %v2523_v48, 0.0  ;;  %v2559_v44 = vsel %vm2537_vm0, %v2524_v56, 0.0  ;;  %v2539_v25 = vrot.slane %v2538_v60, 4  ;;  %v2546_v54 = vrot.slane %v2545_v46, 4 }
 0x417   : > { %v2553_v42 = vrot.slane %v2552_v9, 4  ;;  %v2560_v39 = vrot.slane %v2559_v44, 4  ;;  %v2566_v3 = vsel %vm2537_vm0, %v2525_v7, 0.0  ;;  %v2573_v23 = vsel %vm2537_vm0, %v2526_v45, 0.0 }
 0x418   : > { %v2580_v19 = vsel %vm2537_vm0, %v2527_v20, 0.0  ;;  %v2587_v63 = vsel %vm2537_vm0, %v2528_v8, 0.0  ;;  %v2540_v57 = vadd.f32 %v2539_v25, %v2538_v60  ;;  %v2547_v33 = vadd.f32 %v2546_v54, %v2545_v46 }
 0x419   : > { %v2554_v43 = vadd.f32 %v2553_v42, %v2552_v9  ;;  %v2561_v14 = vadd.f32 %v2560_v39, %v2559_v44  ;;  %v2567_v40 = vrot.slane %v2566_v3, 4  ;;  %v2574_v26 = vrot.slane %v2573_v23, 4 }
 0x41a   : > { %v2581_v38 = vrot.slane %v2580_v19, 4  ;;  %v2588_v28 = vrot.slane %v2587_v63, 4  ;;  %v2541_v53 = vrot.slane %v2540_v57, 2  ;;  %v2548_v29 = vrot.slane %v2547_v33, 2 }
 0x41b   : > { %v2555_v4 = vrot.slane %v2554_v43, 2  ;;  %v2562_v37 = vrot.slane %v2561_v14, 2  ;;  %v2568_v16 = vadd.f32 %v2567_v40, %v2566_v3  ;;  %v2575_v51 = vadd.f32 %v2574_v26, %v2573_v23 }
 0x41c   : > { %v2582_v58 = vadd.f32 %v2581_v38, %v2580_v19  ;;  %v2589_v41 = vadd.f32 %v2588_v28, %v2587_v63  ;;  %v2542_v10 = vadd.f32 %v2541_v53, %v2540_v57  ;;  %v2549_v11 = vadd.f32 %v2548_v29, %v2547_v33 }
 0x41d   : > { %v5424_v15 = vadd.f32 %v2555_v4, %v2554_v43  ;;  %v5426_v36 = vadd.f32 %v2562_v37, %v2561_v14  ;;  %v2569_v6 = vrot.slane %v2568_v16, 2  ;;  %v2576_v30 = vrot.slane %v2575_v51, 2 }
 0x41e   : > { %v2583_v62 = vrot.slane %v2582_v58, 2  ;;  %v2590_v0 = vrot.slane %v2589_v41, 2  ;;  %v2531_v18 = vmul.f32 %v2515_v32, %v5377_v5  ;;  %v2532_v31 = vmul.f32 %v2516_v2, %v5377_v5 }
 0x41f   : > { %v2543_v61 = vrot.slane %v2542_v10, 1  ;;  %v2550_v59 = vrot.slane %v2549_v11, 1  ;;  %v5436_v55 = vadd.f32 %v2569_v6, %v2568_v16  ;;  %v5438_v22 = vadd.f32 %v2576_v30, %v2575_v51 }
 0x420   : > { %v5440_v52 = vadd.f32 %v2583_v62, %v2582_v58  ;;  %v5442_v12 = vadd.f32 %v2590_v0, %v2589_v41  ;;  %v2533_v35 = vmul.f32 %v2517_v47, %v5377_v5  ;;  %v2534_v1 = vmul.f32 %v2518_v50, %v5377_v5 }
 0x421   : > { %v2535_v13 = vmul.f32 %v2519_v49, %v5377_v5  ;;  %v2536_v34 = vmul.f32 %v2520_v24, %v5377_v5  ;;  %v5448_v17 = vadd.f32 %v2543_v61, %v2542_v10  ;;  %v5450_v48 = vadd.f32 %v2550_v59, %v2549_v11 }
 0x422   : > { %v2557_v56 = vrot.slane %v5424_v15, 1  ;;  %v2564_v7 = vrot.slane %v5426_v36, 1  ;;  %v2594_v45 = vsel %vm2537_vm0, %v2529_v27, 0.0  ;;  %v2601_v20 = vsel %vm2537_vm0, %v2530_v21, 0.0 }
 0x423   : > { %v2608_v8 = vsel %vm2537_vm0, %v2531_v18, 0.0  ;;  %v2615_v60 = vsel %vm2537_vm0, %v2532_v31, 0.0  ;;  %v2571_v46 = vrot.slane %v5436_v55, 1  ;;  %v2578_v5 = vrot.slane %v5438_v22, 1 }
 0x424   : > { %v2585_v9 = vrot.slane %v5440_v52, 1  ;;  %v2592_v44 = vrot.slane %v5442_v12, 1  ;;  %v2595_v25 = vrot.slane %v2594_v45, 4  ;;  %v2602_v54 = vrot.slane %v2601_v20, 4 }
 0x425   : > { %v2609_v42 = vrot.slane %v2608_v8, 4  ;;  %v2616_v39 = vrot.slane %v2615_v60, 4  ;;  %v2622_v27 = vsel %vm2537_vm0, %v2533_v35, 0.0  ;;  %v2629_v21 = vsel %vm2537_vm0, %v2534_v1, 0.0 }
 0x426   : > { %v2636_v3 = vsel %vm2537_vm0, %v2535_v13, 0.0  ;;  %v2643_v23 = vsel %vm2537_vm0, %v2536_v34, 0.0  ;;  %v2596_v19 = vadd.f32 %v2595_v25, %v2594_v45  ;;  %v2603_v63 = vadd.f32 %v2602_v54, %v2601_v20 }
 0x427   : > { %v2610_v57 = vadd.f32 %v2609_v42, %v2608_v8  ;;  %v2617_v33 = vadd.f32 %v2616_v39, %v2615_v60  ;;  %v2623_v43 = vrot.slane %v2622_v27, 4  ;;  %v2630_v14 = vrot.slane %v2629_v21, 4  ;;  %v2684_v8 = vld [vmem:[%s6279_s4] sm:$0xff] }
 0x428   : > { %v2637_v40 = vrot.slane %v2636_v3, 4  ;;  %v2644_v26 = vrot.slane %v2643_v23, 4  ;;  %v2597_v38 = vrot.slane %v2596_v19, 2  ;;  %v2604_v28 = vrot.slane %v2603_v63, 2 }
 0x429   : > { %v2611_v53 = vrot.slane %v2610_v57, 2  ;;  %v2618_v29 = vrot.slane %v2617_v33, 2  ;;  %v2624_v4 = vadd.f32 %v2623_v43, %v2622_v27  ;;  %v2631_v37 = vadd.f32 %v2630_v14, %v2629_v21 }
 0x42a   : > { %v2638_v32 = vadd.f32 %v2637_v40, %v2636_v3  ;;  %v2645_v2 = vadd.f32 %v2644_v26, %v2643_v23  ;;  %v2598_v16 = vadd.f32 %v2597_v38, %v2596_v19  ;;  %v2605_v51 = vadd.f32 %v2604_v28, %v2603_v63 }
 0x42b   : > { %v2612_v58 = vadd.f32 %v2611_v53, %v2610_v57  ;;  %v2619_v41 = vadd.f32 %v2618_v29, %v2617_v33  ;;  %v2625_v47 = vrot.slane %v2624_v4, 2  ;;  %v2632_v50 = vrot.slane %v2631_v37, 2 }
 0x42c   : > { %v2639_v10 = vrot.slane %v2638_v32, 2  ;;  %v2646_v11 = vrot.slane %v2645_v2, 2  ;;  %v2599_v49 = vrot.slane %v2598_v16, 1  ;;  %v2606_v24 = vrot.slane %v2605_v51, 1 }
 0x42d   : > { %v2613_v6 = vrot.slane %v2612_v58, 1  ;;  %v2620_v30 = vrot.slane %v2619_v41, 1  ;;  %v2626_v62 = vadd.f32 %v2625_v47, %v2624_v4  ;;  %v2633_v0 = vadd.f32 %v2632_v50, %v2631_v37  ;;  %v2734_v47 = vld [vmem:[%s6280_s5] sm:$0xff] }
 0x42e   : > { %v2640_v18 = vadd.f32 %v2639_v10, %v2638_v32  ;;  %v2647_v31 = vadd.f32 %v2646_v11, %v2645_v2  ;;  %v2558_v61 = vadd.f32 %v2557_v56, %v5424_v15  ;;  %v2600_v59 = vadd.f32 %v2599_v49, %v2598_v16 }
 0x42f   : > { %v2607_v35 = vadd.f32 %v2606_v24, %v2605_v51  ;;  %v2614_v1 = vadd.f32 %v2613_v6, %v2612_v58  ;;  %v2565_v13 = vadd.f32 %v2564_v7, %v5426_v36  ;;  %v2572_v34 = vadd.f32 %v2571_v46, %v5436_v55  ;;  %v2735_v24 = vld [vmem:[%s6280_s5 + $0x8] sm:$0xff] }
 0x430   : > { %v2627_v45 = vrot.slane %v2626_v62, 1  ;;  %v2634_v20 = vrot.slane %v2633_v0, 1  ;;  %v2641_v60 = vrot.slane %v2640_v18, 1  ;;  %v2648_v25 = vrot.slane %v2647_v31, 1 }
 0x431   : > { %v2666_v54 = vsel %vm2060_vm9, %v5450_v48, %v5448_v17  ;;  %v2673_v15 = vsel %vm2060_vm9, %v2607_v35, %v2600_v59  ;;  %v2579_v56 = vadd.f32 %v2578_v5, %v5438_v22  ;;  %v2586_v36 = vadd.f32 %v2585_v9, %v5440_v52 }
 0x432   : > { %v2593_v55 = vadd.f32 %v2592_v44, %v5442_v12  ;;  %v2621_v7 = vadd.f32 %v2620_v30, %v2619_v41  ;;  %v2628_v46 = vadd.f32 %v2627_v45, %v2626_v62  ;;  %v2667_v42 = vsel %vm2062_vm10, %v2558_v61, %v2666_v54  ;;  %v2685_v12 = vld [vmem:[%s6279_s4 + $0x8] sm:$0xff] }
 0x433   : > { %v2674_v39 = vsel %vm2062_vm10, %v2614_v1, %v2673_v15  ;;  %v2688_v27 = vrot.slane %v2684_v8, 1  ;;  %v2635_v21 = vadd.f32 %v2634_v20, %v2633_v0  ;;  %v2668_v3 = vsel %vm2064_vm11, %v2565_v13, %v2667_v42 }
 0x434   : > { %v2675_v23 = vsel %vm2064_vm11, %v2621_v7, %v2674_v39  ;;  %v2689_v19 = vrot.slane %v2684_v8, 2  ;;  %v2642_v63 = vadd.f32 %v2641_v60, %v2640_v18  ;;  %v2649_v57 = vadd.f32 %v2648_v25, %v2647_v31 }
 0x435   : > { %v2669_v22 = vsel %vm2066_vm12, %v2572_v34, %v2668_v3  ;;  %v2676_v52 = vsel %vm2066_vm12, %v2628_v46, %v2675_v23  ;;  %v2690_v44 = vrot.slane %v2684_v8, 3  ;;  %v2691_v33 = vrot.slane %v2684_v8, 4 }
 0x436   : > { %v2670_v5 = vsel %vm2068_vm13, %v2579_v56, %v2669_v22  ;;  %v2677_v9 = vsel %vm2068_vm13, %v2635_v21, %v2676_v52  ;;  %v2692_v40 = vrot.slane %v2684_v8, 5  ;;  %v2693_v26 = vrot.slane %v2684_v8, 6 }
 0x437   : > { %v2671_v43 = vsel %vm2070_vm14, %v2586_v36, %v2670_v5  ;;  %v2678_v14 = vsel %vm2070_vm14, %v2642_v63, %v2677_v9  ;;  %v2694_v53 = vrot.slane %v2684_v8, 7  ;;  %v2695_v29 = vrot.slane %v2685_v12, 1 }
 0x438   : > { %v2672_v38 = vsel %vm2072_vm15, %v2593_v55, %v2671_v43  ;;  %v2679_v28 = vsel %vm2072_vm15, %v2649_v57, %v2678_v14  ;;  %v2696_v4 = vrot.slane %v2685_v12, 2  ;;  %v2697_v37 = vrot.slane %v2685_v12, 3 }
 0x439   : > { %2682 = vst.msk [vmem:[%s4132_s24] sm:$0xff] %vm2537_vm0, %v2672_v38  ;;  %v2698_v32 = vrot.slane %v2685_v12, 4  ;;  %v2699_v2 = vrot.slane %v2685_v12, 5  ;;  %v2700_v16 = vrot.slane %v2685_v12, 6  ;;  %v2701_v51 = vrot.slane %v2685_v12, 7 }
 0x43a   : > { %2683 = vst.msk [vmem:[%s4132_s24 + $0x8] sm:$0xff] %vm2537_vm0, %v2679_v28  ;;  %v2718_v58 = vmul.f32 %v2684_v8, %v5448_v17  ;;  %v2719_v41 = vmul.f32 %v2688_v27, %v5450_v48  ;;  %v2720_v50 = vmul.f32 %v2689_v19, %v2558_v61  ;;  %v2721_v10 = vmul.f32 %v2690_v44, %v2565_v13  ;;  %s3784_s24 = scalar_lea.hbm %s6282_s7, 32 }
 0x43b   : > { %v2722_v11 = vmul.f32 %v2691_v33, %v2572_v34  ;;  %v2723_v49 = vmul.f32 %v2692_v40, %v2579_v56  ;;  %v2724_v6 = vmul.f32 %v2693_v26, %v2586_v36  ;;  %v2725_v30 = vmul.f32 %v2694_v53, %v2593_v55  ;;  %p3786_p7 = scmp.lt.s32.totalorder %s3784_s24, %s3780_s9 }
 0x43c   : > { %v2726_v62 = vmul.f32 %v2685_v12, %v2600_v59  ;;  %v2727_v0 = vmul.f32 %v2695_v29, %v2607_v35  ;;  %v2728_v18 = vmul.f32 %v2696_v4, %v2614_v1  ;;  %v2729_v17 = vmul.f32 %v2697_v37, %v2621_v7 }
 0x43d   : > { %v2738_v31 = vrot.slane %v2734_v47, 1  ;;  %v2739_v48 = vrot.slane %v2734_v47, 2  ;;  %v2730_v45 = vmul.f32 %v2698_v32, %v2628_v46  ;;  %v2731_v20 = vmul.f32 %v2699_v2, %v2635_v21  ;;  %p3787_p8 = por %p3786_p7, %p3785_p4 }
 0x43e   : > { %v2740_v8 = vrot.slane %v2734_v47, 3  ;;  %v2745_v60 = vrot.slane %v2735_v24, 1  ;;  %v2732_v61 = vmul.f32 %v2700_v16, %v2642_v63  ;;  %v2741_v13 = vrot.slane %v2734_v47, 4 }
 0x43f   : > { %v2742_v34 = vrot.slane %v2734_v47, 5  ;;  %v2746_v25 = vrot.slane %v2735_v24, 2  ;;  %v2743_v54 = vrot.slane %v2734_v47, 6  ;;  %v2744_v15 = vrot.slane %v2734_v47, 7  ;;  %p3788_p9 = pnand %p3787_p8, %p3783_p3 }
 0x440   : > { %v2747_v56 = vrot.slane %v2735_v24, 3  ;;  %v5506_v42 = vadd.f32 %v2738_v31, %v2719_v41  ;;  %v2733_v36 = vmul.f32 %v2701_v51, %v2649_v57  ;;  %v2748_v59 = vrot.slane %v2735_v24, 4 }
 0x441   : > { %v2749_v35 = vrot.slane %v2735_v24, 5  ;;  %v5508_v1 = vadd.f32 %v2739_v48, %v2720_v50  ;;  %v2750_v55 = vrot.slane %v2735_v24, 6  ;;  %v2751_v7 = vrot.slane %v2735_v24, 7 }
 0x442   : > { %v5510_v46 = vadd.f32 %v2740_v8, %v2721_v10  ;;  %v5512_v39 = vadd.f32 %v2745_v60, %v2727_v0  ;;  %v5514_v27 = vadd.f32 %v2734_v47, %v2718_v58  ;;  %v5516_v21 = vadd.f32 %v2741_v13, %v2722_v11 }
 0x443   : > { %v5518_v3 = vadd.f32 %v2742_v34, %v2723_v49  ;;  %v5520_v23 = vadd.f32 %v2746_v25, %v2728_v18  ;;  %v5522_v19 = vadd.f32 %v2743_v54, %v2724_v6  ;;  %v5524_v63 = vadd.f32 %v2744_v15, %v2725_v30 }
 0x444   : > { %v5526_v57 = vadd.f32 %v2747_v56, %v2729_v17  ;;  %v2785_v22 = vmul.f32 %v5506_v42, %v5506_v42  ;;  %v5530_v52 = vadd.f32 %v2735_v24, %v2726_v62  ;;  %v5532_v12 = vadd.f32 %v2748_v59, %v2730_v45 }
 0x445   : > { %v5534_v5 = vadd.f32 %v2749_v35, %v2731_v20  ;;  %v2786_v9 = vmul.f32 %v5508_v1, %v5508_v1  ;;  %v5538_v44 = vadd.f32 %v2750_v55, %v2732_v61  ;;  %v5540_v33 = vadd.f32 %v2751_v7, %v2733_v36 }
 0x446   : > { %v2787_v43 = vmul.f32 %v5510_v46, %v5510_v46  ;;  %v2793_v14 = vmul.f32 %v5512_v39, %v5512_v39  ;;  %v2784_v40 = vmul.f32 %v5514_v27, %v5514_v27  ;;  %v2788_v26 = vmul.f32 %v5516_v21, %v5516_v21 }
 0x447   : > { %v2789_v38 = vmul.f32 %v5518_v3, %v5518_v3  ;;  %v2794_v28 = vmul.f32 %v5520_v23, %v5520_v23  ;;  %v2790_v53 = vmul.f32 %v5522_v19, %v5522_v19  ;;  %v2795_v29 = vmul.f32 %v5526_v57, %v5526_v57 }
 0x448   : > { %v2816_v4 = vrot.slane %v2785_v22, 7  ;;  %v2818_v37 = vrot.slane %v2786_v9, 6  ;;  %v2791_v32 = vmul.f32 %v5524_v63, %v5524_v63  ;;  %v2792_v2 = vmul.f32 %v5530_v52, %v5530_v52 }
 0x449   : > { %v2796_v16 = vmul.f32 %v5532_v12, %v5532_v12  ;;  %v2797_v51 = vmul.f32 %v5534_v5, %v5534_v5  ;;  %v2820_v41 = vrot.slane %v2787_v43, 5  ;;  %v2830_v47 = vrot.slane %v2793_v14, 7 }
 0x44a   : > { %v2817_v58 = vsel %vm2060_vm9, %v2816_v4, %v2784_v40  ;;  %v2832_v50 = vrot.slane %v2794_v28, 6  ;;  %v2798_v10 = vmul.f32 %v5538_v44, %v5538_v44  ;;  %v2799_v11 = vmul.f32 %v5540_v33, %v5540_v33 }
 0x44b   : > { %v2819_v49 = vsel %vm2062_vm10, %v2818_v37, %v2817_v58  ;;  %v2822_v24 = vrot.slane %v2788_v26, 4  ;;  %v2824_v30 = vrot.slane %v2789_v38, 3  ;;  %v2831_v62 = vsel %vm2060_vm9, %v2830_v47, %v2792_v2 }
 0x44c   : > { %v2821_v6 = vsel %vm2064_vm11, %v2820_v41, %v2819_v49  ;;  %v2834_v0 = vrot.slane %v2795_v29, 5  ;;  %v2826_v17 = vrot.slane %v2790_v53, 2  ;;  %v2833_v31 = vsel %vm2062_vm10, %v2832_v50, %v2831_v62 }
 0x44d   : > { %v2823_v18 = vsel %vm2066_vm12, %v2822_v24, %v2821_v6  ;;  %v2836_v48 = vrot.slane %v2796_v16, 4  ;;  %v2828_v20 = vrot.slane %v2791_v32, 1  ;;  %v2838_v60 = vrot.slane %v2797_v51, 3 }
 0x44e   : > { %v2825_v45 = vsel %vm2068_vm13, %v2824_v30, %v2823_v18  ;;  %v2835_v8 = vsel %vm2064_vm11, %v2834_v0, %v2833_v31  ;;  %v2840_v34 = vrot.slane %v2798_v10, 2  ;;  %v2842_v15 = vrot.slane %v2799_v11, 1 }
 0x44f   : > { %v2827_v61 = vsel %vm2070_vm14, %v2826_v17, %v2825_v45  ;;  %v2837_v13 = vsel %vm2066_vm12, %v2836_v48, %v2835_v8 }
 0x450   : > { %v2829_v25 = vsel %vm2072_vm15, %v2828_v20, %v2827_v61  ;;  %v2839_v54 = vsel %vm2068_vm13, %v2838_v60, %v2837_v13 }
 0x451   : > { %v2841_v56 = vsel %vm2070_vm14, %v2840_v34, %v2839_v54  ;;  %v2846_v36 = vsel %vm2537_vm0, %v2829_v25, 0.0 }
 0x452   : > { %v2843_v59 = vsel %vm2072_vm15, %v2842_v15, %v2841_v56 }
 0x453   : > { %v2847_v35 = vsel %vm2537_vm0, %v2843_v59, 0.0 }
 0x454   : > { %v2848_v55 = vadd.f32 %v2847_v35, %v2846_v36 }
 0x456   : > { %v2849_v7 = vrot.slane %v2848_v55, 4 }
 0x458   : > { %v2850_v22 = vadd.f32 %v2849_v7, %v2848_v55 }
 0x45a   : > { %v2851_v9 = vrot.slane %v2850_v22, 2 }
 0x45c   : > { %v2852_v43 = vadd.f32 %v2851_v9, %v2850_v22 }
 0x45e   : > { %v2853_v14 = vrot.slane %v2852_v43, 1 }
 0x460   : > { %v2854_v40 = vadd.f32 %v2853_v14, %v2852_v43 }
 0x462   : > { %v2855_v26 = vmax.f32 %v2854_v40, 1e-24 }
 0x464   : > { %3732 = vrsqrt.f32 %v2855_v26 }
 0x46a   : > { %v3733_v38 = vpop.eup %3732 }
 0x46b   : > { %v2857_v28 = vmul.f32 %v3733_v38, %v2855_v26  ;;  %vm2863_vm5 = vweird.f32 %v3733_v38 }
 0x46d   : > { %v2858_v53 = vmul.f32 %v3733_v38, %v2857_v28 }
 0x46f   : > { %v2859_v29 = vmul.f32 0.5, %v2858_v53 }
 0x471   : > { %v2860_v4 = vsub.f32 1.5, %v2859_v29 }
 0x472   : > { %3791 = shalt.err (!%p3788_p9)
}
 0x473   : > { %s3853_s22 = smov 128   ;;  %s3854_s21 = smov 8   ;;  %v2861_v37 = vmul.f32 %v3733_v38, %v2860_v4  ;;  %vm2862_vm8 = vweird.f32 %v2855_v26  ;;  %v2884_v31 = vld [vmem:[%s6281_s6 + $0x8] sm:$0xff]  ;;  %v2886_v48 = vld [vmem:[%s6281_s6 + $0x18] sm:$0xff]  ;;  %v2887_v45 = vld [vmem:[%s6281_s6 + $0x20] sm:$0xff] }
 0x474   : > { %3660 = dma.vmem_to_hbm [thread:$0]  (%p3938_p5), %s3432_s19, 256, %s3434_s26, %s3414_s18, %s3853_s22, %s3853_s22, %s3854_s21   ;;  %vm2864_vm2 = vmor %vm2862_vm8, %vm2863_vm5 }
 0x475   : > { %v2865_v32 = vsel %vm2864_vm2, %v3733_v38, %v2861_v37  ;;  %v2888_v20 = vld [vmem:[%s6281_s6 + $0x28] sm:$0xff]  ;;  %v2889_v34 = vld [vmem:[%s6281_s6 + $0x30] sm:$0xff]  ;;  %v2890_v25 = vld [vmem:[%s6281_s6 + $0x38] sm:$0xff] }
 0x476   : > { %v2866_v2 = vperm.slane %v2865_v32, 0  ;;  %v2891_v54 = vld [vmem:[%s6281_s6 + $0x40] sm:$0xff]  ;;  %v2892_v15 = vld [vmem:[%s6281_s6 + $0x48] sm:$0xff]  ;;  %v2893_v55 = vld [vmem:[%s6281_s6 + $0x50] sm:$0xff] }
 0x477   : > { %v2894_v7 = vld [vmem:[%s6281_s6 + $0x58] sm:$0xff]  ;;  %v2895_v22 = vld [vmem:[%s6281_s6 + $0x60] sm:$0xff]  ;;  %v2896_v9 = vld [vmem:[%s6281_s6 + $0x68] sm:$0xff] }
 0x478   : > { %v2867_v16 = vmul.f32 %v2866_v2, %v5514_v27  ;;  %v2868_v51 = vmul.f32 %v2866_v2, %v5506_v42  ;;  %v2869_v58 = vmul.f32 %v2866_v2, %v5508_v1  ;;  %v2870_v41 = vmul.f32 %v2866_v2, %v5510_v46  ;;  %v2897_v26 = vld [vmem:[%s6281_s6 + $0x70] sm:$0xff]  ;;  %v2898_v38 = vld [vmem:[%s6281_s6 + $0x78] sm:$0xff]  ;;  %v2899_v28 = vld [vmem:[%s6281_s6 + $0x80] sm:$0xff] }
 0x479   : > { %v2871_v47 = vmul.f32 %v2866_v2, %v5516_v21  ;;  %v2872_v50 = vmul.f32 %v2866_v2, %v5518_v3  ;;  %v2873_v10 = vmul.f32 %v2866_v2, %v5522_v19  ;;  %v2874_v11 = vmul.f32 %v2866_v2, %v5524_v63  ;;  %v2900_v53 = vld [vmem:[%s6281_s6 + $0x88] sm:$0xff]  ;;  %v2901_v37 = vld [vmem:[%s6281_s6 + $0x90] sm:$0xff]  ;;  %v2902_v32 = vld [vmem:[%s6281_s6 + $0x98] sm:$0xff] }
 0x47a   : > { %v2875_v49 = vmul.f32 %v2866_v2, %v5530_v52  ;;  %v2876_v24 = vmul.f32 %v2866_v2, %v5512_v39  ;;  %v2877_v27 = vmul.f32 %v2866_v2, %v5520_v23  ;;  %v2878_v42 = vmul.f32 %v2866_v2, %v5526_v57 }
 0x47b   : > { %v2879_v1 = vmul.f32 %v2866_v2, %v5532_v12  ;;  %v2880_v46 = vmul.f32 %v2866_v2, %v5534_v5  ;;  %v2881_v21 = vmul.f32 %v2866_v2, %v5538_v44  ;;  %v2882_v3 = vmul.f32 %v2866_v2, %v5540_v33  ;;  %v2883_v12 = vld [vmem:[%s6281_s6] sm:$0xff]  ;;  %v2885_v5 = vld [vmem:[%s6281_s6 + $0x10] sm:$0xff] }
 0x47c   : > { %v2963_v6 = vrot.slane %v2868_v51, 7  ;;  %v2965_v19 = vrot.slane %v2869_v58, 6  ;;  %v2977_v30 = vrot.slane %v2876_v24, 7  ;;  %v2967_v52 = vrot.slane %v2870_v41, 5  ;;  %v2903_v2 = vld [vmem:[%s6281_s6 + $0xa0] sm:$0xff] }
 0x47d   : > { %v2979_v62 = vrot.slane %v2877_v27, 6  ;;  %v2969_v23 = vrot.slane %v2871_v47, 4  ;;  %v2981_v0 = vrot.slane %v2878_v42, 5  ;;  %v2971_v33 = vrot.slane %v2872_v50, 3  ;;  %v2905_v47 = vld [vmem:[%s6281_s6 + $0xb0] sm:$0xff]  ;;  %v2906_v50 = vld [vmem:[%s6281_s6 + $0xb8] sm:$0xff] }
 0x47e   : > { %v2964_v63 = vsel %vm2060_vm9, %v2963_v6, %v2867_v16  ;;  %v2978_v57 = vsel %vm2060_vm9, %v2977_v30, %v2875_v49  ;;  %v2983_v17 = vrot.slane %v2879_v1, 4  ;;  %v2973_v60 = vrot.slane %v2873_v10, 2  ;;  %v2904_v16 = vld [vmem:[%s6281_s6 + $0xa8] sm:$0xff]  ;;  %v2907_v10 = vld [vmem:[%s6281_s6 + $0xc0] sm:$0xff]  ;;  %v2909_v1 = vld [vmem:[%s6281_s6 + $0xd0] sm:$0xff] }
 0x47f   : > { %v2966_v39 = vsel %vm2062_vm10, %v2965_v19, %v2964_v63  ;;  %v2980_v18 = vsel %vm2062_vm10, %v2979_v62, %v2978_v57  ;;  %v2985_v13 = vrot.slane %v2880_v46, 3  ;;  %v2975_v36 = vrot.slane %v2874_v11, 1  ;;  %v2908_v11 = vld [vmem:[%s6281_s6 + $0xc8] sm:$0xff]  ;;  %v2910_v46 = vld [vmem:[%s6281_s6 + $0xd8] sm:$0xff] }
 0x480   : > { %v2968_v44 = vsel %vm2064_vm11, %v2967_v52, %v2966_v39  ;;  %v2982_v61 = vsel %vm2064_vm11, %v2981_v0, %v2980_v18  ;;  %v2987_v35 = vrot.slane %v2881_v21, 2  ;;  %v2989_v40 = vrot.slane %v2882_v3, 1  ;;  %v2911_v21 = vld [vmem:[%s6281_s6 + $0xe0] sm:$0xff]  ;;  %v2912_v3 = vld [vmem:[%s6281_s6 + $0xe8] sm:$0xff]  ;;  %v2913_v52 = vld [vmem:[%s6281_s6 + $0xf0] sm:$0xff] }
 0x481   : > { %v2970_v8 = vsel %vm2066_vm12, %v2969_v23, %v2968_v44  ;;  %v2984_v59 = vsel %vm2066_vm12, %v2983_v17, %v2982_v61  ;;  %v2914_v62 = vld [vmem:[%s6281_s6 + $0xf8] sm:$0xff]  ;;  %v2915_v39 = vld [vmem:[%s6281_s6 + $0x100] sm:$0xff]  ;;  %v2916_v23 = vld [vmem:[%s6281_s6 + $0x108] sm:$0xff] }
 0x482   : > { %v2972_v56 = vsel %vm2068_vm13, %v2971_v33, %v2970_v8  ;;  %v2986_v14 = vsel %vm2068_vm13, %v2985_v13, %v2984_v59  ;;  %v2917_v44 = vld [vmem:[%s6281_s6 + $0x110] sm:$0xff]  ;;  %v2918_v33 = vld [vmem:[%s6281_s6 + $0x118] sm:$0xff]  ;;  %v2919_v18 = vld [vmem:[%s6281_s6 + $0x120] sm:$0xff] }
 0x483   : > { %v2974_v43 = vsel %vm2070_vm14, %v2973_v60, %v2972_v56  ;;  %v2988_v4 = vsel %vm2070_vm14, %v2987_v35, %v2986_v14  ;;  %v2920_v17 = vld [vmem:[%s6281_s6 + $0x128] sm:$0xff]  ;;  %v2921_v8 = vld [vmem:[%s6281_s6 + $0x130] sm:$0xff]  ;;  %v2922_v60 = vld [vmem:[%s6281_s6 + $0x138] sm:$0xff] }
 0x484   : > { %v5686_v29 = vsel %vm2072_vm15, %v2975_v36, %v2974_v43  ;;  %v5702_v51 = vsel %vm2072_vm15, %v2989_v40, %v2988_v4  ;;  %v2923_v61 = vld [vmem:[%s6281_s6 + $0x140] sm:$0xff]  ;;  %v2925_v56 = vld [vmem:[%s6281_s6 + $0x150] sm:$0xff]  ;;  %v2926_v36 = vld [vmem:[%s6281_s6 + $0x158] sm:$0xff] }
 0x485   : > { %v5705_v58 = vmul.f32 %v5686_v29, %v2883_v12  ;;  %v5708_v41 = vmul.f32 %v5686_v29, %v2885_v5  ;;  %v5723_v49 = vmul.f32 %v5702_v51, %v2884_v31  ;;  %v5726_v24 = vmul.f32 %v5702_v51, %v2886_v48  ;;  %v2929_v43 = vld [vmem:[%s6281_s6 + $0x170] sm:$0xff]  ;;  %v2932_v4 = vld [vmem:[%s6281_s6 + $0x188] sm:$0xff] }
 0x486   : > { %v5729_v27 = vmul.f32 %v5686_v29, %v2887_v45  ;;  %v5732_v42 = vmul.f32 %v5702_v51, %v2888_v20  ;;  %v5747_v6 = vmul.f32 %v5686_v29, %v2889_v34  ;;  %v5750_v19 = vmul.f32 %v5702_v51, %v2890_v25 }
 0x487   : > { %v5753_v30 = vmul.f32 %v5686_v29, %v2891_v54  ;;  %v5756_v63 = vmul.f32 %v5702_v51, %v2892_v15  ;;  %v5771_v57 = vmul.f32 %v5686_v29, %v2893_v55  ;;  %v5774_v0 = vmul.f32 %v5702_v51, %v2894_v7  ;;  %v2924_v15 = vld [vmem:[%s6281_s6 + $0x148] sm:$0xff] }
 0x488   : > { %v5777_v12 = vmul.f32 %v5686_v29, %v2895_v22  ;;  %v5780_v5 = vmul.f32 %v5702_v51, %v2896_v9  ;;  %v5795_v31 = vmul.f32 %v5686_v29, %v2897_v26  ;;  %v5798_v48 = vmul.f32 %v5702_v51, %v2898_v38  ;;  %v2927_v22 = vld [vmem:[%s6281_s6 + $0x160] sm:$0xff]  ;;  %v2928_v9 = vld [vmem:[%s6281_s6 + $0x168] sm:$0xff] }
 0x489   : > { %v5801_v45 = vmul.f32 %v5686_v29, %v2899_v28  ;;  %v5804_v20 = vmul.f32 %v5702_v51, %v2900_v53  ;;  %v5816_v13 = vmul.f32 %v5686_v29, %v2901_v37  ;;  %v5819_v34 = vmul.f32 %v5702_v51, %v2902_v32  ;;  %v2930_v28 = vld [vmem:[%s6281_s6 + $0x178] sm:$0xff]  ;;  %v2931_v53 = vld [vmem:[%s6281_s6 + $0x180] sm:$0xff] }
 0x48a   : > { %v5822_v25 = vmul.f32 %v5686_v29, %v2903_v2  ;;  %v5825_v54 = vmul.f32 %v5702_v51, %v2904_v16  ;;  %v5837_v59 = vmul.f32 %v5686_v29, %v2905_v47  ;;  %v5840_v35 = vmul.f32 %v5702_v51, %v2906_v50  ;;  %v2933_v47 = vld [vmem:[%s6281_s6 + $0x190] sm:$0xff]  ;;  %v2934_v50 = vld [vmem:[%s6281_s6 + $0x198] sm:$0xff] }
 0x48b   : > { %v5843_v55 = vmul.f32 %v5686_v29, %v2907_v10  ;;  %v5846_v7 = vmul.f32 %v5702_v51, %v2908_v11  ;;  %v5858_v14 = vmul.f32 %v5686_v29, %v2909_v1  ;;  %v5861_v40 = vmul.f32 %v5702_v51, %v2910_v46  ;;  %v2935_v10 = vld [vmem:[%s6281_s6 + $0x1a0] sm:$0xff] }
 0x48c   : > { %v5864_v26 = vmul.f32 %v5686_v29, %v2911_v21  ;;  %v5867_v38 = vmul.f32 %v5702_v51, %v2912_v3  ;;  %v5879_v37 = vmul.f32 %v5686_v29, %v2913_v52  ;;  %v5882_v32 = vmul.f32 %v5702_v51, %v2914_v62  ;;  %v2936_v3 = vld [vmem:[%s6281_s6 + $0x1a8] sm:$0xff]  ;;  %v2937_v52 = vld [vmem:[%s6281_s6 + $0x1b0] sm:$0xff]  ;;  %v2938_v62 = vld [vmem:[%s6281_s6 + $0x1b8] sm:$0xff] }
 0x48d   : > { %v5885_v2 = vmul.f32 %v5686_v29, %v2915_v39  ;;  %v5888_v16 = vmul.f32 %v5702_v51, %v2916_v23  ;;  %v5900_v11 = vmul.f32 %v5686_v29, %v2917_v44  ;;  %v5903_v1 = vmul.f32 %v5702_v51, %v2918_v33 }
 0x48e   : > { %v5906_v46 = vmul.f32 %v5686_v29, %v2919_v18  ;;  %v5909_v21 = vmul.f32 %v5702_v51, %v2920_v17  ;;  %v5921_v39 = vmul.f32 %v5686_v29, %v2921_v8  ;;  %v5924_v23 = vmul.f32 %v5702_v51, %v2922_v60  ;;  %v2939_v18 = vld [vmem:[%s6281_s6 + $0x1c0] sm:$0xff]  ;;  %v2940_v17 = vld [vmem:[%s6281_s6 + $0x1c8] sm:$0xff]  ;;  %v2941_v8 = vld [vmem:[%s6281_s6 + $0x1d0] sm:$0xff] }
 0x48f   : > { %v5927_v44 = vmul.f32 %v5686_v29, %v2923_v61  ;;  %v5930_v33 = vmul.f32 %v5702_v51, %v2924_v15  ;;  %v5942_v60 = vmul.f32 %v5686_v29, %v2925_v56  ;;  %v5945_v61 = vmul.f32 %v5702_v51, %v2926_v36  ;;  %v2944_v56 = vld [vmem:[%s6281_s6 + $0x1e8] sm:$0xff] }
 0x490   : > { %6286 = vst [vmem:[#allocation13_spill] sm:$0xff] %v5924_v23  ;;  %v5948_v15 = vmul.f32 %v5686_v29, %v2927_v22  ;;  %v2943_v23 = vld [vmem:[%s6281_s6 + $0x1e0] sm:$0xff]  ;;  %v5963_v36 = vmul.f32 %v5686_v29, %v2929_v43  ;;  %v5966_v22 = vmul.f32 %v5702_v51, %v2930_v28  ;;  %v5984_v43 = vmul.f32 %v5686_v29, %v2935_v10 }
 0x491   : > { %6287 = vst [vmem:[#allocation14_spill] sm:$0xff] %v5927_v44  ;;  %v2942_v44 = vld [vmem:[%s6281_s6 + $0x1d8] sm:$0xff]  ;;  %v5987_v28 = vmul.f32 %v5702_v51, %v2936_v3  ;;  %v6008_v3 = vmul.f32 %v5686_v29, %v2943_v23  ;;  %v3067_v23 = vsel %vm2537_vm0, %v5726_v24, 0.0  ;;  %v3094_v24 = vsel %vm2537_vm0, %v5756_v63, 0.0 }
 0x492   : > { %6288 = vst [vmem:[#allocation15_spill] sm:$0xff] %v5930_v33  ;;  %v5951_v33 = vmul.f32 %v5702_v51, %v2928_v9  ;;  %v5969_v9 = vmul.f32 %v5686_v29, %v2931_v53  ;;  %v5990_v53 = vmul.f32 %v5686_v29, %v2937_v52  ;;  %v6005_v10 = vmul.f32 %v5702_v51, %v2942_v44 }
 0x493   : > { %6289 = vst [vmem:[#allocation16_spill] sm:$0xff] %v5942_v60  ;;  %v5981_v60 = vmul.f32 %v5702_v51, %v2934_v50  ;;  %v6002_v50 = vmul.f32 %v5686_v29, %v2941_v8  ;;  %v6011_v52 = vmul.f32 %v5702_v51, %v2944_v56  ;;  %v3066_v8 = vsel %vm2537_vm0, %v5708_v41, 0.0 }
 0x494   : > { %6290 = vst [vmem:[#allocation17_spill] sm:$0xff] %v5945_v61  ;;  %v5978_v61 = vmul.f32 %v5686_v29, %v2933_v47  ;;  %v5999_v47 = vmul.f32 %v5702_v51, %v2940_v17  ;;  %v3058_v17 = vsel %vm2537_vm0, %v5723_v49, 0.0  ;;  %v3075_v56 = vsel %vm2537_vm0, %v5729_v27, 0.0 }
 0x495   : > { %6291 = vst [vmem:[#allocation18_spill] sm:$0xff] %v5948_v15  ;;  %v2945_v15 = vld [vmem:[%s6281_s6 + $0x1f0] sm:$0xff]  ;;  %v3085_v49 = vsel %vm2537_vm0, %v5750_v19, 0.0  ;;  %v3111_v19 = vsel %vm2537_vm0, %v5777_v12, 0.0  ;;  %v3121_v12 = vsel %vm2537_vm0, %v5798_v48, 0.0 }
 0x496   : > { %6292 = vst [vmem:[#allocation19_spill] sm:$0xff] %v5951_v33  ;;  %v5972_v33 = vmul.f32 %v5702_v51, %v2932_v4  ;;  %v5993_v4 = vmul.f32 %v5702_v51, %v2938_v62  ;;  %v6014_v62 = vmul.f32 %v5686_v29, %v2945_v15  ;;  %v3068_v15 = vadd.f32 %v3067_v23, %v3066_v8 }
 0x497   : > { %6295 = vst [vmem:[#allocation22_spill] sm:$0xff] %v5999_v47 }
 0x498   : > { %6293 = vst [vmem:[#allocation20_spill] sm:$0xff] %v5972_v33  ;;  %v5996_v33 = vmul.f32 %v5686_v29, %v2939_v18  ;;  %v3057_v18 = vsel %vm2537_vm0, %v5705_v58, 0.0  ;;  %v3076_v29 = vsel %vm2537_vm0, %v5732_v42, 0.0  ;;  %v3084_v58 = vsel %vm2537_vm0, %v5747_v6, 0.0 }
 0x499   : > { %6296 = vst [vmem:[#allocation23_spill] sm:$0xff] %v6002_v50  ;;  %v3059_v44 = vadd.f32 %v3058_v17, %v3057_v18  ;;  %v3086_v41 = vadd.f32 %v3085_v49, %v3084_v58  ;;  %v3093_v18 = vsel %vm2537_vm0, %v5753_v30, 0.0  ;;  %v3069_v27 = vrot.slane %v3068_v15, 4 }
 0x49a   : > { %6294 = vst [vmem:[#allocation21_spill] sm:$0xff] %v5996_v33  ;;  %v3102_v42 = vsel %vm2537_vm0, %v5771_v57, 0.0  ;;  %v3103_v6 = vsel %vm2537_vm0, %v5774_v0, 0.0  ;;  %v3120_v57 = vsel %vm2537_vm0, %v5795_v31, 0.0 }
 0x49b   : > { %6297 = vst [vmem:[#allocation24_spill] sm:$0xff] %v6005_v10  ;;  %v3087_v23 = vrot.slane %v3086_v41, 4  ;;  %v3104_v58 = vadd.f32 %v3103_v6, %v3102_v42 }
 0x49c   : > { %6298 = vst [vmem:[#allocation25_spill] sm:$0xff] %v6008_v3  ;;  %v3095_v3 = vadd.f32 %v3094_v24, %v3093_v18  ;;  %v3112_v18 = vsel %vm2537_vm0, %v5780_v5, 0.0 }
 0x49d   : > { %6299 = vst [vmem:[#allocation26_spill] sm:$0xff] %v6011_v52  ;;  %v3060_v52 = vrot.slane %v3059_v44, 4  ;;  %v3088_v63 = vadd.f32 %v3087_v23, %v3086_v41  ;;  %v3105_v10 = vrot.slane %v3104_v58, 4  ;;  %v3113_v47 = vadd.f32 %v3112_v18, %v3111_v19 }
 0x49e   : > { %6300 = vst [vmem:[#allocation27_spill] sm:$0xff] %v6014_v62  ;;  %v3077_v62 = vadd.f32 %v3076_v29, %v3075_v56  ;;  %v3070_v56 = vadd.f32 %v3069_v27, %v3068_v15  ;;  %v3096_v30 = vrot.slane %v3095_v3, 4  ;;  %v3122_v23 = vadd.f32 %v3121_v12, %v3120_v57 }
 0x49f   : > { %v3061_v8 = vadd.f32 %v3060_v52, %v3059_v44  ;;  %v3089_v50 = vrot.slane %v3088_v63, 2  ;;  %v3106_v27 = vadd.f32 %v3105_v10, %v3104_v58  ;;  %v3114_v42 = vrot.slane %v3113_v47, 4 }
 0x4a0   : > { %v3078_v17 = vrot.slane %v3077_v62, 4  ;;  %v3071_v52 = vrot.slane %v3070_v56, 2  ;;  %v3097_v24 = vadd.f32 %v3096_v30, %v3095_v3  ;;  %v3123_v18 = vrot.slane %v3122_v23, 4 }
 0x4a1   : > { %v3062_v49 = vrot.slane %v3061_v8, 2  ;;  %v3090_v31 = vadd.f32 %v3089_v50, %v3088_v63  ;;  %v3107_v30 = vrot.slane %v3106_v27, 2  ;;  %v3129_v57 = vsel %vm2537_vm0, %v5801_v45, 0.0 }
 0x4a2   : > { %v3079_v29 = vadd.f32 %v3078_v17, %v3077_v62  ;;  %v2946_v62 = vld [vmem:[%s6281_s6 + $0x1f8] sm:$0xff]  ;;  %v3072_v15 = vadd.f32 %v3071_v52, %v3070_v56  ;;  %v3098_v5 = vrot.slane %v3097_v24, 2  ;;  %v3124_v63 = vadd.f32 %v3123_v18, %v3122_v23 }
 0x4a3   : > { %v3063_v0 = vadd.f32 %v3062_v49, %v3061_v8  ;;  %v6052_v19 = vmul.f32 %v5702_v51, %v2946_v62  ;;  %v3091_v48 = vrot.slane %v3090_v31, 1  ;;  %v3115_v49 = vadd.f32 %v3114_v42, %v3113_v47 }
 0x4a4   : > { %v3080_v44 = vrot.slane %v3079_v29, 2  ;;  %v3073_v3 = vrot.slane %v3072_v15, 1  ;;  %v3099_v8 = vadd.f32 %v3098_v5, %v3097_v24  ;;  %v3108_v10 = vadd.f32 %v3107_v30, %v3106_v27 }
 0x4a5   : > { %v3064_v17 = vrot.slane %v3063_v0, 1  ;;  %v3116_v50 = vrot.slane %v3115_v49, 2  ;;  %v6062_v52 = vadd.f32 %v3091_v48, %v3090_v31  ;;  %v3130_v47 = vsel %vm2537_vm0, %v5804_v20, 0.0 }
 0x4a6   : > { %v3081_v41 = vadd.f32 %v3080_v44, %v3079_v29  ;;  %v6056_v56 = vadd.f32 %v3073_v3, %v3072_v15  ;;  %v3100_v29 = vrot.slane %v3099_v8, 1  ;;  %v3109_v51 = vrot.slane %v3108_v10, 1 }
 0x4a7   : > { %v6054_v33 = vadd.f32 %v3064_v17, %v3063_v0  ;;  %v3138_v44 = vsel %vm2537_vm0, %v5816_v13, 0.0  ;;  %v3117_v24 = vadd.f32 %v3116_v50, %v3115_v49  ;;  %v3125_v0 = vrot.slane %v3124_v63, 2 }
 0x4a8   : > { %v3082_v6 = vrot.slane %v3081_v41, 1  ;;  %v3131_v12 = vadd.f32 %v3130_v47, %v3129_v57  ;;  %v3139_v62 = vsel %vm2537_vm0, %v5819_v34, 0.0  ;;  %v6070_v15 = vadd.f32 %v3100_v29, %v3099_v8 }
 0x4a9   : > { %v3147_v45 = vsel %vm2537_vm0, %v5822_v25, 0.0  ;;  %v3148_v5 = vsel %vm2537_vm0, %v5825_v54, 0.0  ;;  %v3118_v27 = vrot.slane %v3117_v24, 1  ;;  %v3126_v20 = vadd.f32 %v3125_v0, %v3124_v63 }
 0x4aa   : > { %v6058_v58 = vadd.f32 %v3082_v6, %v3081_v41  ;;  %v3140_v41 = vadd.f32 %v3139_v62, %v3138_v44  ;;  %v3132_v17 = vrot.slane %v3131_v12, 4  ;;  %v3149_v31 = vadd.f32 %v3148_v5, %v3147_v45 }
 0x4ab   : > { %v3156_v42 = vsel %vm2537_vm0, %v5837_v59, 0.0  ;;  %v3157_v34 = vsel %vm2537_vm0, %v5840_v35, 0.0  ;;  %v3165_v23 = vsel %vm2537_vm0, %v5843_v55, 0.0  ;;  %v6082_v3 = vadd.f32 %v3109_v51, %v3108_v10 }
 0x4ac   : > { %v3141_v13 = vrot.slane %v3140_v41, 4  ;;  %v6084_v25 = vadd.f32 %v3118_v27, %v3117_v24  ;;  %v3133_v6 = vadd.f32 %v3132_v17, %v3131_v12  ;;  %v3150_v54 = vrot.slane %v3149_v31, 4 }
 0x4ad   : > { %v3158_v30 = vadd.f32 %v3157_v34, %v3156_v42  ;;  %v3166_v48 = vsel %vm2537_vm0, %v5846_v7, 0.0  ;;  %v3174_v59 = vsel %vm2537_vm0, %v5858_v14, 0.0  ;;  %v3127_v49 = vrot.slane %v3126_v20, 1 }
 0x4ae   : > { %v3142_v8 = vadd.f32 %v3141_v13, %v3140_v41  ;;  %v3134_v18 = vrot.slane %v3133_v6, 2  ;;  %v3151_v35 = vadd.f32 %v3150_v54, %v3149_v31  ;;  %v3167_v29 = vadd.f32 %v3166_v48, %v3165_v23 }
 0x4af   : > { %v3159_v55 = vrot.slane %v3158_v30, 4  ;;  %v3175_v10 = vsel %vm2537_vm0, %v5861_v40, 0.0  ;;  %v3183_v63 = vsel %vm2537_vm0, %v5864_v26, 0.0  ;;  %v3184_v14 = vsel %vm2537_vm0, %v5867_v38, 0.0 }
 0x4b0   : > { %v3143_v50 = vrot.slane %v3142_v8, 2  ;;  %v3135_v57 = vadd.f32 %v3134_v18, %v3133_v6  ;;  %v3152_v51 = vrot.slane %v3151_v35, 2  ;;  %v3168_v47 = vrot.slane %v3167_v29, 4 }
 0x4b1   : > { %v3176_v44 = vadd.f32 %v3175_v10, %v3174_v59  ;;  %v3160_v24 = vadd.f32 %v3159_v55, %v3158_v30  ;;  %v3192_v0 = vsel %vm2537_vm0, %v5879_v37, 0.0  ;;  %v3185_v27 = vadd.f32 %v3184_v14, %v3183_v63 }
 0x4b2   : > { %v3144_v7 = vadd.f32 %v3143_v50, %v3142_v8  ;;  %v3136_v12 = vrot.slane %v3135_v57, 1  ;;  %v3153_v62 = vadd.f32 %v3152_v51, %v3151_v35  ;;  %v3169_v41 = vadd.f32 %v3168_v47, %v3167_v29 }
 0x4b3   : > { %v3177_v45 = vrot.slane %v3176_v44, 4  ;;  %v3161_v5 = vrot.slane %v3160_v24, 2  ;;  %v3193_v26 = vsel %vm2537_vm0, %v5882_v32, 0.0  ;;  %v6100_v17 = vadd.f32 %v3127_v49, %v3126_v20 }
 0x4b4   : > { %v3145_v40 = vrot.slane %v3144_v7, 1  ;;  %v6102_v31 = vadd.f32 %v3136_v12, %v3135_v57  ;;  %v3170_v13 = vrot.slane %v3169_v41, 2  ;;  %v3154_v38 = vrot.slane %v3153_v62, 1 }
 0x4b5   : > { %v3178_v42 = vadd.f32 %v3177_v45, %v3176_v44  ;;  %v3162_v34 = vadd.f32 %v3161_v5, %v3160_v24  ;;  %v3186_v23 = vrot.slane %v3185_v27, 4  ;;  %v3194_v37 = vadd.f32 %v3193_v26, %v3192_v0  ;;  %v6301_v45 = vld [vmem:[#allocation13_spill] sm:$0xff] }
 0x4b6   : > { %v6104_v6 = vadd.f32 %v3145_v40, %v3144_v7  ;;  %v3171_v54 = vadd.f32 %v3170_v13, %v3169_v41  ;;  %v3201_v30 = vsel %vm2537_vm0, %v5885_v2, 0.0  ;;  %v3202_v20 = vsel %vm2537_vm0, %v5888_v16, 0.0 }
 0x4b7   : > { %v3179_v8 = vrot.slane %v3178_v42, 2  ;;  %v3163_v48 = vrot.slane %v3162_v34, 1  ;;  %v3187_v59 = vadd.f32 %v3186_v23, %v3185_v27  ;;  %v3195_v32 = vrot.slane %v3194_v37, 4 }
 0x4b8   : > { %v3172_v49 = vrot.slane %v3171_v54, 1  ;;  %v3203_v35 = vadd.f32 %v3202_v20, %v3201_v30  ;;  %v3210_v29 = vsel %vm2537_vm0, %v5900_v11, 0.0  ;;  %v6112_v50 = vadd.f32 %v3154_v38, %v3153_v62  ;;  %v6305_v20 = vld [vmem:[#allocation17_spill] sm:$0xff] }
 0x4b9   : > { %v3180_v18 = vadd.f32 %v3179_v8, %v3178_v42  ;;  %v3188_v55 = vrot.slane %v3187_v59, 2  ;;  %v3196_v10 = vadd.f32 %v3195_v32, %v3194_v37  ;;  %v3211_v63 = vsel %vm2537_vm0, %v5903_v1, 0.0  ;;  %v6302_v42 = vld [vmem:[#allocation14_spill] sm:$0xff] }
 0x4ba   : > { %v6116_v2 = vadd.f32 %v3163_v48, %v3162_v34  ;;  %v3204_v51 = vrot.slane %v3203_v35, 4  ;;  %v3212_v47 = vadd.f32 %v3211_v63, %v3210_v29  ;;  %v3219_v7 = vsel %vm2537_vm0, %v5906_v46, 0.0  ;;  %v6303_v34 = vld [vmem:[#allocation15_spill] sm:$0xff] }
 0x4bb   : > { %v3181_v57 = vrot.slane %v3180_v18, 1  ;;  %v3189_v44 = vadd.f32 %v3188_v55, %v3187_v59  ;;  %v3197_v16 = vrot.slane %v3196_v10, 2  ;;  %v3220_v11 = vsel %vm2537_vm0, %v5909_v21, 0.0  ;;  %v6304_v59 = vld [vmem:[#allocation16_spill] sm:$0xff] }
 0x4bc   : > { %v6122_v24 = vadd.f32 %v3172_v49, %v3171_v54  ;;  %v3205_v14 = vadd.f32 %v3204_v51, %v3203_v35  ;;  %v3213_v0 = vrot.slane %v3212_v47, 4  ;;  %v3221_v12 = vadd.f32 %v3220_v11, %v3219_v7 }
 0x4bd   : > { %v3190_v62 = vrot.slane %v3189_v44, 1  ;;  %v3198_v1 = vadd.f32 %v3197_v16, %v3196_v10  ;;  %v3228_v41 = vsel %vm2537_vm0, %v5921_v39, 0.0  ;;  %v3229_v40 = vsel %vm2537_vm0, %v6301_v45, 0.0 }
 0x4be   : > { %v3206_v5 = vrot.slane %v3205_v14, 2  ;;  %v3214_v27 = vadd.f32 %v3213_v0, %v3212_v47  ;;  %v3222_v26 = vrot.slane %v3221_v12, 4  ;;  %v3230_v46 = vadd.f32 %v3229_v40, %v3228_v41  ;;  %v6307_v47 = vld [vmem:[#allocation19_spill] sm:$0xff] }
 0x4bf   : > { %v6128_v13 = vadd.f32 %v3181_v57, %v3180_v18  ;;  %v3199_v21 = vrot.slane %v3198_v1, 1  ;;  %v3237_v38 = vsel %vm2537_vm0, %v6302_v42, 0.0  ;;  %v3238_v23 = vsel %vm2537_vm0, %v6303_v34, 0.0  ;;  %v6306_v57 = vld [vmem:[#allocation18_spill] sm:$0xff] }
 0x4c0   : > { %v3207_v37 = vadd.f32 %v3206_v5, %v3205_v14  ;;  %v3215_v54 = vrot.slane %v3214_v27, 2  ;;  %v3223_v8 = vadd.f32 %v3222_v26, %v3221_v12  ;;  %v3231_v39 = vrot.slane %v3230_v46, 4 }
 0x4c1   : > { %v6134_v30 = vadd.f32 %v3190_v62, %v3189_v44  ;;  %v3239_v48 = vadd.f32 %v3238_v23, %v3237_v38  ;;  %v3246_v32 = vsel %vm2537_vm0, %v6304_v59, 0.0  ;;  %v3247_v49 = vsel %vm2537_vm0, %v6305_v20, 0.0  ;;  %v6308_v23 = vld [vmem:[#allocation20_spill] sm:$0xff] }
 0x4c2   : > { %v3208_v18 = vrot.slane %v3207_v37, 1  ;;  %v3216_v35 = vadd.f32 %v3215_v54, %v3214_v27  ;;  %v3224_v29 = vrot.slane %v3223_v8, 2  ;;  %v3232_v55 = vadd.f32 %v3231_v39, %v3230_v46 }
 0x4c3   : > { %v3240_v10 = vrot.slane %v3239_v48, 4  ;;  %v3248_v63 = vadd.f32 %v3247_v49, %v3246_v32  ;;  %v3255_v51 = vsel %vm2537_vm0, %v6306_v57, 0.0  ;;  %v3256_v44 = vsel %vm2537_vm0, %v6307_v47, 0.0 }
 0x4c4   : > { %v6144_v16 = vadd.f32 %v3199_v21, %v3198_v1  ;;  %v3217_v7 = vrot.slane %v3216_v35, 1  ;;  %v3225_v11 = vadd.f32 %v3224_v29, %v3223_v8  ;;  %v3233_v14 = vrot.slane %v3232_v55, 2 }
 0x4c5   : > { %v3241_v0 = vadd.f32 %v3240_v10, %v3239_v48  ;;  %v3249_v12 = vrot.slane %v3248_v63, 4  ;;  %v3257_v62 = vadd.f32 %v3256_v44, %v3255_v51  ;;  %v3264_v41 = vsel %vm2537_vm0, %v5963_v36, 0.0 }
 0x4c6   : > { %v6148_v45 = vadd.f32 %v3208_v18, %v3207_v37  ;;  %v3226_v40 = vrot.slane %v3225_v11, 1  ;;  %v3234_v5 = vadd.f32 %v3233_v14, %v3232_v55  ;;  %v3265_v27 = vsel %vm2537_vm0, %v5966_v22, 0.0 }
 0x4c7   : > { %v3242_v26 = vrot.slane %v3241_v0, 2  ;;  %v3250_v46 = vadd.f32 %v3249_v12, %v3248_v63  ;;  %v3258_v1 = vrot.slane %v3257_v62, 4  ;;  %v3266_v21 = vadd.f32 %v3265_v27, %v3264_v41  ;;  %v6309_v27 = vld [vmem:[#allocation21_spill] sm:$0xff] }
 0x4c8   : > { %v6152_v42 = vadd.f32 %v3217_v7, %v3216_v35  ;;  %v3235_v38 = vrot.slane %v3234_v5, 1  ;;  %v3273_v34 = vsel %vm2537_vm0, %v5969_v9, 0.0  ;;  %v3274_v36 = vsel %vm2537_vm0, %v6308_v23, 0.0 }
 0x4c9   : > { %v3243_v37 = vadd.f32 %v3242_v26, %v3241_v0  ;;  %v3251_v54 = vrot.slane %v3250_v46, 2  ;;  %v3259_v8 = vadd.f32 %v3258_v1, %v3257_v62  ;;  %v3267_v39 = vrot.slane %v3266_v21, 4 }
 0x4ca   : > { %v6158_v48 = vadd.f32 %v3226_v40, %v3225_v11  ;;  %v3275_v22 = vadd.f32 %v3274_v36, %v3273_v34  ;;  %v3282_v59 = vsel %vm2537_vm0, %v5978_v61, 0.0  ;;  %v3283_v32 = vsel %vm2537_vm0, %v5981_v60, 0.0  ;;  %v6311_v36 = vld [vmem:[#allocation23_spill] sm:$0xff] }
 0x4cb   : > { %v3244_v20 = vrot.slane %v3243_v37, 1  ;;  %v3252_v49 = vadd.f32 %v3251_v54, %v3250_v46  ;;  %v3260_v18 = vrot.slane %v3259_v8, 2  ;;  %v3268_v9 = vadd.f32 %v3267_v39, %v3266_v21  ;;  %v6310_v46 = vld [vmem:[#allocation22_spill] sm:$0xff]  ;;  %v6312_v54 = vld [vmem:[#allocation24_spill] sm:$0xff] }
 0x4cc   : > { %v3276_v35 = vrot.slane %v3275_v22, 4  ;;  %v3284_v29 = vadd.f32 %v3283_v32, %v3282_v59  ;;  %v3291_v55 = vsel %vm2537_vm0, %v5984_v43, 0.0  ;;  %v3292_v10 = vsel %vm2537_vm0, %v5987_v28, 0.0 }
 0x4cd   : > { %v6168_v63 = vadd.f32 %v3235_v38, %v3234_v5  ;;  %v3253_v57 = vrot.slane %v3252_v49, 1  ;;  %v3261_v51 = vadd.f32 %v3260_v18, %v3259_v8  ;;  %v3269_v61 = vrot.slane %v3268_v9, 2  ;;  %v6313_v18 = vld [vmem:[#allocation25_spill] sm:$0xff] }
 0x4ce   : > { %v3277_v47 = vadd.f32 %v3276_v35, %v3275_v22  ;;  %v3285_v44 = vrot.slane %v3284_v29, 4  ;;  %v3293_v60 = vadd.f32 %v3292_v10, %v3291_v55  ;;  %v3300_v7 = vsel %vm2537_vm0, %v5990_v53, 0.0  ;;  %v6314_v35 = vld [vmem:[#allocation26_spill] sm:$0xff] }
 0x4cf   : > { %v6172_v11 = vadd.f32 %v3244_v20, %v3243_v37  ;;  %v3262_v14 = vrot.slane %v3261_v51, 1  ;;  %v3270_v0 = vadd.f32 %v3269_v61, %v3268_v9  ;;  %v3301_v43 = vsel %vm2537_vm0, %v5993_v4, 0.0 }
 0x4d0   : > { %v3278_v12 = vrot.slane %v3277_v47, 2  ;;  %v3286_v28 = vadd.f32 %v3285_v44, %v3284_v29  ;;  %v3294_v62 = vrot.slane %v3293_v60, 4  ;;  %v3302_v41 = vadd.f32 %v3301_v43, %v3300_v7 }
 0x4d1   : > { %v6176_v40 = vadd.f32 %v3253_v57, %v3252_v49  ;;  %v3271_v5 = vrot.slane %v3270_v0, 1  ;;  %v3309_v26 = vsel %vm2537_vm0, %v6309_v27, 0.0  ;;  %v3310_v53 = vsel %vm2537_vm0, %v6310_v46, 0.0 }
 0x4d2   : > { %v3279_v1 = vadd.f32 %v3278_v12, %v3277_v47  ;;  %v3287_v21 = vrot.slane %v3286_v28, 2  ;;  %v3295_v38 = vadd.f32 %v3294_v62, %v3293_v60  ;;  %v3303_v34 = vrot.slane %v3302_v41, 4  ;;  %v6315_v60 = vld [vmem:[#allocation27_spill] sm:$0xff] }
 0x4d3   : > { %v6182_v23 = vadd.f32 %v3262_v14, %v3261_v51  ;;  %v3311_v4 = vadd.f32 %v3310_v53, %v3309_v26  ;;  %v3318_v37 = vsel %vm2537_vm0, %v6311_v36, 0.0  ;;  %v3319_v8 = vsel %vm2537_vm0, %v6312_v54, 0.0 }
 0x4d4   : > { %v3280_v39 = vrot.slane %v3279_v1, 1  ;;  %v3288_v22 = vadd.f32 %v3287_v21, %v3286_v28  ;;  %v3296_v59 = vrot.slane %v3295_v38, 2  ;;  %v3304_v32 = vadd.f32 %v3303_v34, %v3302_v41 }
 0x4d5   : > { %v3312_v20 = vrot.slane %v3311_v4, 4  ;;  %v3320_v49 = vadd.f32 %v3319_v8, %v3318_v37  ;;  %v3327_v9 = vsel %vm2537_vm0, %v6313_v18, 0.0  ;;  %v3328_v29 = vsel %vm2537_vm0, %v6314_v35, 0.0 }
 0x4d6   : > { %v6192_v55 = vadd.f32 %v3271_v5, %v3270_v0  ;;  %v3289_v10 = vrot.slane %v3288_v22, 1  ;;  %v3297_v57 = vadd.f32 %v3296_v59, %v3295_v38  ;;  %v3305_v51 = vrot.slane %v3304_v32, 2 }
 0x4d7   : > { %v3313_v61 = vadd.f32 %v3312_v20, %v3311_v4  ;;  %v3321_v47 = vrot.slane %v3320_v49, 4  ;;  %v3329_v44 = vadd.f32 %v3328_v29, %v3327_v9  ;;  %v3336_v7 = vsel %vm2537_vm0, %v6315_v60, 0.0 }
 0x4d8   : > { %v3281_v14 = vadd.f32 %v3280_v39, %v3279_v1  ;;  %v3298_v43 = vrot.slane %v3297_v57, 1  ;;  %v3306_v12 = vadd.f32 %v3305_v51, %v3304_v32  ;;  %v3337_v28 = vsel %vm2537_vm0, %v6052_v19, 0.0 }
 0x4d9   : > { %v3314_v62 = vrot.slane %v3313_v61, 2  ;;  %v3322_v41 = vadd.f32 %v3321_v47, %v3320_v49  ;;  %v3330_v27 = vrot.slane %v3329_v44, 4  ;;  %v3338_v0 = vadd.f32 %v3337_v28, %v3336_v7 }
 0x4da   : > { %v3290_v5 = vadd.f32 %v3289_v10, %v3288_v22  ;;  %v3307_v26 = vrot.slane %v3306_v12, 1  ;;  %v3377_v46 = vsel %vm2060_vm9, %v6056_v56, %v6054_v33  ;;  %v3384_v53 = vsel %vm2060_vm9, %v6104_v6, %v6102_v31 }
 0x4db   : > { %v3315_v1 = vadd.f32 %v3314_v62, %v3313_v61  ;;  %v3323_v21 = vrot.slane %v3322_v41, 2  ;;  %v3331_v38 = vadd.f32 %v3330_v27, %v3329_v44  ;;  %v3339_v34 = vrot.slane %v3338_v0, 4 }
 0x4dc   : > { %v3299_v4 = vadd.f32 %v3298_v43, %v3297_v57  ;;  %v3378_v19 = vsel %vm2062_vm10, %v6058_v58, %v3377_v46  ;;  %v3385_v36 = vsel %vm2062_vm10, %v6112_v50, %v3384_v53  ;;  %v3391_v37 = vsel %vm2060_vm9, %v6152_v42, %v6148_v45 }
 0x4dd   : > { %v3316_v33 = vrot.slane %v3315_v1, 1  ;;  %v3324_v56 = vadd.f32 %v3323_v21, %v3322_v41  ;;  %v3332_v54 = vrot.slane %v3331_v38, 2  ;;  %v3340_v8 = vadd.f32 %v3339_v34, %v3338_v0 }
 0x4de   : > { %v3379_v31 = vsel %vm2064_vm11, %v6062_v52, %v3378_v19  ;;  %v3386_v6 = vsel %vm2064_vm11, %v6116_v2, %v3385_v36  ;;  %v3392_v58 = vsel %vm2062_vm10, %v6158_v48, %v3391_v37  ;;  %v3398_v39 = vsel %vm2060_vm9, %v3290_v5, %v3281_v14 }
 0x4df   : > { %v3308_v50 = vadd.f32 %v3307_v26, %v3306_v12  ;;  %v3325_v22 = vrot.slane %v3324_v56, 1  ;;  %v3333_v59 = vadd.f32 %v3332_v54, %v3331_v38  ;;  %v3341_v32 = vrot.slane %v3340_v8, 2 }
 0x4e0   : > { %v3380_v45 = vsel %vm2066_vm12, %v6070_v15, %v3379_v31  ;;  %v3387_v42 = vsel %vm2066_vm12, %v6122_v24, %v3386_v6  ;;  %v3393_v52 = vsel %vm2064_vm11, %v6168_v63, %v3392_v58  ;;  %v3399_v2 = vsel %vm2062_vm10, %v3299_v4, %v3398_v39 }
 0x4e1   : > { %v3317_v20 = vadd.f32 %v3316_v33, %v3315_v1  ;;  %v3334_v48 = vrot.slane %v3333_v59, 1  ;;  %v3342_v49 = vadd.f32 %v3341_v32, %v3340_v8  ;;  %v3381_v18 = vsel %vm2068_vm13, %v6082_v3, %v3380_v45 }
 0x4e2   : > { %v3382_v9 = vsel %vm2070_vm14, %v6084_v25, %v3381_v18  ;;  %v3388_v15 = vsel %vm2068_vm13, %v6128_v13, %v3387_v42  ;;  %v3394_v24 = vsel %vm2066_vm12, %v6172_v11, %v3393_v52  ;;  %v3400_v63 = vsel %vm2064_vm11, %v3308_v50, %v3399_v2 }
 0x4e3   : > { %v3326_v35 = vadd.f32 %v3325_v22, %v3324_v56  ;;  %v3343_v29 = vrot.slane %v3342_v49, 1  ;;  %v3383_v10 = vsel %vm2072_vm15, %v6100_v17, %v3382_v9  ;;  %v3389_v3 = vsel %vm2070_vm14, %v6134_v30, %v3388_v15 }
 0x4e4   : > { %v3335_v25 = vadd.f32 %v3334_v48, %v3333_v59  ;;  %v3390_v57 = vsel %vm2072_vm15, %v6144_v16, %v3389_v3  ;;  %v3395_v13 = vsel %vm2068_vm13, %v6176_v40, %v3394_v24  ;;  %v3401_v11 = vsel %vm2066_vm12, %v3317_v20, %v3400_v63  ;;  %3409 = vst.msk [vmem:[%s3975_s20] sm:$0xff] %vm2537_vm0, %v3383_v10 }
 0x4e5   : > { %v3344_v51 = vadd.f32 %v3343_v29, %v3342_v49  ;;  %v3396_v61 = vsel %vm2070_vm14, %v6182_v23, %v3395_v13  ;;  %v3402_v17 = vsel %vm2068_vm13, %v3326_v35, %v3401_v11  ;;  %3410 = vst.msk [vmem:[%s3975_s20 + $0x8] sm:$0xff] %vm2537_vm0, %v3390_v57 }
 0x4e6   : > { %v3397_v30 = vsel %vm2072_vm15, %v6192_v55, %v3396_v61  ;;  %v3403_v16 = vsel %vm2070_vm14, %v3335_v25, %v3402_v17 }
 0x4e7   : > { %v3404_v47 = vsel %vm2072_vm15, %v3344_v51, %v3403_v16  ;;  %3411 = vst.msk [vmem:[%s3975_s20 + $0x10] sm:$0xff] %vm2537_vm0, %v3397_v30 }
 0x4e8   : > { %3412 = vst.msk [vmem:[%s3975_s20 + $0x18] sm:$0xff] %vm2537_vm0, %v3404_v47 }
 0x4e9 PF: > { %p3677_p5 = scmp.ge.s32.totalorder %s3838_s30, 2  ;;  %s3451_s19 = sand.u32 1, %s3826_s27  }
 0x4ea   : > { %s3452_s26 = scalar_lea.sflag [#allocation5], %s3451_s19 }
 0x4eb   : > { %p3670_p10 = pnand %p3677_p5, %p3942_p6 }
 0x4ed   : > { %p3671_p11 = pneg %p3670_p10 }
 0x4ef   : > { %3821 = dma.done.wait (%p3671_p11), %s3452_s26, 256  }
 0x4f0   : > { %3823 = vsyncadd (%p3671_p11), %s3452_s26, 4294967040  ;;  %p21_p12 = scmp.ge.s32.totalorder %s3925_s11, 4   ;;  %s6316_s27 = smov %s3830_s28 }
 0x4f1   : > { %s6317_s28 = smov %s3834_s29  ;;  %s6318_s29 = smov %s3936_s14 }
 0x4f2   : > { %s6319_s30 = smov %s3925_s11  ;;  %23 = sbr.rel (!%p21_p12) target bundleno = 5 (0x5), region = 130 }
 0x4f7   :  { %3466 = vsyncpa [#allocation5], 1 }
 0x4f8   :  { %3468 = vsyncpa [#allocation5 + $0x1], 1 }
 0x4f9   :  { %3469 = vsyncpa [#allocation6], 1 }
 0x4fa   :  { %3471 = vsyncpa [#allocation6 + $0x1], 1 }
 0x4fb   :  { %3472 = vsyncpa [#allocation8], 1 }

</bundles_post_ra>
